<compile_context>
chip_gen: v7x
topology: tpu7x:2x2x1
jax: 0.10.0
libtpu: 0.0.40
codegen_flags: <defaults>
</compile_context>

<pallas_src>
import jax
import jax.numpy as jnp
from jax import lax
from jax.experimental import pallas as pl
from jax.experimental.pallas import tpu as pltpu

LN_EPS = 1e-5
BN_EPS = 1e-5


def _round_up(x, m):
    return ((x + m - 1) // m) * m


def _vmem_capacity_bytes():
    """Physical VMEM per core (v5e/v6e: 128 MiB, v7x: 64 MiB); conservative fallback."""
    try:
        cap = getattr(pltpu.get_tpu_info(), "vmem_capacity_bytes", None)
        if cap:
            return int(cap)
    except Exception:
        pass
    return 64 * 1024 * 1024


def conformer_conv_module(x, params, *, tile_t=None):
    """x: (B, T, D) float32, params from init_params.  Returns (B, T, D) float32."""
    ln_g, ln_b, w1a, b1a, w1g, b1g, wdw, bdw, bn_g, bn_b, wp, bp = params
    x = x.astype(jnp.float32)
    B, T, D = x.shape
    K = wdw.shape[0]
    P = (K - 1) // 2

    # halo rows on each side of a time tile (power of two >= P, >= 16)
    HALO = 16
    while HALO < P:
        HALO *= 2
    t_align = max(128, HALO)

    # ---- generation-aware sizing ----
    vmem_cap = _vmem_capacity_bytes()
    vmem_limit = max(32 * 1024 * 1024, (vmem_cap * 3) // 4)   # 48 MiB on v7x, 96 MiB on v5e/v6e

    if tile_t is None:
        # ~36 B per (row, feature) covers the double-buffered input/output
        # tiles, the h scratch and the live f32 intermediates of phase 1.
        tile_t = int(0.6 * vmem_limit) // max(36 * D, 1)
        tile_t = min(1024, tile_t)
    tile_t = max(t_align, _round_up(tile_t, t_align))
    tile_t = min(tile_t, _round_up(T, t_align))               # don't exceed the sequence
    n_t = pl.cdiv(T, tile_t)
    T_round = n_t * tile_t
    ragged = (T_round != T)                                   # static: last tile has invalid rows

    R = tile_t // HALO                                        # halo block-index stride
    n_halo_max = pl.cdiv(T, HALO) - 1                         # last in-bounds halo block

    # depthwise-conv row chunk: bound vreg live ranges (f32 acc chunk <= ~64 KiB)
    CH = 128
    while CH > 16 and CH * D * 4 > 64 * 1024:
        CH //= 2
    CH = min(CH, tile_t)
    n_ch = tile_t // CH

    # fused D -> 2D projection: one bf16 MXU RHS serves both GLU halves
    w1_bf = jnp.concatenate([w1a, w1g], axis=1).astype(jnp.bfloat16)   # (D, 2D)
    b1f = jnp.concatenate([b1a, b1g], axis=1).astype(jnp.float32)      # (1, 2D)
    wp_bf = wp.astype(jnp.bfloat16)
    # NOTE: for best store performance D should be a multiple of 128 lanes.

    # ================= phase 1: LN + proj + GLU + depthwise conv + BN partials =================
    def phase1_kernel(xm_ref, xl_ref, xt_ref, ln_g_ref, ln_b_ref, w1_ref, b1_ref,
                      wdw_ref, bdw_ref, y_ref, stats_ref, h_scr):
        i = pl.program_id(1)
        t0 = i * tile_t

        def ln_proj_glu(xp):
            # 1) LayerNorm(dim); 2) fused D->2D projection (one bf16 matmul); 3) GLU
            mu = jnp.mean(xp, axis=-1, keepdims=True)
            var = jnp.mean(jnp.square(xp - mu), axis=-1, keepdims=True)
            xn = (xp - mu) * lax.rsqrt(var + LN_EPS) * ln_g_ref[...] + ln_b_ref[...]
            pj = jnp.dot(xn.astype(jnp.bfloat16), w1_ref[...],
                         preferred_element_type=jnp.float32) + b1_ref[...]
            return pj[:, :D] * jax.nn.sigmoid(pj[:, D:])

        # main rows [t0, t0+tile_t): mask past-T rows only when the tiling is ragged
        hm = ln_proj_glu(xm_ref[0])
        if ragged:
            rows = t0 + lax.broadcasted_iota(jnp.int32, (tile_t, 1), 0)
            hm = jnp.where(rows < T, hm, 0.0)
        h_scr[HALO:HALO + tile_t, :] = hm

        # leading halo rows [t0-HALO, t0): zero on the first tile (conv left padding)
        hl = ln_proj_glu(xl_ref[0])
        h_scr[0:HALO, :] = jnp.where(i > 0, hl, 0.0)

        # trailing halo rows [t0+tile_t, t0+tile_t+HALO): zero past the true length
        ht = ln_proj_glu(xt_ref[0])
        trows = t0 + tile_t + lax.broadcasted_iota(jnp.int32, (HALO, 1), 0)
        h_scr[HALO + tile_t:, :] = jnp.where(trows < T, ht, 0.0)

        # 4) depthwise conv over time, chunked so acc + loaded rows stay in registers;
        #    per-tile BN partial sums accumulate in the loop carry.
        w = wdw_ref[...]                                    # (K, D), VMEM-resident
        bias = bdw_ref[...]                                 # (1, D)

        def conv_chunk(c, stats):
            base = c * CH
            if not isinstance(base, int):
                base = pl.multiple_of(base, CH)
            acc = jnp.zeros((CH, D), jnp.float32)
            for k in range(K):                              # static unroll over the taps
                acc = acc + h_scr[pl.ds(base + (HALO - P) + k, CH), :] * w[k:k + 1, :]
            acc = acc + bias
            if ragged:                                      # keep BN stats exact past T
                orow = t0 + base + lax.broadcasted_iota(jnp.int32, (CH, 1), 0)
                acc = jnp.where(orow < T, acc, 0.0)
            y_ref[0, pl.ds(base, CH), :] = acc.astype(y_ref.dtype)   # bf16 intermediate
            upd = jnp.concatenate([jnp.sum(acc, axis=0, keepdims=True),
                                   jnp.sum(acc * acc, axis=0, keepdims=True)], axis=0)
            return stats + upd

        init = jnp.zeros((2, D), jnp.float32)
        if n_ch == 1:
            stats = conv_chunk(0, init)
        else:
            stats = lax.fori_loop(0, n_ch, conv_chunk, init)
        stats_ref[...] = stats.reshape(1, 1, 2, D)

    def _res1(arr):      # whole-array VMEM block, resident across the grid
        nd = arr.ndim
        return pl.BlockSpec(arr.shape, lambda b, i: (0,) * nd)

    x_main_spec = pl.BlockSpec((1, tile_t, D), lambda b, i: (b, i, 0))
    x_lead_spec = pl.BlockSpec((1, HALO, D),
                               lambda b, i: (b, jnp.maximum(i * R - 1, 0), 0))
    x_trail_spec = pl.BlockSpec((1, HALO, D),
                                lambda b, i: (b, jnp.minimum((i + 1) * R, n_halo_max), 0))

    y1, stats = pl.pallas_call(
        phase1_kernel,
        grid=(B, n_t),
        in_specs=[x_main_spec, x_lead_spec, x_trail_spec,
                  _res1(ln_g), _res1(ln_b), _res1(w1_bf), _res1(b1f),
                  _res1(wdw), _res1(bdw)],
        out_specs=(pl.BlockSpec((1, tile_t, D), lambda b, i: (b, i, 0)),
                   pl.BlockSpec((1, 1, 2, D), lambda b, i: (b, i, 0, 0))),
        out_shape=(jax.ShapeDtypeStruct((B, T_round, D), jnp.bfloat16),
                   jax.ShapeDtypeStruct((B, n_t, 2, D), jnp.float32)),
        scratch_shapes=[pltpu.VMEM((HALO + tile_t + HALO, D), jnp.float32)],
        compiler_params=pltpu.CompilerParams(
            dimension_semantics=("parallel", "parallel"),
            vmem_limit_bytes=vmem_limit),
    )(x, x, x, ln_g, ln_b, w1_bf, b1f, wdw, bdw)

    # ---- 5) BatchNorm finalize, hoisted to plain JAX (batch statistics over (B, T)) ----
    tot = stats.sum(axis=(0, 1))                             # (2, D)
    inv_n = 1.0 / float(B * T)
    mean = tot[0] * inv_n
    var = jnp.maximum(tot[1] * inv_n - mean * mean, 0.0)
    bn_scale = (bn_g.reshape(-1) * lax.rsqrt(var + BN_EPS)).reshape(1, D)
    bn_shift = (bn_b.reshape(-1) - mean * bn_scale.reshape(-1)).reshape(1, D)

    # ================= phase 2: BN apply + SiLU + pointwise conv (HBM-bound) =================
    # Decoupled, larger time block (multiple of tile_t that divides n_t) to
    # amortize the per-step overhead; output written directly at (B, T, D).
    rows2_cap = max(tile_t, min(4096, int(0.5 * vmem_limit) // max(24 * D, 1)))
    g2 = 1
    for cand in range(n_t, 0, -1):
        if n_t % cand == 0 and cand * tile_t <= rows2_cap:
            g2 = cand
            break
    tile_t2 = g2 * tile_t
    n_t2 = n_t // g2

    def phase2_kernel(y_ref, sc_ref, sh_ref, wp_ref, bp_ref, o_ref):
        z = y_ref[0].astype(jnp.float32) * sc_ref[...] + sh_ref[...]   # BatchNorm
        z = z * jax.nn.sigmoid(z)                                       # 6) SiLU
        # 7) pointwise Conv1d(D, D, 1); 8) Dropout(p=0.0) == identity
        o_ref[0] = (jnp.dot(z.astype(jnp.bfloat16), wp_ref[...],
                            preferred_element_type=jnp.float32)
                    + bp_ref[...]).astype(o_ref.dtype)

    def _res2(arr):
        nd = arr.ndim
        return pl.BlockSpec(arr.shape, lambda b, j: (0,) * nd)

    out = pl.pallas_call(
        phase2_kernel,
        grid=(B, n_t2),
        in_specs=[pl.BlockSpec((1, tile_t2, D), lambda b, j: (b, j, 0)),
                  _res2(bn_scale), _res2(bn_shift), _res2(wp_bf), _res2(bp)],
        out_specs=pl.BlockSpec((1, tile_t2, D), lambda b, j: (b, j, 0)),
        out_shape=jax.ShapeDtypeStruct((B, T, D), jnp.float32),
        compiler_params=pltpu.CompilerParams(
            dimension_semantics=("parallel", "parallel"),
            vmem_limit_bytes=vmem_limit),
    )(y1, bn_scale, bn_shift, wp_bf, bp)
    return out


def init_params(key, dim, expansion_factor=2, kernel_size=31):
    """Deterministic parameter init; shapes follow the PyTorch __init__."""
    inner = dim * expansion_factor
    ks = jax.random.split(key, 6)
    # LayerNorm(dim): PyTorch default init (ones / zeros)
    ln_g = jnp.ones((1, dim), jnp.float32)
    ln_b = jnp.zeros((1, dim), jnp.float32)
    # Linear(dim, inner): weight (inner, dim), bias (inner,)
    w1 = jax.random.normal(ks[0], (inner, dim), jnp.float32) * 0.1
    b1 = jax.random.normal(ks[1], (inner,), jnp.float32) * 0.1
    w1a = jnp.transpose(w1[:dim, :])          # (D, D): first half -> GLU "a"
    b1a = b1[:dim].reshape(1, dim)
    w1g = jnp.transpose(w1[dim:, :])          # (D, D): second half -> GLU gate
    b1g = b1[dim:].reshape(1, dim)
    # Depthwise Conv1d(dim, dim, K, groups=dim): weight (dim, 1, K), bias (dim,)
    wdw_pt = jax.random.normal(ks[2], (dim, 1, kernel_size), jnp.float32) * 0.1
    wdw = jnp.transpose(wdw_pt[:, 0, :], (1, 0))   # (K, D)
    bdw = (jax.random.normal(ks[3], (dim,), jnp.float32) * 0.1).reshape(1, dim)
    # BatchNorm1d(dim): PyTorch default init (ones / zeros)
    bn_g = jnp.ones((1, dim), jnp.float32)
    bn_b = jnp.zeros((1, dim), jnp.float32)
    # Pointwise Conv1d(dim, dim, 1): weight (dim, dim, 1), bias (dim,)
    wp_pt = jax.random.normal(ks[4], (dim, dim, 1), jnp.float32) * 0.1
    wp = jnp.transpose(wp_pt[:, :, 0])        # (D_in, D_out)
    bp = (jax.random.normal(ks[5], (dim,), jnp.float32) * 0.1).reshape(1, dim)
    return (ln_g, ln_b, w1a, b1a, w1g, b1g, wdw, bdw, bn_g, bn_b, wp, bp)


def reference(x, params):
    """Pure-JAX reference matching the kernel's precision choices
    (bf16 matmul inputs with f32 accumulation, bf16 inter-phase intermediate)."""
    ln_g, ln_b, w1a, b1a, w1g, b1g, wdw, bdw, bn_g, bn_b, wp, bp = params
    B, T, D = x.shape
    K = wdw.shape[0]
    P = (K - 1) // 2
    mu = x.mean(-1, keepdims=True)
    var = ((x - mu) ** 2).mean(-1, keepdims=True)
    xn = (x - mu) * lax.rsqrt(var + LN_EPS) * ln_g.reshape(1, 1, D) + ln_b.reshape(1, 1, D)
    xb = xn.astype(jnp.bfloat16)
    a = jnp.einsum('btd,de->bte', xb, w1a.astype(jnp.bfloat16),
                   preferred_element_type=jnp.float32) + b1a.reshape(1, 1, D)
    g = jnp.einsum('btd,de->bte', xb, w1g.astype(jnp.bfloat16),
                   preferred_element_type=jnp.float32) + b1g.reshape(1, 1, D)
    h = a * jax.nn.sigmoid(g)
    hp = jnp.pad(h, ((0, 0), (P, P), (0, 0)))
    acc = jnp.zeros((B, T, D), jnp.float32)
    for k in range(K):
        acc = acc + hp[:, k:k + T, :] * wdw[k].reshape(1, 1, D)
    acc = acc + bdw.reshape(1, 1, D)
    bm = acc.mean(axis=(0, 1), keepdims=True)
    bv = ((acc - bm) ** 2).mean(axis=(0, 1), keepdims=True)
    # the kernel stores the conv result in bf16 between its two phases
    # (BatchNorm statistics stay fp32-exact)
    acc_q = acc.astype(jnp.bfloat16).astype(jnp.float32)
    z = (acc_q - bm) * lax.rsqrt(bv + BN_EPS) * bn_g.reshape(1, 1, D) + bn_b.reshape(1, 1, D)
    z = z * jax.nn.sigmoid(z)
    return jnp.einsum('btd,de->bte', z.astype(jnp.bfloat16), wp.astype(jnp.bfloat16),
                      preferred_element_type=jnp.float32) + bp.reshape(1, 1, D)


if __name__ == "__main__":
    # small test: multi-tile time axis (ragged last tile), lane-dense D,
    # exercises lead/trail halos, clamped index maps and boundary masking.
    B, T, D = 2, 300, 128
    K = 31                      # depthwise kernel size (module default)
    key = jax.random.PRNGKey(0)
    kx, kp = jax.random.split(key)
    x = jax.random.normal(kx, (B, T, D), jnp.float32)
    params = init_params(kp, D, expansion_factor=2, kernel_size=K)

    out = conformer_conv_module(x, params, tile_t=128)
    out = jax.block_until_ready(out)

    ref = reference(x, params)
    assert out.shape == (B, T, D)
    assert jnp.allclose(out, ref, atol=5e-3, rtol=5e-3), \
        f"max abs err {jnp.max(jnp.abs(out - ref))}"
    print("KERNEL_OK")
</pallas_src>

<mosaic_0001>
module attributes {stable_mosaic.version = 11 : i64} {
  func.func @phase1_kernel(%arg0: i32, %arg1: i32, %arg2: memref<1x128x128xf32, #tpu.memory_space<vmem>>, %arg3: memref<1x16x128xf32, #tpu.memory_space<vmem>>, %arg4: memref<1x16x128xf32, #tpu.memory_space<vmem>>, %arg5: memref<1x128xf32, #tpu.memory_space<vmem>>, %arg6: memref<1x128xf32, #tpu.memory_space<vmem>>, %arg7: memref<128x256xbf16, #tpu.memory_space<vmem>>, %arg8: memref<1x256xf32, #tpu.memory_space<vmem>>, %arg9: memref<31x128xf32, #tpu.memory_space<vmem>>, %arg10: memref<1x128xf32, #tpu.memory_space<vmem>>, %arg11: memref<1x128x128xbf16, #tpu.memory_space<vmem>>, %arg12: memref<1x1x2x128xf32, #tpu.memory_space<vmem>>, %arg13: memref<160x128xf32, #tpu.memory_space<vmem>>) attributes {dimension_semantics = [#tpu.dimension_semantics<parallel>, #tpu.dimension_semantics<parallel>], iteration_bounds = array<i64: 2, 3>, scalar_prefetch = 0 : i64, scratch_operands = 1 : i64, tpu.core_type = #tpu.core_type<tc>, window_params = [{transform_indices = @transform_0, window_bounds = array<i64: 1, 128, 128>}, {transform_indices = @transform_1, window_bounds = array<i64: 1, 16, 128>}, {transform_indices = @transform_2, window_bounds = array<i64: 1, 16, 128>}, {pipeline_mode = #tpu.pipeline_mode<synchronous>, transform_indices = @transform_3, window_bounds = array<i64: 1, 128>}, {pipeline_mode = #tpu.pipeline_mode<synchronous>, transform_indices = @transform_4, window_bounds = array<i64: 1, 128>}, {pipeline_mode = #tpu.pipeline_mode<synchronous>, transform_indices = @transform_5, window_bounds = array<i64: 128, 256>}, {pipeline_mode = #tpu.pipeline_mode<synchronous>, transform_indices = @transform_6, window_bounds = array<i64: 1, 256>}, {pipeline_mode = #tpu.pipeline_mode<synchronous>, transform_indices = @transform_7, window_bounds = array<i64: 31, 128>}, {pipeline_mode = #tpu.pipeline_mode<synchronous>, transform_indices = @transform_8, window_bounds = array<i64: 1, 128>}, {transform_indices = @transform_9, window_bounds = array<i64: 1, 128, 128>}, {transform_indices = @transform_10, window_bounds = array<i64: 1, 1, 2, 128>}]} {
    %c128_i32 = arith.constant 128 : i32
    %0 = arith.muli %arg1, %c128_i32 : i32
    %c0 = arith.constant 0 : index
    %c0_0 = arith.constant 0 : index
    %c0_1 = arith.constant 0 : index
    %1 = vector.load %arg2[%c0, %c0_0, %c0_1] : memref<1x128x128xf32, #tpu.memory_space<vmem>>, vector<1x128x128xf32>
    %2 = vector.shape_cast %1 : vector<1x128x128xf32> to vector<128x128xf32>
    %cst = arith.constant dense<0.000000e+00> : vector<128xf32>
    %3 = vector.multi_reduction <add>, %2, %cst [1] : vector<128x128xf32> to vector<128xf32>
    %4 = vector.shape_cast %3 : vector<128xf32> to vector<128x1xf32>
    %cst_2 = arith.constant 1.280000e+02 : f32
    %5 = vector.broadcast %cst_2 : f32 to vector<128x1xf32>
    %6 = arith.divf %4, %5 : vector<128x1xf32>
    %7 = vector.broadcast %6 : vector<128x1xf32> to vector<128x128xf32>
    %8 = arith.subf %2, %7 : vector<128x128xf32>
    %9 = arith.mulf %8, %8 : vector<128x128xf32>
    %cst_3 = arith.constant dense<0.000000e+00> : vector<128xf32>
    %10 = vector.multi_reduction <add>, %9, %cst_3 [1] : vector<128x128xf32> to vector<128xf32>
    %11 = vector.shape_cast %10 : vector<128xf32> to vector<128x1xf32>
    %cst_4 = arith.constant 1.280000e+02 : f32
    %12 = vector.broadcast %cst_4 : f32 to vector<128x1xf32>
    %13 = arith.divf %11, %12 : vector<128x1xf32>
    %14 = vector.broadcast %6 : vector<128x1xf32> to vector<128x128xf32>
    %15 = arith.subf %2, %14 : vector<128x128xf32>
    %cst_5 = arith.constant 9.99999974E-6 : f32
    %16 = vector.broadcast %cst_5 : f32 to vector<128x1xf32>
    %17 = arith.addf %13, %16 : vector<128x1xf32>
    %18 = math.rsqrt %17 : vector<128x1xf32>
    %19 = vector.broadcast %18 : vector<128x1xf32> to vector<128x128xf32>
    %20 = arith.mulf %15, %19 : vector<128x128xf32>
    %c0_6 = arith.constant 0 : index
    %c0_7 = arith.constant 0 : index
    %21 = vector.load %arg5[%c0_6, %c0_7] : memref<1x128xf32, #tpu.memory_space<vmem>>, vector<1x128xf32>
    %22 = vector.broadcast %21 : vector<1x128xf32> to vector<128x128xf32>
    %23 = arith.mulf %20, %22 : vector<128x128xf32>
    %c0_8 = arith.constant 0 : index
    %c0_9 = arith.constant 0 : index
    %24 = vector.load %arg6[%c0_8, %c0_9] : memref<1x128xf32, #tpu.memory_space<vmem>>, vector<1x128xf32>
    %25 = vector.broadcast %24 : vector<1x128xf32> to vector<128x128xf32>
    %26 = arith.addf %23, %25 : vector<128x128xf32>
    %27 = arith.truncf %26 : vector<128x128xf32> to vector<128x128xbf16>
    %c0_10 = arith.constant 0 : index
    %c0_11 = arith.constant 0 : index
    %28 = vector.load %arg7[%c0_10, %c0_11] : memref<128x256xbf16, #tpu.memory_space<vmem>>, vector<128x256xbf16>
    %cst_12 = arith.constant dense<0.000000e+00> : vector<128x256xf32>
    %29 = tpu.matmul %27, %28, %cst_12 {dimension_numbers = #tpu.dot_dimension_numbers<[1], [0], [0], [1], [0, 0, 1, 1], [], []>} : vector<128x128xbf16>, vector<128x256xbf16>, vector<128x256xf32> -> vector<128x256xf32>
    %c0_13 = arith.constant 0 : index
    %c0_14 = arith.constant 0 : index
    %30 = vector.load %arg8[%c0_13, %c0_14] : memref<1x256xf32, #tpu.memory_space<vmem>>, vector<1x256xf32>
    %31 = vector.broadcast %30 : vector<1x256xf32> to vector<128x256xf32>
    %32 = arith.addf %29, %31 : vector<128x256xf32>
    %33 = vector.extract_strided_slice %32 {offsets = [0, 0], sizes = [128, 128], strides = [1, 1]} : vector<128x256xf32> to vector<128x128xf32>
    %34 = vector.extract_strided_slice %32 {offsets = [0, 128], sizes = [128, 128], strides = [1, 1]} : vector<128x256xf32> to vector<128x128xf32>
    %35 = arith.negf %34 : vector<128x128xf32>
    %36 = math.exp %35 : vector<128x128xf32>
    %cst_15 = arith.constant 1.000000e+00 : f32
    %37 = vector.broadcast %cst_15 : f32 to vector<128x128xf32>
    %38 = arith.addf %37, %36 : vector<128x128xf32>
    %39 = arith.divf %37, %38 : vector<128x128xf32>
    %40 = arith.mulf %33, %39 : vector<128x128xf32>
    %41 = tpu.iota {dimensions = array<i32: 0>} : vector<128x1xi32>
    %42 = vector.broadcast %0 : i32 to vector<128x1xi32>
    %43 = arith.addi %42, %41 : vector<128x1xi32>
    %c300_i32 = arith.constant 300 : i32
    %44 = vector.broadcast %c300_i32 : i32 to vector<128x1xi32>
    %45 = arith.cmpi slt, %43, %44 : vector<128x1xi32>
    %cst_16 = arith.constant 0.000000e+00 : f32
    %46 = vector.shape_cast %45 : vector<128x1xi1> to vector<128x1xi1>
    %47 = vector.broadcast %46 : vector<128x1xi1> to vector<128x128xi1>
    %48 = vector.broadcast %cst_16 : f32 to vector<128x128xf32>
    %49 = arith.select %47, %40, %48 : vector<128x128xi1>, vector<128x128xf32>
    %c16 = arith.constant 16 : index
    %c0_17 = arith.constant 0 : index
    %50 = vector.load %arg13[%c16, %c0_17] : memref<160x128xf32, #tpu.memory_space<vmem>>, vector<128x128xf32>
    tpu.vector_store %arg13[%c16, %c0_17], %49 {strides = array<i32>} : memref<160x128xf32, #tpu.memory_space<vmem>>, vector<128x128xf32>,
    %c0_18 = arith.constant 0 : index
    %c0_19 = arith.constant 0 : index
    %c0_20 = arith.constant 0 : index
    %51 = vector.load %arg3[%c0_18, %c0_19, %c0_20] : memref<1x16x128xf32, #tpu.memory_space<vmem>>, vector<1x16x128xf32>
    %52 = vector.shape_cast %51 : vector<1x16x128xf32> to vector<16x128xf32>
    %cst_21 = arith.constant dense<0.000000e+00> : vector<16xf32>
    %53 = vector.multi_reduction <add>, %52, %cst_21 [1] : vector<16x128xf32> to vector<16xf32>
    %54 = vector.shape_cast %53 : vector<16xf32> to vector<16x1xf32>
    %cst_22 = arith.constant 1.280000e+02 : f32
    %55 = vector.broadcast %cst_22 : f32 to vector<16x1xf32>
    %56 = arith.divf %54, %55 : vector<16x1xf32>
    %57 = vector.broadcast %56 : vector<16x1xf32> to vector<16x128xf32>
    %58 = arith.subf %52, %57 : vector<16x128xf32>
    %59 = arith.mulf %58, %58 : vector<16x128xf32>
    %cst_23 = arith.constant dense<0.000000e+00> : vector<16xf32>
    %60 = vector.multi_reduction <add>, %59, %cst_23 [1] : vector<16x128xf32> to vector<16xf32>
    %61 = vector.shape_cast %60 : vector<16xf32> to vector<16x1xf32>
    %cst_24 = arith.constant 1.280000e+02 : f32
    %62 = vector.broadcast %cst_24 : f32 to vector<16x1xf32>
    %63 = arith.divf %61, %62 : vector<16x1xf32>
    %64 = vector.broadcast %56 : vector<16x1xf32> to vector<16x128xf32>
    %65 = arith.subf %52, %64 : vector<16x128xf32>
    %cst_25 = arith.constant 9.99999974E-6 : f32
    %66 = vector.broadcast %cst_25 : f32 to vector<16x1xf32>
    %67 = arith.addf %63, %66 : vector<16x1xf32>
    %68 = math.rsqrt %67 : vector<16x1xf32>
    %69 = vector.broadcast %68 : vector<16x1xf32> to vector<16x128xf32>
    %70 = arith.mulf %65, %69 : vector<16x128xf32>
    %c0_26 = arith.constant 0 : index
    %c0_27 = arith.constant 0 : index
    %71 = vector.load %arg5[%c0_26, %c0_27] : memref<1x128xf32, #tpu.memory_space<vmem>>, vector<1x128xf32>
    %72 = vector.broadcast %71 : vector<1x128xf32> to vector<16x128xf32>
    %73 = arith.mulf %70, %72 : vector<16x128xf32>
    %c0_28 = arith.constant 0 : index
    %c0_29 = arith.constant 0 : index
    %74 = vector.load %arg6[%c0_28, %c0_29] : memref<1x128xf32, #tpu.memory_space<vmem>>, vector<1x128xf32>
    %75 = vector.broadcast %74 : vector<1x128xf32> to vector<16x128xf32>
    %76 = arith.addf %73, %75 : vector<16x128xf32>
    %77 = arith.truncf %76 : vector<16x128xf32> to vector<16x128xbf16>
    %c0_30 = arith.constant 0 : index
    %c0_31 = arith.constant 0 : index
    %78 = vector.load %arg7[%c0_30, %c0_31] : memref<128x256xbf16, #tpu.memory_space<vmem>>, vector<128x256xbf16>
    %cst_32 = arith.constant dense<0.000000e+00> : vector<16x256xf32>
    %79 = tpu.matmul %77, %78, %cst_32 {dimension_numbers = #tpu.dot_dimension_numbers<[1], [0], [0], [1], [0, 0, 1, 1], [], []>} : vector<16x128xbf16>, vector<128x256xbf16>, vector<16x256xf32> -> vector<16x256xf32>
    %c0_33 = arith.constant 0 : index
    %c0_34 = arith.constant 0 : index
    %80 = vector.load %arg8[%c0_33, %c0_34] : memref<1x256xf32, #tpu.memory_space<vmem>>, vector<1x256xf32>
    %81 = vector.broadcast %80 : vector<1x256xf32> to vector<16x256xf32>
    %82 = arith.addf %79, %81 : vector<16x256xf32>
    %83 = vector.extract_strided_slice %82 {offsets = [0, 0], sizes = [16, 128], strides = [1, 1]} : vector<16x256xf32> to vector<16x128xf32>
    %84 = vector.extract_strided_slice %82 {offsets = [0, 128], sizes = [16, 128], strides = [1, 1]} : vector<16x256xf32> to vector<16x128xf32>
    %85 = arith.negf %84 : vector<16x128xf32>
    %86 = math.exp %85 : vector<16x128xf32>
    %cst_35 = arith.constant 1.000000e+00 : f32
    %87 = vector.broadcast %cst_35 : f32 to vector<16x128xf32>
    %88 = arith.addf %87, %86 : vector<16x128xf32>
    %89 = arith.divf %87, %88 : vector<16x128xf32>
    %90 = arith.mulf %83, %89 : vector<16x128xf32>
    %c0_i32 = arith.constant 0 : i32
    %91 = arith.cmpi sgt, %arg1, %c0_i32 : i32
    %cst_36 = arith.constant 0.000000e+00 : f32
    %92 = vector.broadcast %cst_36 : f32 to vector<16x128xf32>
    %93 = arith.select %91, %90, %92 : vector<16x128xf32>
    %c0_37 = arith.constant 0 : index
    %c0_38 = arith.constant 0 : index
    %94 = vector.load %arg13[%c0_37, %c0_38] : memref<160x128xf32, #tpu.memory_space<vmem>>, vector<16x128xf32>
    tpu.vector_store %arg13[%c0_37, %c0_38], %93 {strides = array<i32>} : memref<160x128xf32, #tpu.memory_space<vmem>>, vector<16x128xf32>,
    %c0_39 = arith.constant 0 : index
    %c0_40 = arith.constant 0 : index
    %c0_41 = arith.constant 0 : index
    %95 = vector.load %arg4[%c0_39, %c0_40, %c0_41] : memref<1x16x128xf32, #tpu.memory_space<vmem>>, vector<1x16x128xf32>
    %96 = vector.shape_cast %95 : vector<1x16x128xf32> to vector<16x128xf32>
    %cst_42 = arith.constant dense<0.000000e+00> : vector<16xf32>
    %97 = vector.multi_reduction <add>, %96, %cst_42 [1] : vector<16x128xf32> to vector<16xf32>
    %98 = vector.shape_cast %97 : vector<16xf32> to vector<16x1xf32>
    %cst_43 = arith.constant 1.280000e+02 : f32
    %99 = vector.broadcast %cst_43 : f32 to vector<16x1xf32>
    %100 = arith.divf %98, %99 : vector<16x1xf32>
    %101 = vector.broadcast %100 : vector<16x1xf32> to vector<16x128xf32>
    %102 = arith.subf %96, %101 : vector<16x128xf32>
    %103 = arith.mulf %102, %102 : vector<16x128xf32>
    %cst_44 = arith.constant dense<0.000000e+00> : vector<16xf32>
    %104 = vector.multi_reduction <add>, %103, %cst_44 [1] : vector<16x128xf32> to vector<16xf32>
    %105 = vector.shape_cast %104 : vector<16xf32> to vector<16x1xf32>
    %cst_45 = arith.constant 1.280000e+02 : f32
    %106 = vector.broadcast %cst_45 : f32 to vector<16x1xf32>
    %107 = arith.divf %105, %106 : vector<16x1xf32>
    %108 = vector.broadcast %100 : vector<16x1xf32> to vector<16x128xf32>
    %109 = arith.subf %96, %108 : vector<16x128xf32>
    %cst_46 = arith.constant 9.99999974E-6 : f32
    %110 = vector.broadcast %cst_46 : f32 to vector<16x1xf32>
    %111 = arith.addf %107, %110 : vector<16x1xf32>
    %112 = math.rsqrt %111 : vector<16x1xf32>
    %113 = vector.broadcast %112 : vector<16x1xf32> to vector<16x128xf32>
    %114 = arith.mulf %109, %113 : vector<16x128xf32>
    %c0_47 = arith.constant 0 : index
    %c0_48 = arith.constant 0 : index
    %115 = vector.load %arg5[%c0_47, %c0_48] : memref<1x128xf32, #tpu.memory_space<vmem>>, vector<1x128xf32>
    %116 = vector.broadcast %115 : vector<1x128xf32> to vector<16x128xf32>
    %117 = arith.mulf %114, %116 : vector<16x128xf32>
    %c0_49 = arith.constant 0 : index
    %c0_50 = arith.constant 0 : index
    %118 = vector.load %arg6[%c0_49, %c0_50] : memref<1x128xf32, #tpu.memory_space<vmem>>, vector<1x128xf32>
    %119 = vector.broadcast %118 : vector<1x128xf32> to vector<16x128xf32>
    %120 = arith.addf %117, %119 : vector<16x128xf32>
    %121 = arith.truncf %120 : vector<16x128xf32> to vector<16x128xbf16>
    %c0_51 = arith.constant 0 : index
    %c0_52 = arith.constant 0 : index
    %122 = vector.load %arg7[%c0_51, %c0_52] : memref<128x256xbf16, #tpu.memory_space<vmem>>, vector<128x256xbf16>
    %cst_53 = arith.constant dense<0.000000e+00> : vector<16x256xf32>
    %123 = tpu.matmul %121, %122, %cst_53 {dimension_numbers = #tpu.dot_dimension_numbers<[1], [0], [0], [1], [0, 0, 1, 1], [], []>} : vector<16x128xbf16>, vector<128x256xbf16>, vector<16x256xf32> -> vector<16x256xf32>
    %c0_54 = arith.constant 0 : index
    %c0_55 = arith.constant 0 : index
    %124 = vector.load %arg8[%c0_54, %c0_55] : memref<1x256xf32, #tpu.memory_space<vmem>>, vector<1x256xf32>
    %125 = vector.broadcast %124 : vector<1x256xf32> to vector<16x256xf32>
    %126 = arith.addf %123, %125 : vector<16x256xf32>
    %127 = vector.extract_strided_slice %126 {offsets = [0, 0], sizes = [16, 128], strides = [1, 1]} : vector<16x256xf32> to vector<16x128xf32>
    %128 = vector.extract_strided_slice %126 {offsets = [0, 128], sizes = [16, 128], strides = [1, 1]} : vector<16x256xf32> to vector<16x128xf32>
    %129 = arith.negf %128 : vector<16x128xf32>
    %130 = math.exp %129 : vector<16x128xf32>
    %cst_56 = arith.constant 1.000000e+00 : f32
    %131 = vector.broadcast %cst_56 : f32 to vector<16x128xf32>
    %132 = arith.addf %131, %130 : vector<16x128xf32>
    %133 = arith.divf %131, %132 : vector<16x128xf32>
    %134 = arith.mulf %127, %133 : vector<16x128xf32>
    %c128_i32_57 = arith.constant 128 : i32
    %135 = arith.addi %0, %c128_i32_57 : i32
    %136 = tpu.iota {dimensions = array<i32: 0>} : vector<16x1xi32>
    %137 = vector.broadcast %135 : i32 to vector<16x1xi32>
    %138 = arith.addi %137, %136 : vector<16x1xi32>
    %c300_i32_58 = arith.constant 300 : i32
    %139 = vector.broadcast %c300_i32_58 : i32 to vector<16x1xi32>
    %140 = arith.cmpi slt, %138, %139 : vector<16x1xi32>
    %cst_59 = arith.constant 0.000000e+00 : f32
    %141 = vector.shape_cast %140 : vector<16x1xi1> to vector<16x1xi1>
    %142 = vector.broadcast %141 : vector<16x1xi1> to vector<16x128xi1>
    %143 = vector.broadcast %cst_59 : f32 to vector<16x128xf32>
    %144 = arith.select %142, %134, %143 : vector<16x128xi1>, vector<16x128xf32>
    %c144 = arith.constant 144 : index
    %c0_60 = arith.constant 0 : index
    %145 = vector.load %arg13[%c144, %c0_60] : memref<160x128xf32, #tpu.memory_space<vmem>>, vector<16x128xf32>
    tpu.vector_store %arg13[%c144, %c0_60], %144 {strides = array<i32>} : memref<160x128xf32, #tpu.memory_space<vmem>>, vector<16x128xf32>,
    %c0_61 = arith.constant 0 : index
    %c0_62 = arith.constant 0 : index
    %146 = vector.load %arg9[%c0_61, %c0_62] : memref<31x128xf32, #tpu.memory_space<vmem>>, vector<31x128xf32>
    %c0_63 = arith.constant 0 : index
    %c0_64 = arith.constant 0 : index
    %147 = vector.load %arg10[%c0_63, %c0_64] : memref<1x128xf32, #tpu.memory_space<vmem>>, vector<1x128xf32>
    %cst_65 = arith.constant 0.000000e+00 : f32
    %148 = vector.broadcast %cst_65 : f32 to vector<2x128xf32>
    %cst_66 = arith.constant 0.000000e+00 : f32
    %149 = vector.broadcast %cst_66 : f32 to vector<128x128xf32>
    %c1 = arith.constant 1 : index
    %c0_67 = arith.constant 0 : index
    %150 = vector.load %arg13[%c1, %c0_67] : memref<160x128xf32, #tpu.memory_space<vmem>>, vector<128x128xf32>
    %151 = vector.extract_strided_slice %146 {offsets = [0, 0], sizes = [1, 128], strides = [1, 1]} : vector<31x128xf32> to vector<1x128xf32>
    %152 = vector.broadcast %151 : vector<1x128xf32> to vector<128x128xf32>
    %153 = arith.mulf %150, %152 : vector<128x128xf32>
    %154 = arith.addf %149, %153 : vector<128x128xf32>
    %c2 = arith.constant 2 : index
    %c0_68 = arith.constant 0 : index
    %155 = vector.load %arg13[%c2, %c0_68] : memref<160x128xf32, #tpu.memory_space<vmem>>, vector<128x128xf32>
    %156 = vector.extract_strided_slice %146 {offsets = [1, 0], sizes = [1, 128], strides = [1, 1]} : vector<31x128xf32> to vector<1x128xf32>
    %157 = vector.broadcast %156 : vector<1x128xf32> to vector<128x128xf32>
    %158 = arith.mulf %155, %157 : vector<128x128xf32>
    %159 = arith.addf %154, %158 : vector<128x128xf32>
    %c3 = arith.constant 3 : index
    %c0_69 = arith.constant 0 : index
    %160 = vector.load %arg13[%c3, %c0_69] : memref<160x128xf32, #tpu.memory_space<vmem>>, vector<128x128xf32>
    %161 = vector.extract_strided_slice %146 {offsets = [2, 0], sizes = [1, 128], strides = [1, 1]} : vector<31x128xf32> to vector<1x128xf32>
    %162 = vector.broadcast %161 : vector<1x128xf32> to vector<128x128xf32>
    %163 = arith.mulf %160, %162 : vector<128x128xf32>
    %164 = arith.addf %159, %163 : vector<128x128xf32>
    %c4 = arith.constant 4 : index
    %c0_70 = arith.constant 0 : index
    %165 = vector.load %arg13[%c4, %c0_70] : memref<160x128xf32, #tpu.memory_space<vmem>>, vector<128x128xf32>
    %166 = vector.extract_strided_slice %146 {offsets = [3, 0], sizes = [1, 128], strides = [1, 1]} : vector<31x128xf32> to vector<1x128xf32>
    %167 = vector.broadcast %166 : vector<1x128xf32> to vector<128x128xf32>
    %168 = arith.mulf %165, %167 : vector<128x128xf32>
    %169 = arith.addf %164, %168 : vector<128x128xf32>
    %c5 = arith.constant 5 : index
    %c0_71 = arith.constant 0 : index
    %170 = vector.load %arg13[%c5, %c0_71] : memref<160x128xf32, #tpu.memory_space<vmem>>, vector<128x128xf32>
    %171 = vector.extract_strided_slice %146 {offsets = [4, 0], sizes = [1, 128], strides = [1, 1]} : vector<31x128xf32> to vector<1x128xf32>
    %172 = vector.broadcast %171 : vector<1x128xf32> to vector<128x128xf32>
    %173 = arith.mulf %170, %172 : vector<128x128xf32>
    %174 = arith.addf %169, %173 : vector<128x128xf32>
    %c6 = arith.constant 6 : index
    %c0_72 = arith.constant 0 : index
    %175 = vector.load %arg13[%c6, %c0_72] : memref<160x128xf32, #tpu.memory_space<vmem>>, vector<128x128xf32>
    %176 = vector.extract_strided_slice %146 {offsets = [5, 0], sizes = [1, 128], strides = [1, 1]} : vector<31x128xf32> to vector<1x128xf32>
    %177 = vector.broadcast %176 : vector<1x128xf32> to vector<128x128xf32>
    %178 = arith.mulf %175, %177 : vector<128x128xf32>
    %179 = arith.addf %174, %178 : vector<128x128xf32>
    %c7 = arith.constant 7 : index
    %c0_73 = arith.constant 0 : index
    %180 = vector.load %arg13[%c7, %c0_73] : memref<160x128xf32, #tpu.memory_space<vmem>>, vector<128x128xf32>
    %181 = vector.extract_strided_slice %146 {offsets = [6, 0], sizes = [1, 128], strides = [1, 1]} : vector<31x128xf32> to vector<1x128xf32>
    %182 = vector.broadcast %181 : vector<1x128xf32> to vector<128x128xf32>
    %183 = arith.mulf %180, %182 : vector<128x128xf32>
    %184 = arith.addf %179, %183 : vector<128x128xf32>
    %c8 = arith.constant 8 : index
    %c0_74 = arith.constant 0 : index
    %185 = vector.load %arg13[%c8, %c0_74] : memref<160x128xf32, #tpu.memory_space<vmem>>, vector<128x128xf32>
    %186 = vector.extract_strided_slice %146 {offsets = [7, 0], sizes = [1, 128], strides = [1, 1]} : vector<31x128xf32> to vector<1x128xf32>
    %187 = vector.broadcast %186 : vector<1x128xf32> to vector<128x128xf32>
    %188 = arith.mulf %185, %187 : vector<128x128xf32>
    %189 = arith.addf %184, %188 : vector<128x128xf32>
    %c9 = arith.constant 9 : index
    %c0_75 = arith.constant 0 : index
    %190 = vector.load %arg13[%c9, %c0_75] : memref<160x128xf32, #tpu.memory_space<vmem>>, vector<128x128xf32>
    %191 = vector.extract_strided_slice %146 {offsets = [8, 0], sizes = [1, 128], strides = [1, 1]} : vector<31x128xf32> to vector<1x128xf32>
    %192 = vector.broadcast %191 : vector<1x128xf32> to vector<128x128xf32>
    %193 = arith.mulf %190, %192 : vector<128x128xf32>
    %194 = arith.addf %189, %193 : vector<128x128xf32>
    %c10 = arith.constant 10 : index
    %c0_76 = arith.constant 0 : index
    %195 = vector.load %arg13[%c10, %c0_76] : memref<160x128xf32, #tpu.memory_space<vmem>>, vector<128x128xf32>
    %196 = vector.extract_strided_slice %146 {offsets = [9, 0], sizes = [1, 128], strides = [1, 1]} : vector<31x128xf32> to vector<1x128xf32>
    %197 = vector.broadcast %196 : vector<1x128xf32> to vector<128x128xf32>
    %198 = arith.mulf %195, %197 : vector<128x128xf32>
    %199 = arith.addf %194, %198 : vector<128x128xf32>
    %c11 = arith.constant 11 : index
    %c0_77 = arith.constant 0 : index
    %200 = vector.load %arg13[%c11, %c0_77] : memref<160x128xf32, #tpu.memory_space<vmem>>, vector<128x128xf32>
    %201 = vector.extract_strided_slice %146 {offsets = [10, 0], sizes = [1, 128], strides = [1, 1]} : vector<31x128xf32> to vector<1x128xf32>
    %202 = vector.broadcast %201 : vector<1x128xf32> to vector<128x128xf32>
    %203 = arith.mulf %200, %202 : vector<128x128xf32>
    %204 = arith.addf %199, %203 : vector<128x128xf32>
    %c12 = arith.constant 12 : index
    %c0_78 = arith.constant 0 : index
    %205 = vector.load %arg13[%c12, %c0_78] : memref<160x128xf32, #tpu.memory_space<vmem>>, vector<128x128xf32>
    %206 = vector.extract_strided_slice %146 {offsets = [11, 0], sizes = [1, 128], strides = [1, 1]} : vector<31x128xf32> to vector<1x128xf32>
    %207 = vector.broadcast %206 : vector<1x128xf32> to vector<128x128xf32>
    %208 = arith.mulf %205, %207 : vector<128x128xf32>
    %209 = arith.addf %204, %208 : vector<128x128xf32>
    %c13 = arith.constant 13 : index
    %c0_79 = arith.constant 0 : index
    %210 = vector.load %arg13[%c13, %c0_79] : memref<160x128xf32, #tpu.memory_space<vmem>>, vector<128x128xf32>
    %211 = vector.extract_strided_slice %146 {offsets = [12, 0], sizes = [1, 128], strides = [1, 1]} : vector<31x128xf32> to vector<1x128xf32>
    %212 = vector.broadcast %211 : vector<1x128xf32> to vector<128x128xf32>
    %213 = arith.mulf %210, %212 : vector<128x128xf32>
    %214 = arith.addf %209, %213 : vector<128x128xf32>
    %c14 = arith.constant 14 : index
    %c0_80 = arith.constant 0 : index
    %215 = vector.load %arg13[%c14, %c0_80] : memref<160x128xf32, #tpu.memory_space<vmem>>, vector<128x128xf32>
    %216 = vector.extract_strided_slice %146 {offsets = [13, 0], sizes = [1, 128], strides = [1, 1]} : vector<31x128xf32> to vector<1x128xf32>
    %217 = vector.broadcast %216 : vector<1x128xf32> to vector<128x128xf32>
    %218 = arith.mulf %215, %217 : vector<128x128xf32>
    %219 = arith.addf %214, %218 : vector<128x128xf32>
    %c15 = arith.constant 15 : index
    %c0_81 = arith.constant 0 : index
    %220 = vector.load %arg13[%c15, %c0_81] : memref<160x128xf32, #tpu.memory_space<vmem>>, vector<128x128xf32>
    %221 = vector.extract_strided_slice %146 {offsets = [14, 0], sizes = [1, 128], strides = [1, 1]} : vector<31x128xf32> to vector<1x128xf32>
    %222 = vector.broadcast %221 : vector<1x128xf32> to vector<128x128xf32>
    %223 = arith.mulf %220, %222 : vector<128x128xf32>
    %224 = arith.addf %219, %223 : vector<128x128xf32>
    %c16_82 = arith.constant 16 : index
    %c0_83 = arith.constant 0 : index
    %225 = vector.load %arg13[%c16_82, %c0_83] : memref<160x128xf32, #tpu.memory_space<vmem>>, vector<128x128xf32>
    %226 = vector.extract_strided_slice %146 {offsets = [15, 0], sizes = [1, 128], strides = [1, 1]} : vector<31x128xf32> to vector<1x128xf32>
    %227 = vector.broadcast %226 : vector<1x128xf32> to vector<128x128xf32>
    %228 = arith.mulf %225, %227 : vector<128x128xf32>
    %229 = arith.addf %224, %228 : vector<128x128xf32>
    %c17 = arith.constant 17 : index
    %c0_84 = arith.constant 0 : index
    %230 = vector.load %arg13[%c17, %c0_84] : memref<160x128xf32, #tpu.memory_space<vmem>>, vector<128x128xf32>
    %231 = vector.extract_strided_slice %146 {offsets = [16, 0], sizes = [1, 128], strides = [1, 1]} : vector<31x128xf32> to vector<1x128xf32>
    %232 = vector.broadcast %231 : vector<1x128xf32> to vector<128x128xf32>
    %233 = arith.mulf %230, %232 : vector<128x128xf32>
    %234 = arith.addf %229, %233 : vector<128x128xf32>
    %c18 = arith.constant 18 : index
    %c0_85 = arith.constant 0 : index
    %235 = vector.load %arg13[%c18, %c0_85] : memref<160x128xf32, #tpu.memory_space<vmem>>, vector<128x128xf32>
    %236 = vector.extract_strided_slice %146 {offsets = [17, 0], sizes = [1, 128], strides = [1, 1]} : vector<31x128xf32> to vector<1x128xf32>
    %237 = vector.broadcast %236 : vector<1x128xf32> to vector<128x128xf32>
    %238 = arith.mulf %235, %237 : vector<128x128xf32>
    %239 = arith.addf %234, %238 : vector<128x128xf32>
    %c19 = arith.constant 19 : index
    %c0_86 = arith.constant 0 : index
    %240 = vector.load %arg13[%c19, %c0_86] : memref<160x128xf32, #tpu.memory_space<vmem>>, vector<128x128xf32>
    %241 = vector.extract_strided_slice %146 {offsets = [18, 0], sizes = [1, 128], strides = [1, 1]} : vector<31x128xf32> to vector<1x128xf32>
    %242 = vector.broadcast %241 : vector<1x128xf32> to vector<128x128xf32>
    %243 = arith.mulf %240, %242 : vector<128x128xf32>
    %244 = arith.addf %239, %243 : vector<128x128xf32>
    %c20 = arith.constant 20 : index
    %c0_87 = arith.constant 0 : index
    %245 = vector.load %arg13[%c20, %c0_87] : memref<160x128xf32, #tpu.memory_space<vmem>>, vector<128x128xf32>
    %246 = vector.extract_strided_slice %146 {offsets = [19, 0], sizes = [1, 128], strides = [1, 1]} : vector<31x128xf32> to vector<1x128xf32>
    %247 = vector.broadcast %246 : vector<1x128xf32> to vector<128x128xf32>
    %248 = arith.mulf %245, %247 : vector<128x128xf32>
    %249 = arith.addf %244, %248 : vector<128x128xf32>
    %c21 = arith.constant 21 : index
    %c0_88 = arith.constant 0 : index
    %250 = vector.load %arg13[%c21, %c0_88] : memref<160x128xf32, #tpu.memory_space<vmem>>, vector<128x128xf32>
    %251 = vector.extract_strided_slice %146 {offsets = [20, 0], sizes = [1, 128], strides = [1, 1]} : vector<31x128xf32> to vector<1x128xf32>
    %252 = vector.broadcast %251 : vector<1x128xf32> to vector<128x128xf32>
    %253 = arith.mulf %250, %252 : vector<128x128xf32>
    %254 = arith.addf %249, %253 : vector<128x128xf32>
    %c22 = arith.constant 22 : index
    %c0_89 = arith.constant 0 : index
    %255 = vector.load %arg13[%c22, %c0_89] : memref<160x128xf32, #tpu.memory_space<vmem>>, vector<128x128xf32>
    %256 = vector.extract_strided_slice %146 {offsets = [21, 0], sizes = [1, 128], strides = [1, 1]} : vector<31x128xf32> to vector<1x128xf32>
    %257 = vector.broadcast %256 : vector<1x128xf32> to vector<128x128xf32>
    %258 = arith.mulf %255, %257 : vector<128x128xf32>
    %259 = arith.addf %254, %258 : vector<128x128xf32>
    %c23 = arith.constant 23 : index
    %c0_90 = arith.constant 0 : index
    %260 = vector.load %arg13[%c23, %c0_90] : memref<160x128xf32, #tpu.memory_space<vmem>>, vector<128x128xf32>
    %261 = vector.extract_strided_slice %146 {offsets = [22, 0], sizes = [1, 128], strides = [1, 1]} : vector<31x128xf32> to vector<1x128xf32>
    %262 = vector.broadcast %261 : vector<1x128xf32> to vector<128x128xf32>
    %263 = arith.mulf %260, %262 : vector<128x128xf32>
    %264 = arith.addf %259, %263 : vector<128x128xf32>
    %c24 = arith.constant 24 : index
    %c0_91 = arith.constant 0 : index
    %265 = vector.load %arg13[%c24, %c0_91] : memref<160x128xf32, #tpu.memory_space<vmem>>, vector<128x128xf32>
    %266 = vector.extract_strided_slice %146 {offsets = [23, 0], sizes = [1, 128], strides = [1, 1]} : vector<31x128xf32> to vector<1x128xf32>
    %267 = vector.broadcast %266 : vector<1x128xf32> to vector<128x128xf32>
    %268 = arith.mulf %265, %267 : vector<128x128xf32>
    %269 = arith.addf %264, %268 : vector<128x128xf32>
    %c25 = arith.constant 25 : index
    %c0_92 = arith.constant 0 : index
    %270 = vector.load %arg13[%c25, %c0_92] : memref<160x128xf32, #tpu.memory_space<vmem>>, vector<128x128xf32>
    %271 = vector.extract_strided_slice %146 {offsets = [24, 0], sizes = [1, 128], strides = [1, 1]} : vector<31x128xf32> to vector<1x128xf32>
    %272 = vector.broadcast %271 : vector<1x128xf32> to vector<128x128xf32>
    %273 = arith.mulf %270, %272 : vector<128x128xf32>
    %274 = arith.addf %269, %273 : vector<128x128xf32>
    %c26 = arith.constant 26 : index
    %c0_93 = arith.constant 0 : index
    %275 = vector.load %arg13[%c26, %c0_93] : memref<160x128xf32, #tpu.memory_space<vmem>>, vector<128x128xf32>
    %276 = vector.extract_strided_slice %146 {offsets = [25, 0], sizes = [1, 128], strides = [1, 1]} : vector<31x128xf32> to vector<1x128xf32>
    %277 = vector.broadcast %276 : vector<1x128xf32> to vector<128x128xf32>
    %278 = arith.mulf %275, %277 : vector<128x128xf32>
    %279 = arith.addf %274, %278 : vector<128x128xf32>
    %c27 = arith.constant 27 : index
    %c0_94 = arith.constant 0 : index
    %280 = vector.load %arg13[%c27, %c0_94] : memref<160x128xf32, #tpu.memory_space<vmem>>, vector<128x128xf32>
    %281 = vector.extract_strided_slice %146 {offsets = [26, 0], sizes = [1, 128], strides = [1, 1]} : vector<31x128xf32> to vector<1x128xf32>
    %282 = vector.broadcast %281 : vector<1x128xf32> to vector<128x128xf32>
    %283 = arith.mulf %280, %282 : vector<128x128xf32>
    %284 = arith.addf %279, %283 : vector<128x128xf32>
    %c28 = arith.constant 28 : index
    %c0_95 = arith.constant 0 : index
    %285 = vector.load %arg13[%c28, %c0_95] : memref<160x128xf32, #tpu.memory_space<vmem>>, vector<128x128xf32>
    %286 = vector.extract_strided_slice %146 {offsets = [27, 0], sizes = [1, 128], strides = [1, 1]} : vector<31x128xf32> to vector<1x128xf32>
    %287 = vector.broadcast %286 : vector<1x128xf32> to vector<128x128xf32>
    %288 = arith.mulf %285, %287 : vector<128x128xf32>
    %289 = arith.addf %284, %288 : vector<128x128xf32>
    %c29 = arith.constant 29 : index
    %c0_96 = arith.constant 0 : index
    %290 = vector.load %arg13[%c29, %c0_96] : memref<160x128xf32, #tpu.memory_space<vmem>>, vector<128x128xf32>
    %291 = vector.extract_strided_slice %146 {offsets = [28, 0], sizes = [1, 128], strides = [1, 1]} : vector<31x128xf32> to vector<1x128xf32>
    %292 = vector.broadcast %291 : vector<1x128xf32> to vector<128x128xf32>
    %293 = arith.mulf %290, %292 : vector<128x128xf32>
    %294 = arith.addf %289, %293 : vector<128x128xf32>
    %c30 = arith.constant 30 : index
    %c0_97 = arith.constant 0 : index
    %295 = vector.load %arg13[%c30, %c0_97] : memref<160x128xf32, #tpu.memory_space<vmem>>, vector<128x128xf32>
    %296 = vector.extract_strided_slice %146 {offsets = [29, 0], sizes = [1, 128], strides = [1, 1]} : vector<31x128xf32> to vector<1x128xf32>
    %297 = vector.broadcast %296 : vector<1x128xf32> to vector<128x128xf32>
    %298 = arith.mulf %295, %297 : vector<128x128xf32>
    %299 = arith.addf %294, %298 : vector<128x128xf32>
    %c31 = arith.constant 31 : index
    %c0_98 = arith.constant 0 : index
    %300 = vector.load %arg13[%c31, %c0_98] : memref<160x128xf32, #tpu.memory_space<vmem>>, vector<128x128xf32>
    %301 = vector.extract_strided_slice %146 {offsets = [30, 0], sizes = [1, 128], strides = [1, 1]} : vector<31x128xf32> to vector<1x128xf32>
    %302 = vector.broadcast %301 : vector<1x128xf32> to vector<128x128xf32>
    %303 = arith.mulf %300, %302 : vector<128x128xf32>
    %304 = arith.addf %299, %303 : vector<128x128xf32>
    %305 = vector.broadcast %147 : vector<1x128xf32> to vector<128x128xf32>
    %306 = arith.addf %304, %305 : vector<128x128xf32>
    %c0_i32_99 = arith.constant 0 : i32
    %307 = arith.addi %0, %c0_i32_99 : i32
    %308 = tpu.iota {dimensions = array<i32: 0>} : vector<128x1xi32>
    %309 = vector.broadcast %307 : i32 to vector<128x1xi32>
    %310 = arith.addi %309, %308 : vector<128x1xi32>
    %c300_i32_100 = arith.constant 300 : i32
    %311 = vector.broadcast %c300_i32_100 : i32 to vector<128x1xi32>
    %312 = arith.cmpi slt, %310, %311 : vector<128x1xi32>
    %cst_101 = arith.constant 0.000000e+00 : f32
    %313 = vector.shape_cast %312 : vector<128x1xi1> to vector<128x1xi1>
    %314 = vector.broadcast %313 : vector<128x1xi1> to vector<128x128xi1>
    %315 = vector.broadcast %cst_101 : f32 to vector<128x128xf32>
    %316 = arith.select %314, %306, %315 : vector<128x128xi1>, vector<128x128xf32>
    %317 = arith.truncf %316 : vector<128x128xf32> to vector<128x128xbf16>
    %c0_102 = arith.constant 0 : index
    %c0_103 = arith.constant 0 : index
    %c0_104 = arith.constant 0 : index
    %318 = vector.load %arg11[%c0_102, %c0_103, %c0_104] : memref<1x128x128xbf16, #tpu.memory_space<vmem>>, vector<1x128x128xbf16>
    %319 = vector.shape_cast %318 : vector<1x128x128xbf16> to vector<128x128xbf16>
    %320 = vector.shape_cast %317 : vector<128x128xbf16> to vector<1x128x128xbf16>
    tpu.vector_store %arg11[%c0_102, %c0_103, %c0_104], %320 {strides = array<i32>} : memref<1x128x128xbf16, #tpu.memory_space<vmem>>, vector<1x128x128xbf16>,
    %cst_105 = arith.constant dense<0.000000e+00> : vector<128xf32>
    %321 = vector.multi_reduction <add>, %316, %cst_105 [0] : vector<128x128xf32> to vector<128xf32>
    %322 = vector.shape_cast %321 : vector<128xf32> to vector<1x128xf32>
    %323 = arith.mulf %316, %316 : vector<128x128xf32>
    %cst_106 = arith.constant dense<0.000000e+00> : vector<128xf32>
    %324 = vector.multi_reduction <add>, %323, %cst_106 [0] : vector<128x128xf32> to vector<128xf32>
    %325 = vector.shape_cast %324 : vector<128xf32> to vector<1x128xf32>
    %326 = tpu.concatenate %322, %325 in 0 : vector<1x128xf32>, vector<1x128xf32> -> vector<2x128xf32>
    %327 = arith.addf %148, %326 : vector<2x128xf32>
    %328 = vector.shape_cast %327 : vector<2x128xf32> to vector<1x1x2x128xf32>
    %c0_107 = arith.constant 0 : index
    %c0_108 = arith.constant 0 : index
    %c0_109 = arith.constant 0 : index
    %c0_110 = arith.constant 0 : index
    %329 = vector.load %arg12[%c0_107, %c0_108, %c0_109, %c0_110] : memref<1x1x2x128xf32, #tpu.memory_space<vmem>>, vector<1x1x2x128xf32>
    tpu.vector_store %arg12[%c0_107, %c0_108, %c0_109, %c0_110], %328 {strides = array<i32>} : memref<1x1x2x128xf32, #tpu.memory_space<vmem>>, vector<1x1x2x128xf32>,
    return
  }
  func.func @transform_0(%arg0: i32, %arg1: i32) -> (i32, i32, i32) {
    %c0_i32 = arith.constant 0 : i32
    %c0_i32_0 = arith.constant 0 : i32
    return %arg0, %arg1, %c0_i32 : i32, i32, i32
  }
  func.func @transform_1(%arg0: i32, %arg1: i32) -> (i32, i32, i32) {
    %c8_i32 = arith.constant 8 : i32
    %0 = arith.muli %arg1, %c8_i32 : i32
    %c1_i32 = arith.constant 1 : i32
    %1 = arith.subi %0, %c1_i32 : i32
    %c0_i32 = arith.constant 0 : i32
    %2 = arith.maxsi %1, %c0_i32 : i32
    %c0_i32_0 = arith.constant 0 : i32
    %c0_i32_1 = arith.constant 0 : i32
    return %arg0, %2, %c0_i32_0 : i32, i32, i32
  }
  func.func @transform_2(%arg0: i32, %arg1: i32) -> (i32, i32, i32) {
    %c1_i32 = arith.constant 1 : i32
    %0 = arith.addi %arg1, %c1_i32 : i32
    %c8_i32 = arith.constant 8 : i32
    %1 = arith.muli %0, %c8_i32 : i32
    %c18_i32 = arith.constant 18 : i32
    %2 = arith.minsi %1, %c18_i32 : i32
    %c0_i32 = arith.constant 0 : i32
    %c0_i32_0 = arith.constant 0 : i32
    return %arg0, %2, %c0_i32 : i32, i32, i32
  }
  func.func @transform_3(%arg0: i32, %arg1: i32) -> (i32, i32) {
    %c0_i32 = arith.constant 0 : i32
    %c0_i32_0 = arith.constant 0 : i32
    %c0_i32_1 = arith.constant 0 : i32
    return %c0_i32, %c0_i32_0 : i32, i32
  }
  func.func @transform_4(%arg0: i32, %arg1: i32) -> (i32, i32) {
    %c0_i32 = arith.constant 0 : i32
    %c0_i32_0 = arith.constant 0 : i32
    %c0_i32_1 = arith.constant 0 : i32
    return %c0_i32, %c0_i32_0 : i32, i32
  }
  func.func @transform_5(%arg0: i32, %arg1: i32) -> (i32, i32) {
    %c0_i32 = arith.constant 0 : i32
    %c0_i32_0 = arith.constant 0 : i32
    %c0_i32_1 = arith.constant 0 : i32
    return %c0_i32, %c0_i32_0 : i32, i32
  }
  func.func @transform_6(%arg0: i32, %arg1: i32) -> (i32, i32) {
    %c0_i32 = arith.constant 0 : i32
    %c0_i32_0 = arith.constant 0 : i32
    %c0_i32_1 = arith.constant 0 : i32
    return %c0_i32, %c0_i32_0 : i32, i32
  }
  func.func @transform_7(%arg0: i32, %arg1: i32) -> (i32, i32) {
    %c0_i32 = arith.constant 0 : i32
    %c0_i32_0 = arith.constant 0 : i32
    %c0_i32_1 = arith.constant 0 : i32
    return %c0_i32, %c0_i32_0 : i32, i32
  }
  func.func @transform_8(%arg0: i32, %arg1: i32) -> (i32, i32) {
    %c0_i32 = arith.constant 0 : i32
    %c0_i32_0 = arith.constant 0 : i32
    %c0_i32_1 = arith.constant 0 : i32
    return %c0_i32, %c0_i32_0 : i32, i32
  }
  func.func @transform_9(%arg0: i32, %arg1: i32) -> (i32, i32, i32) {
    %c0_i32 = arith.constant 0 : i32
    %c0_i32_0 = arith.constant 0 : i32
    return %arg0, %arg1, %c0_i32 : i32, i32, i32
  }
  func.func @transform_10(%arg0: i32, %arg1: i32) -> (i32, i32, i32, i32) {
    %c0_i32 = arith.constant 0 : i32
    %c0_i32_0 = arith.constant 0 : i32
    %c0_i32_1 = arith.constant 0 : i32
    return %arg0, %arg1, %c0_i32, %c0_i32_0 : i32, i32, i32, i32
  }
}

</mosaic_0001>

<bundles_post_ra>
// kernel: tpu_custom_call.1
= control target key start
LH: loop header
LB: loop body
LE: loop exit
PB: predicated region body
PF: predicated region fallthrough
CT: control target
= control target key end

     0   :  { %s6538_s0 = inlined_call_operand.vmem [shape: f32[2,300,128], index: 0, kind: input, shape index: {}]   ;;  %s6539_s1 = inlined_call_operand.vmem [shape: f32[2,300,128], index: 1, kind: input, shape index: {}]   ;;  %s6540_s2 = inlined_call_operand.vmem [shape: f32[2,300,128], index: 2, kind: input, shape index: {}]   ;;  %s6541_s3 = inlined_call_operand.vmem [shape: f32[1,128], index: 3, kind: input, shape index: {}]   ;;  %s6542_s4 = inlined_call_operand.vmem [shape: f32[1,128], index: 4, kind: input, shape index: {}]   ;;  %s6543_s5 = inlined_call_operand.vmem [shape: bf16[128,256], index: 5, kind: input, shape index: {}]   ;;  %s6544_s6 = inlined_call_operand.vmem [shape: f32[1,256], index: 6, kind: input, shape index: {}]   ;;  %s6545_s7 = inlined_call_operand.vmem [shape: f32[31,128], index: 7, kind: input, shape index: {}]   ;;  %s6546_s8 = inlined_call_operand.vmem [shape: f32[1,128], index: 8, kind: input, shape index: {}]   ;;  %s6547_s9 = inlined_call_operand.hbm [shape: bf16[2,384,128], index: 9, kind: output, shape index: {0}]   ;;  %s6548_s10 = inlined_call_operand.hbm [shape: f32[2,3,2,128], index: 10, kind: output, shape index: {1}]  }
   0x1   :  { %6659 = sst [smem:[#allocation109_spill]] %s6538_s0 }
   0x2   :  { %16 = vsyncpa [#allocation4], 0 }
   0x3   :  { %18 = vsyncpa [#allocation4 + $0x1], 0 }
   0x4   :  { %19 = vsyncpa [#allocation6], 0 }
   0x5   :  { %21 = vsyncpa [#allocation6 + $0x1], 0  ;;  %s3945_s13 = smov 0   ;;  %s3947_s14 = smov 0  }
   0x6   :  { %s3949_s15 = smov 0   ;;  %s3951_s16 = smov 0  }
   0x7   :  { %s3953_s17 = smov 0   ;;  %s3955_s18 = smov 0  }
   0x8   :  { %s3957_s19 = smov 0   ;;  %s3959_s20 = smov 0  }
   0x9 LB: > { %6660 = sst [smem:[#allocation9_spill]] %s3875_s18  ;;  %s3324_s21 = sadd.s32 4294967295, %s3883_s20   ;;  %s3883_s20 = sphi %s3959_s20, %s27_s20   ;;  %s3879_s19 = sphi %s3957_s19, %s7086_s19   ;;  %s3875_s18 = sphi %s3955_s18, %s7085_s18   ;;  %s3871_s17 = sphi %s3953_s17, %s7084_s17   ;;  %s3867_s16 = sphi %s3951_s16, %s7083_s16   ;;  %s3863_s15 = sphi %s3949_s15, %s7089_s15   ;;  %s3859_s14 = sphi %s3947_s14, %s7088_s14   ;;  %s3855_s13 = sphi %s3945_s13, %s7087_s13  }
   0xa   : > { %6661 = sst [smem:[#allocation10_spill]] %s3879_s19  ;;  %s3325_s22 = sadd.s32 4294967294, %s3883_s20  }
   0xb   : > { %s36_s23 = sadd.s32 1, %s3875_s18  ;;  %s39_s24 = sadd.s32 1, %s3879_s19 }
   0xc   : > { %p37_p0 = scmp.ge.s32.totalorder %s36_s23, 3  ;;  %p284_p1 = scmp.ne.s32.totalorder %s3863_s15, %s3859_s14 }
   0xd   : > { %p285_p2 = scmp.eq.s32.totalorder %s3324_s21, 5  ;;  %p290_p5 = scmp.ne.s32.totalorder %s3859_s14, %s3855_s13 }
   0xe   : > { %s7091_s23 = smov (%p37_p0, %s36_s23), 0  ;;  %s7093_s24 = smov (!%p37_p0, %s39_s24), %s3879_s19 }
   0xf   : > { %6662 = sst [smem:[#allocation11_spill]] %s7091_s23  ;;  %s270_s25 = ssub.s32 %s3875_s18, %s7091_s23 }
  0x10   : > { %p3996_p3 = por %p285_p2, %p284_p1  ;;  %p41_p4 = scmp.ge.s32.totalorder %s7093_s24, 2 }
  0x11   : > { %p291_p6 = scmp.eq.s32.totalorder %s3325_s22, 5  ;;  %p3334_p7 = scmp.ge.s32.totalorder %s3883_s20, 1 }
  0x12   : > { %s7095_s24 = smov (%p41_p4, %s7093_s24), 0  ;;  %p418_p9 = scmp.lt.s32.totalorder %s3883_s20, 7 }
  0x13   : > { %6664 = sst [smem:[#allocation12_spill]] %s7095_s24  ;;  %p4005_p8 = por %p291_p6, %p290_p5 }
  0x14   : > { %s269_s28 = ssub.s32 %s3879_s19, %s7095_s24  ;;  %s274_s29 = sadd.s32 1, %s3863_s15 }
  0x15   : > { %s271_s30 = sor.u32 %s270_s25, %s269_s28  ;;  %p419_p10 = pnand %p3334_p7, %p418_p9 }
  0x16   : > { %p272_p11 = scmp.eq.s32.totalorder %s271_s30, 0 }
  0x17   : > { %422 = sbr.rel (%p419_p10) target bundleno = 979 (0x3d3), region = 56 }
  0x18   : > { %s4014_s11 = scalar_select %p272_p11, %s3863_s15, %s274_s29  }
  0x1e   : > { %s4017_s12 = sshll.u32 %s3867_s16, 4  ;;  %p500_p12 = scmp.lt.s32.totalorder %s3871_s17, 1  ;;  %v4117_v18 = vld [vmem:[%s6543_s5 + $0x4] ss:$8 sps:$4 sm:$0xff]   ;;  %v4122_v19 = vld [vmem:[%s6543_s5] ss:$8 sps:$4 sm:$0xff]  }
  0x1f   : > { %p502_p13 = scmp.lt.s32.totalorder %s4017_s12, 37  ;;  %s3339_s21 = sshll.u32 %s3867_s16, 3  ;;  %v4127_v20 = vld [vmem:[%s6543_s5 + $0x14] ss:$8 sps:$4 sm:$0xff]   ;;  %907 = vmatprep.subr.bf16.mxu0 %v4117_v18  ;;  %1397 = vmatprep.subr.bf16.mxu1 %v4117_v18  ;;  %v4188_v59 = vld [vmem:[%s6543_s5 + $0x10] ss:$8 sps:$4 sm:$0xff]  }
  0x20   : > { %s501_s22 = scalar_select %p500_p12, %s3871_s17, 1  ;;  %908 = vmatpush1.bf16.msra.mxu0 %v4122_v19  ;;  %1398 = vmatpush1.bf16.msra.mxu1 %v4122_v19 }
  0x21   : > { %s503_s24 = scalar_select %p502_p13, %s4017_s12, 37  ;;  %909 = vmatprep.subr.bf16.mxu0 %v4127_v20  ;;  %1399 = vmatprep.subr.bf16.mxu1 %v4127_v20 }
  0x22   : > { %s4024_s25 = smul.u32 38, %s501_s22  ;;  %s3340_s28 = sadd.s32 4294967295, %s3339_s21 }
  0x23   : > { %p515_p0 = scmp.gt.s32.totalorder %s3340_s28, 0  ;;  %s6666_s0 = sld [smem:[#allocation109_spill]] }
  0x24   : > { %s505_s29 = sadd.s32 %s4024_s25, %s503_s24  ;;  %910 = vmatpush1.bf16.msra.mxu0 %v4188_v59  ;;  %1400 = vmatpush1.bf16.msra.mxu1 %v4188_v59  ;;  %p1454_p5 = scmp.gt.s32.totalorder %s3867_s16, 0 }
  0x25   : > { %s3338_s30 = sshll.u32 %s505_s29, 3  ;;  %s7097_s28 = smov (!%p515_p0, %s3340_s28), 0 }
  0x26   : > { %s3341_s19 = sshll.u32 %s7097_s28, 1 }
  0x27   : > { %p520_p1 = scmp.lt.s32.totalorder %s3341_s19, 37 }
  0x28   : > { %s4643_s28 = scalar_select %p1454_p5, 1, 0 }
  0x29   : > { %s4032_s18 = scalar_lea.vmem %s6666_s0, %s3338_s30  ;;  %s7099_s19 = smov (!%p520_p1, %s3341_s19), 37 }
  0x2a   : > { %v4035_v0 = vld [vmem:[%s4032_s18] sm:$0xff]  ;;  %v4038_v1 = vld [vmem:[%s4032_s18 + $0x10] sm:$0xff]  ;;  %v4043_v2 = vld [vmem:[%s4032_s18 + $0x8] sm:$0xff]  ;;  %s523_s23 = sadd.s32 %s4024_s25, %s7099_s19  ;;  %s3450_s30 = sadd.s32 8, %s3339_s21 }
  0x2b   : > { %568 = vadd.xlane.f32.xlu0 %v4035_v0  ;;  %572 = vadd.xlane.f32.xlu1 %v4038_v1  ;;  %v4046_v3 = vld [vmem:[%s4032_s18 + $0x18] sm:$0xff]  ;;  %v4051_v4 = vld [vmem:[%s4032_s18 + $0x20] sm:$0xff]  ;;  %v4054_v5 = vld [vmem:[%s4032_s18 + $0x28] sm:$0xff]  ;;  %s3342_s24 = sshll.u32 %s523_s23, 3  ;;  %p533_p2 = scmp.lt.s32.totalorder %s3450_s30, 18 }
  0x2c   : > { %v4060_v6 = vld [vmem:[%s4032_s18 + $0x30] sm:$0xff]  ;;  %v4063_v7 = vld [vmem:[%s4032_s18 + $0x38] sm:$0xff]  ;;  %s525_s29 = scalar_lea.vmem %s6539_s1, %s3342_s24  ;;  %v4079_v10 = vld [vmem:[%s4032_s18 + $0x40] sm:$0xff]  ;;  %s6315_s24 = sand.u32 1, %s3859_s14  }
  0x2d   : > { %v4070_v8 = vld [vmem:[%s525_s29] sm:$0xff]  ;;  %v4072_v9 = vld [vmem:[%s525_s29 + $0x8] sm:$0xff]  ;;  %s7101_s30 = smov (!%p533_p2, %s3450_s30), 18  ;;  %v4087_v12 = vld [vmem:[%s4032_s18 + $0x50] sm:$0xff]  ;;  %s3335_s22 = sshll.u32 %s6315_s24, 6 }
  0x2e   : > { %v4082_v11 = vld [vmem:[%s4032_s18 + $0x48] sm:$0xff]  ;;  %s3344_s19 = sshll.u32 %s7101_s30, 1  ;;  %v4090_v13 = vld [vmem:[%s4032_s18 + $0x58] sm:$0xff]  ;;  %v4099_v14 = vld [vmem:[%s4032_s18 + $0x60] sm:$0xff] }
  0x2f   : > { %570 = vadd.xlane.f32.xlu0 %v4043_v2  ;;  %574 = vadd.xlane.f32.xlu1 %v4046_v3  ;;  %p538_p4 = scmp.lt.s32.totalorder %s3344_s19, 37  ;;  %v4102_v15 = vld [vmem:[%s4032_s18 + $0x68] sm:$0xff]  ;;  %v4107_v16 = vld [vmem:[%s4032_s18 + $0x70] sm:$0xff]  ;;  %v4110_v17 = vld [vmem:[%s4032_s18 + $0x78] sm:$0xff] }
  0x31   : > { %s7103_s19 = smov (!%p538_p4, %s3344_s19), 37 }
  0x32   : > { %s541_s21 = sadd.s32 %s4024_s25, %s7103_s19  ;;  %s3346_s25 = sshll.u32 %s3867_s16, 7 }
  0x33   : > { %576 = vadd.xlane.f32.xlu0 %v4051_v4  ;;  %578 = vadd.xlane.f32.xlu1 %v4054_v5  ;;  %s3345_s18 = sshll.u32 %s541_s21, 3  ;;  %s5638_s30 = sadd.s32 128, %s3346_s25 }
  0x34   : > { %s543_s21 = scalar_lea.vmem %s6540_s2, %s3345_s18  ;;  %s487_s18 = scalar_lea.vmem [#allocation3], %s3335_s22 }
  0x35   : > { %v4161_v42 = vld [vmem:[%s543_s21] sm:$0xff]  ;;  %v4172_v50 = vld [vmem:[%s543_s21 + $0x8] sm:$0xff] }
  0x37   : > { %580 = vadd.xlane.f32.xlu0 %v4060_v6  ;;  %582 = vadd.xlane.f32.xlu1 %v4063_v7 }
  0x3b   : > { %1248 = vadd.xlane.f32.xlu0 %v4070_v8  ;;  %1250 = vadd.xlane.f32.xlu1 %v4072_v9 }
  0x3f   : > { %584 = vadd.xlane.f32.xlu0 %v4079_v10  ;;  %586 = vadd.xlane.f32.xlu1 %v4082_v11 }
  0x43   : > { %588 = vadd.xlane.f32.xlu0 %v4087_v12  ;;  %590 = vadd.xlane.f32.xlu1 %v4090_v13 }
  0x47   : > { %592 = vadd.xlane.f32.xlu0 %v4099_v14  ;;  %594 = vadd.xlane.f32.xlu1 %v4102_v15 }
  0x4b   : > { %596 = vadd.xlane.f32.xlu0 %v4107_v16  ;;  %598 = vadd.xlane.f32.xlu1 %v4110_v17 }
  0xb8   : > { %v569_v21 = vpop.xlane.xlu0 %568  ;;  %v573_v22 = vpop.xlane.xlu1 %572 }
  0xb9   : > { %v601_v23 = vmul.f32 0.0078125, %v569_v21  ;;  %v603_v24 = vmul.f32 0.0078125, %v573_v22 }
  0xbb   : > { %v4136_v25 = vsub.f32 %v4035_v0, %v601_v23  ;;  %v4139_v26 = vsub.f32 %v4038_v1, %v603_v24  ;;  %v4198_v0 = vld [vmem:[%s6543_s5 + $0x24] ss:$8 sps:$4 sm:$0xff]   ;;  %v4229_v24 = vld [vmem:[%s6543_s5 + $0x34] ss:$8 sps:$4 sm:$0xff]  }
  0xbc   : > { %v571_v27 = vpop.xlane.xlu0 %570  ;;  %v575_v28 = vpop.xlane.xlu1 %574  ;;  %911 = vmatprep.subr.bf16.mxu0 %v4198_v0  ;;  %1401 = vmatprep.subr.bf16.mxu1 %v4198_v0 }
  0xbd   : > { %v602_v29 = vmul.f32 0.0078125, %v571_v27  ;;  %v633_v30 = vmul.f32 %v4136_v25, %v4136_v25  ;;  %v604_v31 = vmul.f32 0.0078125, %v575_v28  ;;  %v635_v34 = vmul.f32 %v4139_v26, %v4139_v26 }
  0xbf   : > { %v4144_v32 = vsub.f32 %v4043_v2, %v602_v29  ;;  %649 = vadd.xlane.f32.xlu0 %v633_v30  ;;  %v4147_v33 = vsub.f32 %v4046_v3, %v604_v31  ;;  %v4234_v29 = vld [vmem:[%s6543_s5 + $0x30] ss:$8 sps:$4 sm:$0xff]  }
  0xc0   : > { %v577_v35 = vpop.xlane.xlu0 %576  ;;  %v579_v36 = vpop.xlane.xlu1 %578 }
  0xc1   : > { %v634_v37 = vmul.f32 %v4144_v32, %v4144_v32  ;;  %v605_v38 = vmul.f32 0.0078125, %v577_v35  ;;  %v606_v39 = vmul.f32 0.0078125, %v579_v36  ;;  %v636_v41 = vmul.f32 %v4147_v33, %v4147_v33 }
  0xc3   : > { %653 = vadd.xlane.f32.xlu0 %v635_v34  ;;  %651 = vadd.xlane.f32.xlu1 %v634_v37  ;;  %v4157_v40 = vsub.f32 %v4051_v4, %v605_v38  ;;  %v4164_v46 = vsub.f32 %v4054_v5, %v606_v39  ;;  %v4258_v38 = vld [vmem:[%s6543_s5 + $0x40] ss:$8 sps:$4 sm:$0xff]  }
  0xc4   : > { %v581_v43 = vpop.xlane.xlu0 %580  ;;  %v583_v44 = vpop.xlane.xlu1 %582 }
  0xc5   : > { %v607_v45 = vmul.f32 0.0078125, %v581_v43  ;;  %v637_v48 = vmul.f32 %v4157_v40, %v4157_v40  ;;  %v608_v49 = vmul.f32 0.0078125, %v583_v44  ;;  %v638_v54 = vmul.f32 %v4164_v46, %v4164_v46 }
  0xc7   : > { %1464 = vadd.xlane.f32.xlu0 %v4161_v42  ;;  %655 = vadd.xlane.f32.xlu1 %v636_v41  ;;  %v4168_v47 = vsub.f32 %v4060_v6, %v607_v45  ;;  %v4178_v56 = vsub.f32 %v4063_v7, %v608_v49  ;;  %v4211_v7 = vld [vmem:[%s6543_s5 + $0x20] ss:$8 sps:$4 sm:$0xff]   ;;  %v4282_v49 = vld [vmem:[%s6543_s5 + $0x50] ss:$8 sps:$4 sm:$0xff]  }
  0xc8   : > { %v1249_v51 = vpop.xlane.xlu0 %1248  ;;  %v1251_v52 = vpop.xlane.xlu1 %1250  ;;  %912 = vmatpush1.bf16.msra.mxu0 %v4211_v7  ;;  %1402 = vmatpush1.bf16.msra.mxu1 %v4211_v7 }
  0xc9   : > { %v1252_v53 = vmul.f32 0.0078125, %v1249_v51  ;;  %v1253_v55 = vmul.f32 0.0078125, %v1251_v52  ;;  %v639_v58 = vmul.f32 %v4168_v47, %v4168_v47  ;;  %v640_v2 = vmul.f32 %v4178_v56, %v4178_v56  ;;  %913 = vmatprep.subr.bf16.mxu0 %v4229_v24  ;;  %1403 = vmatprep.subr.bf16.mxu1 %v4229_v24  ;;  %v4298_v52 = vld [vmem:[%s6543_s5 + $0x64] ss:$8 sps:$4 sm:$0xff]  }
  0xcb   : > { %1466 = vadd.xlane.f32.xlu1 %v4172_v50  ;;  %657 = vadd.xlane.f32.xlu0 %v637_v48  ;;  %v4181_v57 = vsub.f32 %v4070_v8, %v1252_v53  ;;  %v4193_v63 = vsub.f32 %v4072_v9, %v1253_v55  ;;  %v4277_v48 = vld [vmem:[%s6543_s5 + $0x54] ss:$8 sps:$4 sm:$0xff]   ;;  %v4303_v53 = vld [vmem:[%s6543_s5 + $0x60] ss:$8 sps:$4 sm:$0xff]   ;;  %v4319_v55 = vld [vmem:[%s6543_s5 + $0x70] ss:$8 sps:$4 sm:$0xff]  }
  0xcc   : > { %v585_v60 = vpop.xlane.xlu0 %584  ;;  %v587_v61 = vpop.xlane.xlu1 %586  ;;  %914 = vmatpush1.bf16.msra.mxu0 %v4234_v29  ;;  %1404 = vmatpush1.bf16.msra.mxu1 %v4234_v29 }
  0xcd   : > { %v609_v62 = vmul.f32 0.0078125, %v585_v60  ;;  %v1256_v3 = vmul.f32 %v4181_v57, %v4181_v57  ;;  %v610_v4 = vmul.f32 0.0078125, %v587_v61  ;;  %v1257_v9 = vmul.f32 %v4193_v63, %v4193_v63 }
  0xcf   : > { %659 = vadd.xlane.f32.xlu1 %v638_v54  ;;  %661 = vadd.xlane.f32.xlu0 %v639_v58  ;;  %v4201_v1 = vsub.f32 %v4079_v10, %v609_v62  ;;  %v4219_v21 = vsub.f32 %v4082_v11, %v610_v4  ;;  %v4314_v54 = vld [vmem:[%s6543_s5 + $0x74] ss:$8 sps:$4 sm:$0xff]   ;;  %v3885_v58 = vmov 0  }
  0xd0   : > { %v589_v5 = vpop.xlane.xlu0 %588  ;;  %v591_v6 = vpop.xlane.xlu1 %590  ;;  %939 = vmatprep.mubr.bf16.mxu0 %v3885_v58  ;;  %1429 = vmatprep.mubr.bf16.mxu1 %v3885_v58 }
  0xd1   : > { %v611_v8 = vmul.f32 0.0078125, %v589_v5  ;;  %v612_v10 = vmul.f32 0.0078125, %v591_v6  ;;  %v641_v23 = vmul.f32 %v4201_v1, %v4201_v1  ;;  %v642_v31 = vmul.f32 %v4219_v21, %v4219_v21 }
  0xd3   : > { %663 = vadd.xlane.f32.xlu1 %v640_v2  ;;  %1258 = vadd.xlane.f32.xlu0 %v1256_v3  ;;  %v4222_v22 = vsub.f32 %v4087_v12, %v611_v8  ;;  %v4239_v12 = vsub.f32 %v4090_v13, %v612_v10  ;;  %v4253_v13 = vld [vmem:[%s6543_s5 + $0x44] ss:$8 sps:$4 sm:$0xff]  }
  0xd4   : > { %v593_v27 = vpop.xlane.xlu0 %592  ;;  %v595_v28 = vpop.xlane.xlu1 %594  ;;  %915 = vmatprep.subr.bf16.mxu0 %v4253_v13  ;;  %1405 = vmatprep.subr.bf16.mxu1 %v4253_v13 }
  0xd5   : > { %v613_v11 = vmul.f32 0.0078125, %v593_v27  ;;  %v643_v34 = vmul.f32 %v4222_v22, %v4222_v22  ;;  %v614_v35 = vmul.f32 0.0078125, %v595_v28  ;;  %v644_v39 = vmul.f32 %v4239_v12, %v4239_v12  ;;  %916 = vmatpush1.bf16.msra.mxu0 %v4258_v38  ;;  %1406 = vmatpush1.bf16.msra.mxu1 %v4258_v38 }
  0xd6   : > { %917 = vmatprep.subr.bf16.mxu0 %v4277_v48  ;;  %1407 = vmatprep.subr.bf16.mxu1 %v4277_v48 }
  0xd7   : > { %1260 = vadd.xlane.f32.xlu1 %v1257_v9  ;;  %665 = vadd.xlane.f32.xlu0 %v641_v23  ;;  %v4244_v30 = vsub.f32 %v4099_v14, %v613_v11  ;;  %v4267_v41 = vsub.f32 %v4102_v15, %v614_v35 }
  0xd8   : > { %v597_v36 = vpop.xlane.xlu0 %596  ;;  %v599_v37 = vpop.xlane.xlu1 %598 }
  0xd9   : > { %v615_v14 = vmul.f32 0.0078125, %v597_v36  ;;  %v645_v44 = vmul.f32 %v4244_v30, %v4244_v30  ;;  %v616_v45 = vmul.f32 0.0078125, %v599_v37  ;;  %918 = vmatpush1.bf16.msra.mxu0 %v4282_v49  ;;  %1408 = vmatpush1.bf16.msra.mxu1 %v4282_v49 }
  0xda   : > { %919 = vmatprep.subr.bf16.mxu0 %v4298_v52  ;;  %1409 = vmatprep.subr.bf16.mxu1 %v4298_v52 }
  0xdb   : > { %667 = vadd.xlane.f32.xlu1 %v642_v31  ;;  %669 = vadd.xlane.f32.xlu0 %v643_v34  ;;  %v4270_v43 = vsub.f32 %v4107_v16, %v615_v14  ;;  %v4289_v15 = vsub.f32 %v4110_v17, %v616_v45  ;;  %v646_v16 = vmul.f32 %v4267_v41, %v4267_v41 }
  0xdd   : > { %v647_v51 = vmul.f32 %v4270_v43, %v4270_v43  ;;  %920 = vmatpush1.bf16.msra.mxu0 %v4303_v53  ;;  %1410 = vmatpush1.bf16.msra.mxu1 %v4303_v53  ;;  %v648_v17 = vmul.f32 %v4289_v15, %v4289_v15 }
  0xde   : > { %921 = vmatprep.subr.bf16.mxu0 %v4314_v54  ;;  %1411 = vmatprep.subr.bf16.mxu1 %v4314_v54 }
  0xdf   : > { %671 = vadd.xlane.f32.xlu1 %v644_v39  ;;  %673 = vadd.xlane.f32.xlu0 %v645_v44 }
  0xe1   : > { %922 = vmatpush1.bf16.msra.mxu0 %v4319_v55  ;;  %1412 = vmatpush1.bf16.msra.mxu1 %v4319_v55 }
  0xe2   : > { %1613 = vmatprep.subr.bf16.mxu1 %v4117_v18 }
  0xe3   : > { %675 = vadd.xlane.f32.xlu1 %v646_v16  ;;  %677 = vadd.xlane.f32.xlu0 %v647_v51 }
  0xe7   : > { %679 = vadd.xlane.f32.xlu1 %v648_v17  ;;  %v4342_v17 = vld [vmem:[%s6541_s3] ss:$0 sm:$0xff] }
 0x14c   : > { %v650_v60 = vpop.xlane.xlu0 %649 }
 0x14d   : > { %v681_v61 = vmul.f32 0.0078125, %v650_v60 }
 0x14f   : > { %v697_v62 = vadd.f32 1e-05, %v681_v61 }
 0x150   : > { %v652_v2 = vpop.xlane.xlu1 %651  ;;  %v654_v3 = vpop.xlane.xlu0 %653 }
 0x151   : > { %3620 = vrsqrt.f32 %v697_v62  ;;  %v682_v4 = vmul.f32 0.0078125, %v652_v2  ;;  %v683_v5 = vmul.f32 0.0078125, %v654_v3 }
 0x153   : > { %v698_v6 = vadd.f32 1e-05, %v682_v4  ;;  %v699_v8 = vadd.f32 1e-05, %v683_v5 }
 0x154   : > { %v656_v9 = vpop.xlane.xlu1 %655  ;;  %v1465_v10 = vpop.xlane.xlu0 %1464 }
 0x155   : > { %3622 = vrsqrt.f32 %v698_v6  ;;  %v684_v23 = vmul.f32 0.0078125, %v656_v9  ;;  %v1468_v18 = vmul.f32 0.0078125, %v1465_v10 }
 0x156   : > { %3624 = vrsqrt.f32 %v699_v8  ;;  %v4349_v8 = vld [vmem:[%s6542_s4] ss:$0 sm:$0xff] }
 0x157   : > { %v700_v27 = vadd.f32 1e-05, %v684_v23  ;;  %v4329_v28 = vsub.f32 %v4161_v42, %v1468_v18 }
 0x158   : > { %v1467_v11 = vpop.xlane.xlu1 %1466  ;;  %v658_v31 = vpop.xlane.xlu0 %657 }
 0x159   : > { %3626 = vrsqrt.f32 %v700_v27  ;;  %v1469_v34 = vmul.f32 0.0078125, %v1467_v11  ;;  %v685_v35 = vmul.f32 0.0078125, %v658_v31  ;;  %v1472_v36 = vmul.f32 %v4329_v28, %v4329_v28 }
 0x15b   : > { %v3621_v37 = vpop.eup %3620  ;;  %v4334_v14 = vsub.f32 %v4172_v50, %v1469_v34  ;;  %v701_v39 = vadd.f32 1e-05, %v685_v35  ;;  %1474 = vadd.xlane.f32.xlu0 %v1472_v36 }
 0x15c   : > { %v660_v44 = vpop.xlane.xlu1 %659  ;;  %v662_v45 = vpop.xlane.xlu0 %661  ;;  %v729_v16 = vmul.f32 %v3621_v37, %v4136_v25 }
 0x15d   : > { %v686_v42 = vmul.f32 0.0078125, %v660_v44  ;;  %v1473_v51 = vmul.f32 %v4334_v14, %v4334_v14  ;;  %3628 = vrsqrt.f32 %v701_v39  ;;  %v687_v50 = vmul.f32 0.0078125, %v662_v45 }
 0x15e   : > { %v752_v25 = vmul.f32 %v4342_v17, %v729_v16 }
 0x15f   : > { %v3623_v60 = vpop.eup %3622  ;;  %v702_v61 = vadd.f32 1e-05, %v686_v42  ;;  %1476 = vadd.xlane.f32.xlu1 %v1473_v51  ;;  %v703_v23 = vadd.f32 1e-05, %v687_v50 }
 0x160   : > { %v664_v62 = vpop.xlane.xlu1 %663  ;;  %v1259_v2 = vpop.xlane.xlu0 %1258  ;;  %v730_v3 = vmul.f32 %v3623_v60, %v4144_v32  ;;  %v775_v32 = vadd.f32 %v4349_v8, %v752_v25 }
 0x161   : > { %v3625_v4 = vpop.eup %3624  ;;  %3630 = vrsqrt.f32 %v702_v61  ;;  %v688_v5 = vmul.f32 0.0078125, %v664_v62  ;;  %v1262_v6 = vmul.f32 0.0078125, %v1259_v2 }
 0x162   : > { %v753_v9 = vmul.f32 %v4342_v17, %v730_v3  ;;  %v731_v35 = vmul.f32 %v3625_v4, %v4139_v26 }
 0x163   : > { %v3627_v10 = vpop.eup %3626  ;;  %v704_v18 = vadd.f32 1e-05, %v688_v5  ;;  %v1264_v27 = vadd.f32 1e-05, %v1262_v6 }
 0x164   : > { %v1261_v11 = vpop.xlane.xlu1 %1260  ;;  %v666_v31 = vpop.xlane.xlu0 %665  ;;  %v776_v34 = vadd.f32 %v4349_v8, %v753_v9  ;;  %v732_v36 = vmul.f32 %v3627_v10, %v4147_v33  ;;  %v754_v51 = vmul.f32 %v4342_v17, %v731_v35 }
 0x165   : > { %3632 = vrsqrt.f32 %v704_v18  ;;  %v1263_v37 = vmul.f32 0.0078125, %v1261_v11  ;;  %v689_v16 = vmul.f32 0.0078125, %v666_v31 }
 0x166   : > { %3634 = vrsqrt.f32 %v1264_v27  ;;  %v791_v39 = vpack.c.bf16 %v776_v34, %v775_v32  ;;  %v755_v44 = vmul.f32 %v4342_v17, %v732_v36  ;;  %v777_v25 = vadd.f32 %v4349_v8, %v754_v51 }
 0x167   : > { %3636 = vrsqrt.f32 %v703_v23  ;;  %v1265_v45 = vadd.f32 1e-05, %v1263_v37  ;;  %v3629_v60 = vpop.eup %3628  ;;  %v705_v50 = vadd.f32 1e-05, %v689_v16 }
 0x168   : > { %v668_v42 = vpop.xlane.xlu1 %667  ;;  %940 = vmatmul.mubr.bf16.vlgmr.msra.gmra.mrb[0].mxu0 %v791_v39  ;;  %v778_v26 = vadd.f32 %v4349_v8, %v755_v44  ;;  %v670_v2 = vpop.xlane.xlu0 %669  ;;  %v733_v4 = vmul.f32 %v3629_v60, %v4157_v40 }
 0x169   : > { %3638 = vrsqrt.f32 %v1265_v45  ;;  %v690_v61 = vmul.f32 0.0078125, %v668_v42  ;;  %949 = vmatprep.mubr.bf16.mxu0 %v3885_v58  ;;  %v691_v18 = vmul.f32 0.0078125, %v670_v2 }
 0x16a   : > { %v792_v9 = vpack.c.bf16 %v778_v26, %v777_v25  ;;  %v756_v11 = vmul.f32 %v4342_v17, %v733_v4 }
 0x16b   : > { %v3631_v33 = vpop.eup %3630  ;;  %v706_v62 = vadd.f32 1e-05, %v690_v61  ;;  %v707_v37 = vadd.f32 1e-05, %v691_v18 }
 0x16c   : > { %v672_v3 = vpop.xlane.xlu1 %671  ;;  %v734_v5 = vmul.f32 %v3631_v33, %v4164_v46  ;;  %v674_v39 = vpop.xlane.xlu0 %673  ;;  %v779_v44 = vadd.f32 %v4349_v8, %v756_v11 }
 0x16d   : > { %3640 = vrsqrt.f32 %v706_v62  ;;  %v692_v6 = vmul.f32 0.0078125, %v672_v3 }
 0x16e   : > { %v757_v10 = vmul.f32 %v4342_v17, %v734_v5  ;;  %3642 = vrsqrt.f32 %v705_v50 }
 0x16f   : > { %v3633_v23 = vpop.eup %3632  ;;  %v708_v32 = vadd.f32 1e-05, %v692_v6 }
 0x170   : > { %v3635_v27 = vpop.eup %3634  ;;  %950 = vmatmul.mubr.bf16.gmra.mrb[4].mxu0 %v792_v9  ;;  %v676_v34 = vpop.xlane.xlu1 %675  ;;  %v780_v46 = vadd.f32 %v4349_v8, %v757_v10  ;;  %v736_v35 = vmul.f32 %v3633_v23, %v4178_v56  ;;  %v693_v56 = vmul.f32 0.0078125, %v674_v39 }
 0x171   : > { %v3637_v31 = vpop.eup %3636  ;;  %959 = vmatprep.mubr.bf16.mxu0 %v3885_v58  ;;  %v1268_v40 = vmul.f32 %v3635_v27, %v4181_v57  ;;  %3644 = vrsqrt.f32 %v708_v32  ;;  %v694_v51 = vmul.f32 0.0078125, %v676_v34  ;;  %v678_v6 = vpop.xlane.xlu0 %677 }
 0x172   : > { %v735_v42 = vmul.f32 %v3637_v31, %v4168_v47  ;;  %v793_v60 = vpack.c.bf16 %v780_v46, %v779_v44  ;;  %v759_v61 = vmul.f32 %v4342_v17, %v736_v35  ;;  %3646 = vrsqrt.f32 %v707_v37 }
 0x173   : > { %v3639_v36 = vpop.eup %3638  ;;  %v1277_v16 = vmul.f32 %v4342_v17, %v1268_v40  ;;  %v710_v2 = vadd.f32 1e-05, %v694_v51  ;;  %v709_v5 = vadd.f32 1e-05, %v693_v56 }
 0x174   : > { %v1269_v45 = vmul.f32 %v3639_v36, %v4193_v63  ;;  %v758_v63 = vmul.f32 %v4342_v17, %v735_v42  ;;  %v680_v47 = vpop.xlane.xlu1 %679  ;;  %v782_v25 = vadd.f32 %v4349_v8, %v759_v61 }
 0x175   : > { %v1286_v33 = vadd.f32 %v4349_v8, %v1277_v16  ;;  %3648 = vrsqrt.f32 %v710_v2  ;;  %v696_v23 = vmul.f32 0.0078125, %v680_v47  ;;  %v817_v47 = vlaneseq }
 0x176   : > { %v1278_v57 = vmul.f32 %v4342_v17, %v1269_v45  ;;  %v781_v9 = vadd.f32 %v4349_v8, %v758_v63  ;;  %3650 = vrsqrt.f32 %v709_v5 }
 0x177   : > { %v3641_v26 = vpop.eup %3640  ;;  %v712_v40 = vadd.f32 1e-05, %v696_v23 }
 0x178   : > { %960 = vmatmul.mubr.bf16.gmra.mrb[8].mxu0 %v793_v60  ;;  %v1287_v50 = vadd.f32 %v4349_v8, %v1278_v57  ;;  %v3643_v62 = vpop.eup %3642  ;;  %v738_v4 = vmul.f32 %v3641_v26, %v4219_v21  ;;  %v794_v18 = vpack.c.bf16 %v782_v25, %v781_v9  ;;  %v695_v21 = vmul.f32 0.0078125, %v678_v6 }
 0x179   : > { %969 = vmatprep.mubr.bf16.mxu0 %v3885_v58  ;;  %v737_v10 = vmul.f32 %v3643_v62, %v4201_v1  ;;  %3652 = vrsqrt.f32 %v712_v40  ;;  %v4464_v40 = vstv %s3346_s25 }
 0x17a   : > { %v1288_v3 = vpack.c.bf16 %v1287_v50, %v1286_v33  ;;  %v761_v27 = vmul.f32 %v4342_v17, %v738_v4  ;;  %v711_v34 = vadd.f32 1e-05, %v695_v21  ;;  %v4457_v21 = vld [vmem:[%s6545_s7 + $0x18] sm:$0x7f]  ;;  %6671 = vst [vmem:[#allocation17_spill] sm:$0xff] %v4464_v40 }
 0x17b   : > { %v3645_v11 = vpop.eup %3644  ;;  %v760_v31 = vmul.f32 %v4342_v17, %v737_v10 }
 0x17c   : > { %1430 = vmatmul.mubr.bf16.vlgmr.msra.gmra.mrb[0].mxu1 %v1288_v3  ;;  %v3647_v32 = vpop.eup %3646  ;;  %v740_v1 = vmul.f32 %v3645_v11, %v4239_v12  ;;  %3654 = vrsqrt.f32 %v711_v34  ;;  %v4431_v3 = vshrl.u32 %v817_v47, 7 }
 0x17d   : > { %1614 = vmatpush1.bf16.msra.mxu1 %v4122_v19  ;;  %1645 = vmatprep.mubr.bf16.mxu1 %v3885_v58  ;;  %v784_v19 = vadd.f32 %v4349_v8, %v761_v27  ;;  %v739_v46 = vmul.f32 %v3647_v32, %v4222_v22 }
 0x17e   : > { %1615 = vmatprep.subr.bf16.mxu1 %v4127_v20  ;;  %v783_v20 = vadd.f32 %v4349_v8, %v760_v31  ;;  %v763_v36 = vmul.f32 %v4342_v17, %v740_v1  ;;  %6667 = vst [vmem:[#allocation13_spill] sm:$0xff] %v4431_v3  ;;  %v4434_v25 = vsub.s32 1, %v4431_v3 }
 0x17f   : > { %v762_v12 = vmul.f32 %v4342_v17, %v739_v46  ;;  %v4476_v46 = vld [vmem:[%s6545_s7 + $0x8] sm:$0xff] }
 0x180   : > { %970 = vmatmul.mubr.bf16.gmra.mrb[12].mxu0 %v794_v18  ;;  %v795_v35 = vpack.c.bf16 %v784_v19, %v783_v20  ;;  %6668 = vst [vmem:[#allocation14_spill] sm:$0xff] %v4434_v25  ;;  %v4449_v18 = vsub.s32 0, %v4431_v3  ;;  %v2071_v19 = vsub.s32 7, %v4431_v3  ;;  %v1684_v20 = vld [vmem:[%s6545_s7] sm:$0xff] }
 0x181   : > { %979 = vmatprep.mubr.bf16.mxu0 %v3885_v58  ;;  %1616 = vmatpush1.bf16.msra.mxu1 %v4188_v59  ;;  %v3649_v59 = vpop.eup %3648 }
 0x182   : > { %1617 = vmatprep.subr.bf16.mxu1 %v4198_v0  ;;  %v3651_v37 = vpop.eup %3650  ;;  %v786_v0 = vadd.f32 %v4349_v8, %v763_v36  ;;  %v742_v22 = vmul.f32 %v3649_v59, %v4267_v41  ;;  %6670 = vst [vmem:[#allocation16_spill] sm:$0xff] %v4449_v18 }
 0x183   : > { %v3653_v45 = vpop.eup %3652 }
 0x184   : > { %v765_v44 = vmul.f32 %v4342_v17, %v742_v22  ;;  %v4497_v22 = vrot.slane %v4457_v21, %v4449_v18 }
 0x185   : > { %1618 = vmatpush1.bf16.msra.mxu1 %v4211_v7  ;;  %v785_v7 = vadd.f32 %v4349_v8, %v762_v12  ;;  %v4485_v12 = vrot.slane %v1684_v20, %v4449_v18 }
 0x186   : > { %1619 = vmatprep.subr.bf16.mxu1 %v4229_v24  ;;  %v741_v24 = vmul.f32 %v3651_v37, %v4244_v30  ;;  %v3655_v16 = vpop.eup %3654  ;;  %v744_v30 = vmul.f32 %v3653_v45, %v4289_v15  ;;  %v4489_v37 = vrot.slane %v4476_v46, %v4449_v18  ;;  %6674 = vst [vmem:[#allocation20_spill] sm:$0xff] %v4497_v22 }
 0x187   : > { %v796_v39 = vpack.c.bf16 %v786_v0, %v785_v7  ;;  %v743_v41 = vmul.f32 %v3655_v16, %v4270_v43  ;;  %6673 = vst [vmem:[#allocation19_spill] sm:$0xff] %v4485_v12  ;;  %v4501_v7 = vadd.s32 %v4464_v40, %v4431_v3  ;;  %v4509_v45 = vrot.slane %v1684_v20, %v2071_v19 }
 0x188   : > { %980 = vmatmul.mubr.bf16.gmra.mrb[16].mxu0 %v795_v35  ;;  %v767_v42 = vmul.f32 %v4342_v17, %v744_v30  ;;  %v4481_v35 = vld [vmem:[%s6545_s7 + $0x10] sm:$0xff]  ;;  %v4516_v16 = vrot.slane %v4476_v46, %v2071_v19 }
 0x189   : > { %989 = vmatprep.mubr.bf16.mxu0 %v3885_v58  ;;  %1620 = vmatpush1.bf16.msra.mxu1 %v4234_v29  ;;  %v764_v29 = vmul.f32 %v4342_v17, %v741_v24  ;;  %v4493_v0 = vrot.slane %v4481_v35, %v4449_v18  ;;  %6675 = vst [vmem:[#allocation21_spill] sm:$0xff] %v4501_v7  ;;  %v4504_v24 = vadd.s32 8, %v4431_v3  ;;  %6678 = vst [vmem:[#allocation24_spill] sm:$0xff] %v4509_v45 }
 0x18a   : > { %1621 = vmatprep.subr.bf16.mxu1 %v4253_v13  ;;  %v788_v13 = vadd.f32 %v4349_v8, %v765_v44  ;;  %v790_v15 = vadd.f32 %v4349_v8, %v767_v42  ;;  %v4507_v44 = vrot.slane %v1684_v20, %v4434_v25  ;;  %6679 = vst [vmem:[#allocation25_spill] sm:$0xff] %v4516_v16  ;;  %vm1166_vm0 = vcmp.lt.s32.totalorder %v4501_v7, 300 }
 0x18b   : > { %6676 = vst [vmem:[#allocation22_spill] sm:$0xff] %v4504_v24 }
 0x18c   : > { %6677 = vst [vmem:[#allocation23_spill] sm:$0xff] %v4507_v44 }
 0x18d   : > { %1622 = vmatpush1.bf16.msra.mxu1 %v4258_v38  ;;  %v787_v38 = vadd.f32 %v4349_v8, %v764_v29  ;;  %v4513_v29 = vrot.slane %v4476_v46, %v4434_v25 }
 0x18e   : > { %1623 = vmatprep.subr.bf16.mxu1 %v4277_v48 }
 0x18f   : > { %v797_v48 = vpack.c.bf16 %v788_v13, %v787_v38  ;;  %v4521_v13 = vld [vmem:[%s6544_s6] sm:$0x3]  ;;  %v4525_v38 = vrot.slane %v4481_v35, %v4434_v25 }
 0x190   : > { %990 = vmatmul.mubr.bf16.gmra.mrb[20].mxu0 %v796_v39 }
 0x191   : > { %999 = vmatprep.mubr.bf16.mxu0 %v3885_v58  ;;  %1624 = vmatpush1.bf16.msra.mxu1 %v4282_v49  ;;  %v766_v49 = vmul.f32 %v4342_v17, %v743_v41  ;;  %v4528_v41 = vsub.s32 2, %v4431_v3 }
 0x192   : > { %1625 = vmatprep.subr.bf16.mxu1 %v4298_v52 }
 0x193   : > { %v789_v52 = vadd.f32 %v4349_v8, %v766_v49 }
 0x195   : > { %1626 = vmatpush1.bf16.msra.mxu1 %v4303_v53  ;;  %v798_v51 = vpack.c.bf16 %v790_v15, %v789_v52  ;;  %v4534_v15 = vsub.s32 3, %v4431_v3  ;;  %v4537_v52 = vsub.s32 4, %v4431_v3 }
 0x196   : > { %1627 = vmatprep.subr.bf16.mxu1 %v4314_v54 }
 0x198   : > { %1000 = vmatmul.mubr.bf16.gmra.mrb[24].mxu0 %v797_v48  ;;  %v1135_v48 = vadd.s32 16, %v4431_v3 }
 0x199   : > { %1009 = vmatprep.mubr.bf16.mxu0 %v3885_v58  ;;  %1628 = vmatpush1.bf16.msra.mxu1 %v4319_v55 }
 0x1a0   : > { %1010 = vmatmul.mubr.bf16.gmra.mrb[28].mxu0 %v798_v51  ;;  %v4540_v51 = vsub.s32 5, %v4431_v3 }
 0x1a2   : > { %6680 = vst [vmem:[#allocation26_spill] sm:$0xff] %v4540_v51 }
 0x1e8   : > { %v1475_v43 = vpop.xlane.xlu0 %1474 }
 0x1e9   : > { %v1478_v53 = vmul.f32 0.0078125, %v1475_v43 }
 0x1eb   : > { %v1480_v60 = vadd.f32 1e-05, %v1478_v53 }
 0x1ec   : > { %v1477_v57 = vpop.xlane.xlu1 %1476 }
 0x1ed   : > { %3656 = vrsqrt.f32 %v1480_v60  ;;  %v1479_v61 = vmul.f32 0.0078125, %v1477_v57  ;;  %v4544_v60 = vrot.slane %v4457_v21, %v4434_v25  ;;  %v4547_v57 = vsub.s32 6, %v4431_v3 }
 0x1ef   : > { %v1481_v54 = vadd.f32 1e-05, %v1479_v61  ;;  %6681 = vst [vmem:[#allocation27_spill] sm:$0xff] %v4547_v57 }
 0x1f1   : > { %3658 = vrsqrt.f32 %v1481_v54 }
 0x1f7   : > { %v3657_v26 = vpop.eup %3656 }
 0x1f8   : > { %v1484_v56 = vmul.f32 %v3657_v26, %v4329_v28  ;;  %v815_v28 = vld [vmem:[%s6544_s6] sm:$0x3]  ;;  %v1314_v26 = vrot.slane %v4521_v13, %v4434_v25 }
 0x1f9   : > { %v4468_v34 = vrot.slane %v815_v28, %v4449_v18 }
 0x1fa   : > { %v1493_v33 = vmul.f32 %v4342_v17, %v1484_v56 }
 0x1fb   : > { %v3659_v58 = vpop.eup %3658  ;;  %6672 = vst [vmem:[#allocation18_spill] sm:$0xff] %v4468_v34 }
 0x1fc   : > { %v1485_v55 = vmul.f32 %v3659_v58, %v4334_v14  ;;  %v1502_v63 = vadd.f32 %v4349_v8, %v1493_v33  ;;  %v4440_v14 = vrot.slane %v815_v28, %v4434_v25  ;;  %v4556_v58 = vadd.s32 %v4464_v40, %v4504_v24 }
 0x1fd   : > { %v4572_v28 = vrot.slane %v1684_v20, %v4534_v15 }
 0x1fe   : > { %v1494_v50 = vmul.f32 %v4342_v17, %v1485_v55  ;;  %6669 = vst [vmem:[#allocation15_spill] sm:$0xff] %v4440_v14  ;;  %6682 = vst [vmem:[#allocation28_spill] sm:$0xff] %v4556_v58  ;;  %v4559_v55 = vrot.slane %v4481_v35, %v2071_v19  ;;  %vm1167_vm1 = vcmp.lt.s32.totalorder %v4556_v58, 300  ;;  %v4592_v19 = vrot.slane %v4476_v46, %v4534_v15 }
 0x200   : > { %v1503_v62 = vadd.f32 %v4349_v8, %v1494_v50  ;;  %6683 = vst [vmem:[#allocation29_spill] sm:$0xff] %v4559_v55  ;;  %v4562_v50 = vrot.slane %v1684_v20, %v4528_v41 }
 0x202   : > { %v1504_v2 = vpack.c.bf16 %v1503_v62, %v1502_v63  ;;  %6684 = vst [vmem:[#allocation30_spill] sm:$0xff] %v4562_v50  ;;  %v4565_v63 = vadd.s32 %v4464_v40, %v1135_v48 }
 0x204   : > { %1646 = vmatmul.mubr.bf16.vlgmr.msra.gmra.mrb[4].mxu1 %v1504_v2  ;;  %6685 = vst [vmem:[#allocation31_spill] sm:$0xff] %v4565_v63  ;;  %vm1168_vm2 = vcmp.lt.s32.totalorder %v4565_v63, 300 }
 0x23b   : > { %v4442_v17 = vpop.f32.mrb[0].mxu0 }
 0x23c   : > { %v943_v4 = vpop.f32.mrb[1].mxu0  ;;  %v942_v24 = vadd.f32 %v4442_v17, %v4468_v34 }
 0x23d   : > { %v944_v8 = vadd.f32 %v943_v4, %v4440_v14  ;;  %v4445_v5 = vpop.f32.mrb[2].mxu0  ;;  %v4575_v4 = vrot.slane %v1684_v20, %v4537_v52 }
 0x23e   : > { %v947_v6 = vpop.f32.mrb[3].mxu0 }
 0x23f   : > { %v3365_v9 = vmul.f32 -1.442695, %v944_v8  ;;  %v948_v10 = vadd.f32 %v947_v6, %v4440_v14  ;;  %v4578_v8 = vrot.slane %v1684_v20, %v4540_v51 }
 0x241   : > { %3660 = vpow2.f32 %v3365_v9  ;;  %v3366_v23 = vmul.f32 -1.442695, %v948_v10  ;;  %v4581_v9 = vrot.slane %v1684_v20, %v4547_v57  ;;  %v4585_v10 = vrot.slane %v4476_v46, %v4528_v41 }
 0x242   : > { %v1136_v20 = vadd.s32 24, %v4431_v3 }
 0x243   : > { %3662 = vpow2.f32 %v3366_v23  ;;  %v4452_v27 = vpop.f32.mrb[4].mxu0  ;;  %6686 = vst [vmem:[#allocation32_spill] sm:$0xff] %v4581_v9 }
 0x244   : > { %v953_v11 = vpop.f32.mrb[5].mxu0 }
 0x245   : > { %v954_v31 = vadd.f32 %v953_v11, %v4440_v14  ;;  %v4460_v32 = vpop.f32.mrb[6].mxu0 }
 0x246   : > { %v957_v1 = vpop.f32.mrb[7].mxu0 }
 0x247   : > { %v3367_v36 = vmul.f32 -1.442695, %v954_v31  ;;  %v958_v59 = vadd.f32 %v957_v1, %v4440_v14  ;;  %v4596_v1 = vrot.slane %v4476_v46, %v4537_v52 }
 0x249   : > { %3664 = vpow2.f32 %v3367_v36  ;;  %v3368_v39 = vmul.f32 -1.442695, %v958_v59  ;;  %6687 = vst [vmem:[#allocation33_spill] sm:$0xff] %v4596_v1 }
 0x24b   : > { %v3661_v30 = vpop.eup %3660  ;;  %3666 = vpow2.f32 %v3368_v39  ;;  %v4531_v42 = vpop.f32.mrb[8].mxu0  ;;  %v4601_v39 = vrot.slane %v4476_v46, %v4540_v51 }
 0x24c   : > { %v1068_v49 = vadd.f32 1.0, %v3661_v30  ;;  %v963_v43 = vpop.f32.mrb[9].mxu0 }
 0x24d   : > { %v3663_v53 = vpop.eup %3662  ;;  %v964_v61 = vadd.f32 %v963_v43, %v4440_v14  ;;  %v4550_v54 = vpop.f32.mrb[10].mxu0  ;;  %6688 = vst [vmem:[#allocation34_spill] sm:$0xff] %v4601_v39  ;;  %v4607_v43 = vrot.slane %v4476_v46, %v4547_v57 }
 0x24e   : > { %3668 = vrcp.f32 %v1068_v49  ;;  %v1069_v56 = vadd.f32 1.0, %v3663_v53  ;;  %v967_v33 = vpop.f32.mrb[11].mxu0  ;;  %v4611_v53 = vrot.slane %v4481_v35, %v4528_v41 }
 0x24f   : > { %v3369_v62 = vmul.f32 -1.442695, %v964_v61  ;;  %v968_v2 = vadd.f32 %v967_v33, %v4440_v14  ;;  %v4568_v47 = vpop.f32.mrb[0].mxu1  ;;  %6689 = vst [vmem:[#allocation35_spill] sm:$0xff] %v4607_v43  ;;  %v4615_v61 = vrot.slane %v4481_v35, %v4534_v15 }
 0x250   : > { %3670 = vrcp.f32 %v1069_v56  ;;  %v1433_v6 = vpop.f32.mrb[1].mxu1  ;;  %6690 = vst [vmem:[#allocation36_spill] sm:$0xff] %v4611_v53 }
 0x251   : > { %v3370_v23 = vmul.f32 -1.442695, %v968_v2  ;;  %v1434_v11 = vadd.f32 %v1433_v6, %v1314_v26  ;;  %v4587_v31 = vpop.f32.mrb[2].mxu1  ;;  %3672 = vpow2.f32 %v3369_v62  ;;  %6691 = vst [vmem:[#allocation37_spill] sm:$0xff] %v4615_v61 }
 0x252   : > { %v1437_v36 = vpop.f32.mrb[3].mxu1 }
 0x253   : > { %v3665_v59 = vpop.eup %3664  ;;  %3674 = vpow2.f32 %v3370_v23  ;;  %v3399_v30 = vmul.f32 -1.442695, %v1434_v11  ;;  %v1438_v48 = vadd.f32 %v1437_v36, %v1314_v26  ;;  %v4603_v49 = vpop.f32.mrb[12].mxu0  ;;  %v4620_v26 = vrot.slane %v4481_v35, %v4537_v52 }
 0x254   : > { %v1070_v56 = vadd.f32 1.0, %v3665_v59  ;;  %v973_v33 = vpop.f32.mrb[13].mxu0  ;;  %v4627_v23 = vrot.slane %v4481_v35, %v4540_v51  ;;  %v4630_v36 = vadd.s32 %v4464_v40, %v1136_v20  ;;  %v1139_v20 = vadd.s32 48, %v4431_v3 }
 0x255   : > { %v3667_v62 = vpop.eup %3666  ;;  %6692 = vst [vmem:[#allocation38_spill] sm:$0xff] %v4620_v26  ;;  %3676 = vpow2.f32 %v3399_v30  ;;  %v3400_v2 = vmul.f32 -1.442695, %v1438_v48  ;;  %v974_v46 = vadd.f32 %v973_v33, %v4440_v14  ;;  %v4623_v6 = vpop.f32.mrb[14].mxu0  ;;  %v4636_v30 = vrot.slane %v4481_v35, %v4547_v57 }
 0x256   : > { %6693 = vst [vmem:[#allocation39_spill] sm:$0xff] %v4627_v23  ;;  %3678 = vrcp.f32 %v1070_v56  ;;  %v1071_v11 = vadd.f32 1.0, %v3667_v62  ;;  %6694 = vst [vmem:[#allocation40_spill] sm:$0xff] %v4630_v36  ;;  %v977_v59 = vpop.f32.mrb[15].mxu0  ;;  %v1137_v56 = vadd.s32 32, %v4431_v3  ;;  %v1138_v62 = vadd.s32 40, %v4431_v3 }
 0x257   : > { %6695 = vst [vmem:[#allocation41_spill] sm:$0xff] %v4636_v30  ;;  %3680 = vpow2.f32 %v3400_v2  ;;  %v3371_v48 = vmul.f32 -1.442695, %v974_v46  ;;  %v946_v35 = vadd.f32 %v4445_v5, %v4468_v34  ;;  %v4650_v2 = vrot.slane %v4457_v21, %v4528_v41 }
 0x258   : > { %v3669_v33 = vpop.eup %3668  ;;  %3682 = vrcp.f32 %v1071_v11  ;;  %v1140_v46 = vadd.s32 56, %v4431_v3  ;;  %v4655_v57 = vrot.slane %v4457_v21, %v4534_v15  ;;  %v4659_v51 = vrot.slane %v4457_v21, %v4537_v52 }
 0x259   : > { %v1116_v17 = vmul.f32 %v3669_v33, %v942_v24  ;;  %vm1169_vm3 = vcmp.lt.s32.totalorder %v4630_v36, 300  ;;  %v1310_v5 = vrot.slane %v4521_v13, %v4449_v18  ;;  %v978_v24 = vadd.f32 %v977_v59, %v4440_v14 }
 0x25a   : > { %v3671_v11 = vpop.eup %3670  ;;  %6696 = vst [vmem:[#allocation42_spill] sm:$0xff] %v4655_v57  ;;  %6697 = vst [vmem:[#allocation43_spill] sm:$0xff] %v4659_v51  ;;  %3684 = vpow2.f32 %v3371_v48  ;;  %v1141_v15 = vadd.s32 64, %v4431_v3  ;;  %v4669_v21 = vadd.s32 %v4464_v40, %v1137_v56  ;;  %v4672_v52 = vadd.s32 %v4464_v40, %v1138_v62 }
 0x25b   : > { %v1214_v41 = vsel %vm1166_vm0, %v1116_v17, 0.0  ;;  %v1117_v33 = vmul.f32 %v3671_v11, %v946_v35  ;;  %v981_v25 = vpop.f32.mrb[16].mxu0  ;;  %v3673_v57 = vpop.eup %3672  ;;  %v4676_v13 = vadd.s32 %v4464_v40, %v1139_v20  ;;  %v952_v17 = vadd.f32 %v4452_v27, %v4468_v34 }
 0x25c   : > { %1230 = vst [vmem:[#allocation2 + $0x10] sm:$0xff] %v1214_v41  ;;  %6698 = vst [vmem:[#allocation44_spill] sm:$0xff] %v4669_v21  ;;  %v983_v59 = vpop.f32.mrb[17].mxu0  ;;  %v4683_v35 = vadd.s32 %v4464_v40, %v1140_v46  ;;  %v1142_v11 = vadd.s32 72, %v4431_v3  ;;  %v956_v62 = vadd.f32 %v4460_v32, %v4468_v34  ;;  %v4690_v20 = vadd.f32 %v4531_v42, %v4468_v34 }
 0x25d   : > { %6699 = vst [vmem:[#allocation45_spill] sm:$0xff] %v4672_v52  ;;  %6700 = vst [vmem:[#allocation46_spill] sm:$0xff] %v4676_v13  ;;  %v3675_v7 = vpop.eup %3674  ;;  %v1215_v48 = vsel %vm1167_vm1, %v1117_v33, 0.0  ;;  %v985_v56 = vpop.f32.mrb[18].mxu0  ;;  %v3372_v51 = vmul.f32 -1.442695, %v978_v24  ;;  %v984_v33 = vadd.f32 %v983_v59, %v4440_v14  ;;  %v4695_v46 = vadd.f32 %v4550_v54, %v4468_v34 }
 0x25e   : > { %6701 = vst [vmem:[#allocation47_spill] sm:$0xff] %v4683_v35  ;;  %1231 = vst [vmem:[#allocation2 + $0x18] sm:$0xff] %v1215_v48  ;;  %v987_v58 = vpop.f32.mrb[19].mxu0  ;;  %v1072_v27 = vadd.f32 1.0, %v3673_v57  ;;  %v4698_v35 = vadd.f32 %v4568_v47, %v1310_v5  ;;  %v4701_v13 = vadd.s32 %v4464_v40, %v1141_v15  ;;  %v1073_v3 = vadd.f32 1.0, %v3675_v7 }
 0x25f   : > { %v3677_v18 = vpop.eup %3676  ;;  %6702 = vst [vmem:[#allocation48_spill] sm:$0xff] %v4695_v46  ;;  %v4704_v42 = vadd.f32 %v4587_v31, %v1310_v5  ;;  %v4708_v24 = vadd.f32 %v4603_v49, %v4468_v34  ;;  %v988_v57 = vadd.f32 %v987_v58, %v4440_v14  ;;  %v4713_v47 = vadd.f32 %v4623_v6, %v4468_v34 }
 0x260   : > { %6703 = vst [vmem:[#allocation49_spill] sm:$0xff] %v4701_v13  ;;  %v3679_v32 = vpop.eup %3678  ;;  %v1446_v46 = vadd.f32 1.0, %v3677_v18  ;;  %v4716_v15 = vadd.s32 %v4464_v40, %v1142_v11  ;;  %v4719_v31 = vmul.f32 %v4509_v45, %v1214_v41  ;;  %v4722_v5 = vmul.f32 %v4516_v16, %v1214_v41 }
 0x261   : > { %6704 = vst [vmem:[#allocation50_spill] sm:$0xff] %v4708_v24  ;;  %v3681_v59 = vpop.eup %3680  ;;  %v1118_v54 = vmul.f32 %v3679_v32, %v952_v17  ;;  %6705 = vst [vmem:[#allocation51_spill] sm:$0xff] %v4713_v47  ;;  %3686 = vpow2.f32 %v3372_v51  ;;  %v3373_v49 = vmul.f32 -1.442695, %v984_v33  ;;  %v4727_v32 = vmul.f32 %v4509_v45, %v1215_v48 }
 0x262   : > { %6706 = vst [vmem:[#allocation52_spill] sm:$0xff] %v4716_v15  ;;  %v3683_v7 = vpop.eup %3682  ;;  %6707 = vst [vmem:[#allocation53_spill] sm:$0xff] %v4719_v31  ;;  %3688 = vrcp.f32 %v1072_v27  ;;  %v1447_v17 = vadd.f32 1.0, %v3681_v59  ;;  %v4730_v11 = vadd.f32 %v981_v25, %v4468_v34  ;;  %v3374_v31 = vmul.f32 -1.442695, %v988_v57 }
 0x263   : > { %6708 = vst [vmem:[#allocation54_spill] sm:$0xff] %v4722_v5  ;;  %v1216_v58 = vsel %vm1168_vm2, %v1118_v54, 0.0  ;;  %v1119_v18 = vmul.f32 %v3683_v7, %v956_v62  ;;  %v991_v6 = vpop.f32.mrb[20].mxu0  ;;  %3690 = vrcp.f32 %v1073_v3  ;;  %v4735_v62 = vmul.f32 %v4516_v16, %v1215_v48 }
 0x264   : > { %1232 = vst [vmem:[#allocation2 + $0x20] sm:$0xff] %v1216_v58  ;;  %6709 = vst [vmem:[#allocation55_spill] sm:$0xff] %v4730_v11  ;;  %v4732_v41 = vpop.f32.mrb[21].mxu0  ;;  %v3685_v51 = vpop.eup %3684  ;;  %v4738_v27 = vmul.f32 %v4559_v55, %v1215_v48  ;;  %3692 = vrcp.f32 %v1446_v46  ;;  %v4748_v7 = vadd.f32 %v985_v56, %v4468_v34  ;;  %v4756_v46 = vmul.f32 %v4516_v16, %v1216_v58 }
 0x265   : > { %6710 = vst [vmem:[#allocation56_spill] sm:$0xff] %v4732_v41  ;;  %v1691_v33 = vld [vmem:[#allocation2 + $0x11] sm:$0xff]  ;;  %6711 = vst [vmem:[#allocation57_spill] sm:$0xff] %v4735_v62  ;;  %v4742_v59 = vsel %vm1169_vm3, %v1119_v18, 0.0  ;;  %3694 = vpow2.f32 %v3373_v49  ;;  %v4750_v62 = vpop.f32.mrb[22].mxu0  ;;  %v4753_v18 = vmul.f32 %v4509_v45, %v1216_v58  ;;  %v4759_v36 = vmul.f32 %v4559_v55, %v1216_v58 }
 0x266   : > { %v1743_v5 = vld [vmem:[#allocation2 + $0x12] sm:$0xff]  ;;  %6712 = vst [vmem:[#allocation58_spill] sm:$0xff] %v4738_v27  ;;  %v1711_v3 = vmul.f32 %v4485_v12, %v1691_v33  ;;  %1233 = vst [vmem:[#allocation2 + $0x28] sm:$0xff] %v4742_v59  ;;  %3696 = vrcp.f32 %v1447_v17  ;;  %v4761_v11 = vpop.f32.mrb[23].mxu0  ;;  %v4769_v15 = vmul.f32 %v4489_v37, %v1691_v33  ;;  %v4772_v13 = vadd.f32 %v991_v6, %v4468_v34 }
 0x267   : > { %v1795_v63 = vld [vmem:[#allocation2 + $0x13] sm:$0xff]  ;;  %v1763_v25 = vmul.f32 %v4507_v44, %v1743_v5  ;;  %6713 = vst [vmem:[#allocation59_spill] sm:$0xff] %v4748_v7  ;;  %6714 = vst [vmem:[#allocation60_spill] sm:$0xff] %v4750_v62  ;;  %v4764_v7 = vadd.f32 1.0, %v3685_v51  ;;  %3698 = vpow2.f32 %v3374_v31  ;;  %v4811_v62 = vmul.f32 %v4525_v38, %v1743_v5 }
 0x268   : > { %v1847_v57 = vld [vmem:[#allocation2 + $0x14] sm:$0xff]  ;;  %6715 = vst [vmem:[#allocation61_spill] sm:$0xff] %v4756_v46  ;;  %6716 = vst [vmem:[#allocation62_spill] sm:$0xff] %v4759_v36  ;;  %v1815_v56 = vmul.f32 %v4562_v50, %v1795_v63  ;;  %v4780_v31 = vmul.f32 %v4585_v10, %v1795_v63  ;;  %vm1170_vm4 = vcmp.lt.s32.totalorder %v4669_v21, 300  ;;  %vm1171_vm5 = vcmp.lt.s32.totalorder %v4672_v52, 300 }
 0x269   : > { %v1899_v54 = vld [vmem:[#allocation2 + $0x15] sm:$0xff]  ;;  %6717 = vst [vmem:[#allocation63_spill] sm:$0xff] %v4761_v11  ;;  %v1779_v49 = vadd.f32 %v1763_v25, %v1711_v3  ;;  %6718 = vst [vmem:[#allocation64_spill] sm:$0xff] %v4764_v7  ;;  %v1867_v47 = vmul.f32 %v4572_v28, %v1847_v57  ;;  %v4777_v25 = vmul.f32 %v4513_v29, %v1743_v5 }
 0x26a   : > { %v1951_v48 = vld [vmem:[#allocation2 + $0x16] sm:$0xff]  ;;  %v1919_v24 = vmul.f32 %v4575_v4, %v1899_v54  ;;  %6719 = vst [vmem:[#allocation65_spill] sm:$0xff] %v4769_v15  ;;  %6720 = vst [vmem:[#allocation66_spill] sm:$0xff] %v4772_v13  ;;  %v4783_v51 = vmul.f32 %v4592_v19, %v1847_v57  ;;  %v4786_v36 = vmul.f32 %v4596_v1, %v1899_v54 }
 0x26b   : > { %v2003_v27 = vld [vmem:[#allocation2 + $0x17] sm:$0xff]  ;;  %v1831_v58 = vadd.f32 %v1815_v56, %v1779_v49  ;;  %v1971_v17 = vmul.f32 %v4578_v8, %v1951_v48  ;;  %6721 = vst [vmem:[#allocation67_spill] sm:$0xff] %v4777_v25  ;;  %6722 = vst [vmem:[#allocation68_spill] sm:$0xff] %v4780_v31  ;;  %v4789_v6 = vmul.f32 %v4601_v39, %v1951_v48  ;;  %v4795_v15 = vpop.eup %3686  ;;  %v2004_v5 = vld [vmem:[#allocation2 + $0x1f] sm:$0xff] }
 0x26c   : > { %v2023_v3 = vmul.f32 %v4581_v9, %v2003_v27  ;;  %6723 = vst [vmem:[#allocation69_spill] sm:$0xff] %v4783_v51  ;;  %6724 = vst [vmem:[#allocation70_spill] sm:$0xff] %v4786_v36  ;;  %v1692_v49 = vld [vmem:[#allocation2 + $0x19] sm:$0xff]  ;;  %v4798_v40 = vmul.f32 %v4607_v43, %v2003_v27  ;;  %v4805_v11 = vpop.eup %3688  ;;  %v4863_v46 = vmul.f32 %v4607_v43, %v2004_v5 }
 0x26d   : > { %6725 = vst [vmem:[#allocation71_spill] sm:$0xff] %v4789_v6  ;;  %v4791_v56 = vld [vmem:[#allocation2 + $0x1a] sm:$0xff]  ;;  %6726 = vst [vmem:[#allocation72_spill] sm:$0xff] %v4795_v15  ;;  %v1883_v25 = vadd.f32 %v1867_v47, %v1831_v58  ;;  %v1712_v31 = vmul.f32 %v4485_v12, %v1692_v49  ;;  %v4808_v6 = vmul.f32 %v4493_v0, %v1691_v33  ;;  %v4819_v41 = vpop.eup %3690 }
 0x26e   : > { %v4793_v13 = vld [vmem:[#allocation2 + $0x1b] sm:$0xff]  ;;  %6727 = vst [vmem:[#allocation73_spill] sm:$0xff] %v4798_v40  ;;  %v1764_v51 = vmul.f32 %v4507_v44, %v4791_v56  ;;  %6729 = vst [vmem:[#allocation75_spill] sm:$0xff] %v4811_v62  ;;  %v4814_v47 = vmul.f32 %v4611_v53, %v1795_v63  ;;  %v4817_v58 = vmul.f32 %v4615_v61, %v1847_v57  ;;  %v4826_v62 = vpop.eup %3692 }
 0x26f   : > { %v4803_v36 = vld [vmem:[#allocation2 + $0x1c] sm:$0xff]  ;;  %6728 = vst [vmem:[#allocation74_spill] sm:$0xff] %v4808_v6  ;;  %v1935_v14 = vadd.f32 %v1919_v24, %v1883_v25  ;;  %v4822_v15 = vmul.f32 %v4620_v26, %v1899_v54  ;;  %v1816_v33 = vmul.f32 %v4562_v50, %v4793_v13  ;;  %v4829_v63 = vmul.f32 %v4627_v23, %v1951_v48  ;;  %v4840_v54 = vpop.eup %3694 }
 0x270   : > { %6730 = vst [vmem:[#allocation76_spill] sm:$0xff] %v4814_v47  ;;  %6731 = vst [vmem:[#allocation77_spill] sm:$0xff] %v4817_v58  ;;  %v1900_v40 = vld [vmem:[#allocation2 + $0x1d] sm:$0xff]  ;;  %v1780_v7 = vadd.f32 %v1764_v51, %v1712_v31  ;;  %v4832_v57 = vmul.f32 %v4636_v30, %v2003_v27  ;;  %v1868_v58 = vmul.f32 %v4572_v28, %v4803_v36  ;;  %v4844_v48 = vpop.eup %3696 }
 0x271   : > { %v1952_v34 = vld [vmem:[#allocation2 + $0x1e] sm:$0xff]  ;;  %6732 = vst [vmem:[#allocation78_spill] sm:$0xff] %v4822_v15  ;;  %6733 = vst [vmem:[#allocation79_spill] sm:$0xff] %v4829_v63  ;;  %v4838_v24 = vmul.f32 %v4509_v45, %v4742_v59  ;;  %v1987_v25 = vadd.f32 %v1971_v17, %v1935_v14  ;;  %v1920_v51 = vmul.f32 %v4575_v4, %v1900_v40  ;;  %v4854_v14 = vpop.eup %3698 }
 0x272   : > { %6734 = vst [vmem:[#allocation80_spill] sm:$0xff] %v4832_v57  ;;  %6736 = vst [vmem:[#allocation82_spill] sm:$0xff] %v4840_v54  ;;  %v1832_v31 = vadd.f32 %v1816_v33, %v1780_v7  ;;  %v1972_v15 = vmul.f32 %v4578_v8, %v1952_v34  ;;  %v2024_v27 = vmul.f32 %v4581_v9, %v2004_v5  ;;  %v4852_v6 = vld [vmem:[#allocation2 + $0x21] sm:$0xff] }
 0x273   : > { %6735 = vst [vmem:[#allocation81_spill] sm:$0xff] %v4838_v24  ;;  %6737 = vst [vmem:[#allocation83_spill] sm:$0xff] %v4844_v48  ;;  %v2112_v57 = vmul.f32 %v4489_v37, %v1692_v49  ;;  %v2149_v63 = vmul.f32 %v4513_v29, %v4791_v56  ;;  %v2186_v47 = vmul.f32 %v4585_v10, %v4793_v13  ;;  %v4859_v24 = vld [vmem:[#allocation2 + $0x22] sm:$0xff] }
 0x274   : > { %6738 = vst [vmem:[#allocation84_spill] sm:$0xff] %v4854_v14  ;;  %v2039_v7 = vadd.f32 %v2023_v3, %v1987_v25  ;;  %v1884_v17 = vadd.f32 %v1868_v58, %v1832_v31  ;;  %v2223_v33 = vmul.f32 %v4592_v19, %v4803_v36  ;;  %v2260_v54 = vmul.f32 %v4596_v1, %v1900_v40  ;;  %v4879_v48 = vld [vmem:[#allocation2 + $0x23] sm:$0xff] }
 0x275   : > { %v2297_v45 = vmul.f32 %v4601_v39, %v1952_v34  ;;  %6739 = vst [vmem:[#allocation85_spill] sm:$0xff] %v4863_v46  ;;  %v4866_v55 = vmul.f32 %v4493_v0, %v1692_v49  ;;  %v4870_v14 = vmul.f32 %v4525_v38, %v4791_v56  ;;  %v4875_v25 = vmul.f32 %v4611_v53, %v4793_v13 }
 0x276   : > { %v2091_v3 = vadd.f32 %v4727_v32, %v2039_v7  ;;  %v1936_v58 = vadd.f32 %v1920_v51, %v1884_v17  ;;  %v1713_v31 = vmul.f32 %v4485_v12, %v4852_v6  ;;  %v4883_v46 = vmul.f32 %v4615_v61, %v4803_v36  ;;  %v4899_v12 = vld [vmem:[#allocation2 + $0x24] sm:$0xff] }
 0x277   : > { %6740 = vst [vmem:[#allocation86_spill] sm:$0xff] %v4866_v55  ;;  %6741 = vst [vmem:[#allocation87_spill] sm:$0xff] %v4870_v14  ;;  %v4886_v55 = vmul.f32 %v4620_v26, %v1900_v40  ;;  %v4889_v14 = vmul.f32 %v4627_v23, %v1952_v34  ;;  %v1765_v32 = vmul.f32 %v4507_v44, %v4859_v24  ;;  %v1953_v26 = vld [vmem:[#allocation2 + $0x26] sm:$0xff] }
 0x278   : > { %6742 = vst [vmem:[#allocation88_spill] sm:$0xff] %v4875_v25  ;;  %6743 = vst [vmem:[#allocation89_spill] sm:$0xff] %v4883_v46  ;;  %v1988_v51 = vadd.f32 %v1972_v15, %v1936_v58  ;;  %v2128_v7 = vadd.f32 %v2112_v57, %v2091_v3  ;;  %v4894_v17 = vmul.f32 %v4636_v30, %v2004_v5  ;;  %v4901_v46 = vld [vmem:[#allocation2 + $0x25] sm:$0xff] }
 0x279   : > { %6744 = vst [vmem:[#allocation90_spill] sm:$0xff] %v4886_v55  ;;  %6745 = vst [vmem:[#allocation91_spill] sm:$0xff] %v4889_v14  ;;  %v4897_v25 = vmul.f32 %v4497_v22, %v1692_v49  ;;  %v4907_v34 = vmul.f32 %v4544_v60, %v4791_v56  ;;  %v4911_v15 = vmul.f32 %v4650_v2, %v4793_v13  ;;  %v2005_v57 = vld [vmem:[#allocation2 + $0x27] sm:$0xff]  ;;  %v4922_v56 = vpop.f32.mrb[24].mxu0 }
 0x27a   : > { %6746 = vst [vmem:[#allocation92_spill] sm:$0xff] %v4894_v17  ;;  %v1781_v49 = vadd.f32 %v1765_v32, %v1713_v31  ;;  %v1817_v5 = vmul.f32 %v4562_v50, %v4879_v48  ;;  %v2040_v3 = vadd.f32 %v2024_v27, %v1988_v51  ;;  %v2165_v58 = vadd.f32 %v2149_v63, %v2128_v7  ;;  %v6750_v17 = vld [vmem:[#allocation42_spill] sm:$0xff] }
 0x27b   : > { %6747 = vst [vmem:[#allocation93_spill] sm:$0xff] %v4897_v25  ;;  %6748 = vst [vmem:[#allocation94_spill] sm:$0xff] %v4907_v34  ;;  %v4917_v14 = vmul.f32 %v6750_v17, %v4803_v36  ;;  %v6752_v25 = vld [vmem:[#allocation43_spill] sm:$0xff]  ;;  %v1869_v13 = vmul.f32 %v4572_v28, %v4899_v12  ;;  %v1921_v31 = vmul.f32 %v4575_v4, %v4901_v46  ;;  %v6755_v27 = vstv %s4643_s28  ;;  %v4935_v36 = vpop.f32.mrb[25].mxu0  ;;  %s3515_s28 = smul.u32 48, %s3871_s17 }
 0x27c   : > { %6749 = vst [vmem:[#allocation95_spill] sm:$0xff] %v4911_v15  ;;  %v4920_v55 = vmul.f32 %v6752_v25, %v1900_v40  ;;  %6754 = vst [vmem:[#allocation97_spill] sm:$0xff] %v4922_v56  ;;  %v1833_v34 = vadd.f32 %v1817_v5, %v1781_v49  ;;  %v1973_v32 = vmul.f32 %v4578_v8, %v1953_v26  ;;  %vm4931_vm6 = vcmp.eq.s32.totalorder %v6755_v27, 1 }
 0x27d   : > { %6751 = vst [vmem:[#allocation42_spill] sm:$0xff] %v4917_v14  ;;  %6758 = vst [vmem:[#allocation98_spill] sm:$0xff] %v4935_v36  ;;  %v2092_v40 = vadd.f32 %v4753_v18, %v2040_v3  ;;  %v2202_v51 = vadd.f32 %v2186_v47, %v2165_v58  ;;  %v2025_v7 = vmul.f32 %v4581_v9, %v2005_v57  ;;  %s3154_s29 = sadd.s32 %s3515_s28, %s4017_s12  ;;  %s3157_s12 = sshll.u32 %s487_s18, 4  ;;  %s6406_s12 = int_to_ptr.vmem [resolvable:$true] %s3157_s12 }
 0x27e   : > { %6753 = vst [vmem:[#allocation96_spill] sm:$0xff] %v4920_v55  ;;  %v2113_v49 = vmul.f32 %v4489_v37, %v4852_v6  ;;  %v1885_v5 = vadd.f32 %v1869_v13, %v1833_v34  ;;  %v2150_v55 = vmul.f32 %v4513_v29, %v4859_v24  ;;  %v2187_v27 = vmul.f32 %v4585_v10, %v4879_v48  ;;  %s3757_s22 = scalar_lea.vmem %s6406_s12, 1024  ;;  %s3886_s28 = smov [#allocation3]  }
 0x27f   : > { %v2224_v14 = vmul.f32 %v4592_v19, %v4899_v12  ;;  %v2239_v15 = vadd.f32 %v2223_v33, %v2202_v51  ;;  %v2261_v18 = vmul.f32 %v4596_v1, %v4901_v46  ;;  %v2298_v47 = vmul.f32 %v4601_v39, %v1953_v26  ;;  %p3758_p6 = scmp.ne.s32.totalorder %s6406_s12, %s3757_s22 }
 0x280   : > { %v2129_v56 = vadd.f32 %v2113_v49, %v2092_v40  ;;  %v1937_v3 = vadd.f32 %v1921_v31, %v1885_v5  ;;  %v2335_v58 = vmul.f32 %v4607_v43, %v2005_v57  ;;  %v2372_v34 = vmul.f32 %v4516_v16, %v4742_v59  ;;  %v6759_v5 = vld [vmem:[#allocation48_spill] sm:$0xff] }
 0x281   : > { %v2408_v13 = vmul.f32 %v4493_v0, %v4852_v6  ;;  %v2276_v36 = vadd.f32 %v2260_v54, %v2239_v15  ;;  %v2445_v33 = vmul.f32 %v4525_v38, %v4859_v24  ;;  %v2482_v40 = vmul.f32 %v4611_v53, %v4879_v48  ;;  %v6760_v54 = vld [vmem:[#allocation83_spill] sm:$0xff]  ;;  %p3759_p7 = pnand %p3758_p6, %p3996_p3 }
 0x282   : > { %v2166_v9 = vadd.f32 %v2150_v55, %v2129_v56  ;;  %v1989_v51 = vadd.f32 %v1973_v32, %v1937_v3  ;;  %v2519_v31 = vmul.f32 %v4615_v61, %v4899_v12  ;;  %v1120_v49 = vmul.f32 %v4805_v11, %v4690_v20  ;;  %v6761_v56 = vld [vmem:[#allocation38_spill] sm:$0xff] }
 0x283   : > { %v1121_v43 = vmul.f32 %v4819_v41, %v6759_v5  ;;  %v2313_v39 = vadd.f32 %v2297_v45, %v2276_v36  ;;  %v1452_v55 = vmul.f32 %v4826_v62, %v4698_v35  ;;  %v1453_v15 = vmul.f32 %v6760_v54, %v4704_v42  ;;  %v6763_v42 = vld [vmem:[#allocation29_spill] sm:$0xff]  ;;  %v6772_v5 = vld [vmem:[#allocation24_spill] sm:$0xff]  ;;  %p3760_p9 = pneg %p3759_p7 }
 0x284   : > { %v2203_v1 = vadd.f32 %v2187_v27, %v2166_v9  ;;  %v4971_v32 = vmul.f32 %v6761_v56, %v4901_v46  ;;  %v4974_v3 = vmul.f32 %v4627_v23, %v1953_v26  ;;  %v1218_v20 = vsel %vm1170_vm4, %v1120_v49, 0.0  ;;  %v6762_v9 = vld [vmem:[#allocation85_spill] sm:$0xff]  ;;  %v6771_v27 = vld [vmem:[#allocation72_spill] sm:$0xff] }
 0x285   : > { %v1219_v45 = vsel %vm1171_vm5, %v1121_v43, 0.0  ;;  %v2350_v11 = vadd.f32 %v6762_v9, %v2313_v39  ;;  %v4982_v35 = vmul.f32 %v4636_v30, %v2005_v57  ;;  %v4986_v62 = vmul.f32 %v6763_v42, %v4742_v59  ;;  %1234 = vst [vmem:[#allocation2 + $0x30] sm:$0xff] %v1218_v20  ;;  %v6767_v39 = vld [vmem:[#allocation61_spill] sm:$0xff] }
 0x286   : > { %v2240_v41 = vadd.f32 %v2224_v14, %v2203_v1  ;;  %1235 = vst [vmem:[#allocation2 + $0x38] sm:$0xff] %v1219_v45  ;;  %v2041_v26 = vadd.f32 %v2025_v7, %v1989_v51  ;;  %v4990_v36 = vmul.f32 %v4497_v22, %v4852_v6  ;;  %v4994_v43 = vmul.f32 %v4544_v60, %v4859_v24 }
 0x287   : > { %v4998_v1 = vmul.f32 %v4650_v2, %v4879_v48  ;;  %v2387_v14 = vadd.f32 %v6767_v39, %v2350_v11  ;;  %v5003_v59 = vmul.f32 %v6750_v17, %v4899_v12  ;;  %v1458_v7 = vsel %vm4931_vm6, %v1452_v55, 0.0  ;;  %v6770_v48 = vld [vmem:[#allocation64_spill] sm:$0xff]  ;;  %v6773_v55 = vld [vmem:[#allocation81_spill] sm:$0xff] }
 0x288   : > { %6764 = vst [vmem:[#allocation48_spill] sm:$0xff] %v4990_v36  ;;  %6765 = vst [vmem:[#allocation83_spill] sm:$0xff] %v4994_v43  ;;  %v2277_v57 = vadd.f32 %v2261_v18, %v2240_v41  ;;  %v5009_v6 = vmul.f32 %v6752_v25, %v4901_v46  ;;  %v1459_v24 = vsel %vm4931_vm6, %v1453_v15, 0.0  ;;  %3700 = vrcp.f32 %v6770_v48  ;;  %v6775_v15 = vld [vmem:[#allocation82_spill] sm:$0xff]  ;;  %v5029_v41 = vpop.f32.mrb[26].mxu0  ;;  %v6779_v48 = vld [vmem:[#allocation84_spill] sm:$0xff] }
 0x289   : > { %6766 = vst [vmem:[#allocation85_spill] sm:$0xff] %v4998_v1  ;;  %6768 = vst [vmem:[#allocation61_spill] sm:$0xff] %v5003_v59  ;;  %v1075_v51 = vadd.f32 1.0, %v6771_v27  ;;  %v2424_v49 = vadd.f32 %v2408_v13, %v2387_v14  ;;  %v5016_v12 = vmul.f32 %v6772_v5, %v1218_v20  ;;  %v5019_v54 = vmul.f32 %v4516_v16, %v1218_v20 }
 0x28a   : > { %6769 = vst [vmem:[#allocation99_spill] sm:$0xff] %v5009_v6  ;;  %1460 = vst [vmem:[#allocation2] sm:$0xff] %v1458_v7  ;;  %v2314_v18 = vadd.f32 %v2298_v47, %v2277_v57  ;;  %v2093_v46 = vadd.f32 %v6773_v55, %v2041_v26  ;;  %v5023_v9 = vmul.f32 %v6763_v42, %v1218_v20  ;;  %v1076_v11 = vadd.f32 1.0, %v6775_v15  ;;  %v5037_v57 = vpop.f32.mrb[27].mxu0  ;;  %v6780_v55 = vld [vmem:[#allocation15_spill] sm:$0xff] }
 0x28b   : > { %1461 = vst [vmem:[#allocation2 + $0x8] sm:$0xff] %v1459_v24  ;;  %v5026_v63 = vmul.f32 %v6772_v5, %v1219_v45  ;;  %6776 = vst [vmem:[#allocation72_spill] sm:$0xff] %v5029_v41  ;;  %v2461_v13 = vadd.f32 %v2445_v33, %v2424_v49  ;;  %v5032_v39 = vmul.f32 %v4516_v16, %v1219_v45  ;;  %3702 = vrcp.f32 %v1075_v51  ;;  %v6785_v51 = vld [vmem:[#allocation18_spill] sm:$0xff] }
 0x28c   : > { %v2351_v47 = vadd.f32 %v2335_v58, %v2314_v18  ;;  %v5035_v14 = vmul.f32 %v6763_v42, %v1219_v45  ;;  %6778 = vst [vmem:[#allocation82_spill] sm:$0xff] %v5037_v57  ;;  %v5039_v26 = vld [vmem:[#allocation2 + $0x29] sm:$0xff]  ;;  %v1077_v27 = vadd.f32 1.0, %v6779_v48  ;;  %v6781_v58 = vld [vmem:[#allocation56_spill] sm:$0xff]  ;;  %v6783_v45 = vld [vmem:[#allocation19_spill] sm:$0xff]  ;;  %v5056_v1 = vmul.f32 %v6772_v5, %v1459_v24 }
 0x28d   : > { %6774 = vst [vmem:[#allocation64_spill] sm:$0xff] %v5026_v63  ;;  %v5041_v20 = vld [vmem:[#allocation2 + $0x2a] sm:$0xff]  ;;  %v994_v33 = vadd.f32 %v6781_v58, %v6780_v55  ;;  %v2498_v52 = vadd.f32 %v2482_v40, %v2461_v13  ;;  %v1714_v21 = vmul.f32 %v6783_v45, %v5039_v26  ;;  %3704 = vrcp.f32 %v1076_v11  ;;  %v6786_v48 = vld [vmem:[#allocation60_spill] sm:$0xff]  ;;  %v6788_v58 = vld [vmem:[#allocation63_spill] sm:$0xff] }
 0x28e   : > { %6777 = vst [vmem:[#allocation81_spill] sm:$0xff] %v5035_v14  ;;  %v5043_v7 = vld [vmem:[#allocation2 + $0x2b] sm:$0xff]  ;;  %v2388_v15 = vadd.f32 %v2372_v34, %v2351_v47  ;;  %v1766_v6 = vmul.f32 %v4507_v44, %v5041_v20  ;;  %6784 = vst [vmem:[#allocation84_spill] sm:$0xff] %v5056_v1  ;;  %v5060_v43 = vadd.f32 %v6786_v48, %v6785_v51  ;;  %3706 = vrcp.f32 %v1077_v27  ;;  %v5114_v16 = vld [vmem:[#allocation2 + $0x33] sm:$0xff] }
 0x28f   : > { %v6782_v18 = vld [vmem:[#allocation13_spill] sm:$0xff]  ;;  %v5053_v59 = vld [vmem:[#allocation2 + $0x2c] sm:$0xff]  ;;  %v998_v34 = vadd.f32 %v6788_v58, %v6780_v55  ;;  %v2535_v40 = vadd.f32 %v2519_v31, %v2498_v52  ;;  %v1818_v13 = vmul.f32 %v4562_v50, %v5043_v7  ;;  %v2114_v57 = vmul.f32 %v4489_v37, %v5039_v26  ;;  %v5139_v63 = vld [vmem:[#allocation2 + $0x35] sm:$0xff] }
 0x290   : > { %v1143_v49 = vadd.s32 80, %v6782_v18  ;;  %6787 = vst [vmem:[#allocation56_spill] sm:$0xff] %v5060_v43  ;;  %v1782_v47 = vadd.f32 %v1766_v6, %v1714_v21  ;;  %v5066_v36 = vld [vmem:[#allocation2 + $0x2d] sm:$0xff]  ;;  %v1870_v24 = vmul.f32 %v4572_v28, %v5053_v59  ;;  %v5072_v11 = vmul.f32 -1.442695, %v994_v33  ;;  %v6790_v48 = vld [vmem:[#allocation17_spill] sm:$0xff] }
 0x291   : > { %v2572_v52 = vadd.f32 %v4971_v32, %v2535_v40  ;;  %v1954_v31 = vld [vmem:[#allocation2 + $0x2e] sm:$0xff]  ;;  %v2130_v58 = vadd.f32 %v2114_v57, %v2093_v46  ;;  %v2151_v41 = vmul.f32 %v4513_v29, %v5041_v20  ;;  %v1922_v55 = vmul.f32 %v4575_v4, %v5066_v36 }
 0x292   : > { %6789 = vst [vmem:[#allocation60_spill] sm:$0xff] %v5072_v11  ;;  %v5075_v43 = vadd.s32 %v6790_v48, %v1143_v49  ;;  %v1834_v21 = vadd.f32 %v1818_v13, %v1782_v47  ;;  %v2006_v6 = vld [vmem:[#allocation2 + $0x2f] sm:$0xff]  ;;  %v5080_v51 = vpop.eup %3700  ;;  %v2409_v27 = vmul.f32 %v4493_v0, %v5039_v26  ;;  %v5086_v33 = vmul.f32 -1.442695, %v998_v34  ;;  %v6795_v13 = vld [vmem:[#allocation32_spill] sm:$0xff] }
 0x293   : > { %6792 = vst [vmem:[#allocation100_spill] sm:$0xff] %v5080_v51  ;;  %v5089_v49 = vadd.s32 88, %v6782_v18  ;;  %v2609_v32 = vadd.f32 %v4974_v3, %v2572_v52  ;;  %v2167_v46 = vadd.f32 %v2151_v41, %v2130_v58  ;;  %v2188_v57 = vmul.f32 %v4585_v10, %v5043_v7  ;;  %v5103_v41 = vld [vmem:[#allocation2 + $0x32] sm:$0xff] }
 0x294   : > { %6791 = vst [vmem:[#allocation63_spill] sm:$0xff] %v5075_v43  ;;  %6793 = vst [vmem:[#allocation101_spill] sm:$0xff] %v5086_v33  ;;  %v1886_v40 = vadd.f32 %v1870_v24, %v1834_v21  ;;  %v1974_v47 = vmul.f32 %v4578_v8, %v1954_v31  ;;  %v2026_v43 = vmul.f32 %v6795_v13, %v2006_v6  ;;  %v5101_v24 = vld [vmem:[#allocation2 + $0x31] sm:$0xff]  ;;  %v6797_v21 = vld [vmem:[#allocation33_spill] sm:$0xff] }
 0x295   : > { %6794 = vst [vmem:[#allocation102_spill] sm:$0xff] %v5089_v49  ;;  %v2425_v48 = vadd.f32 %v2409_v27, %v2388_v15  ;;  %v2446_v42 = vmul.f32 %v4525_v38, %v5041_v20  ;;  %v2646_v34 = vadd.f32 %v4982_v35, %v2609_v32  ;;  %v2204_v18 = vadd.f32 %v2188_v57, %v2167_v46  ;;  %v5105_v52 = vpop.eup %3702  ;;  %v6798_v15 = vld [vmem:[#allocation34_spill] sm:$0xff]  ;;  %v6799_v46 = vld [vmem:[#allocation35_spill] sm:$0xff] }
 0x296   : > { %v1938_v33 = vadd.f32 %v1922_v55, %v1886_v40  ;;  %v2225_v3 = vmul.f32 %v4592_v19, %v5053_v59  ;;  %6796 = vst [vmem:[#allocation32_spill] sm:$0xff] %v5105_v52  ;;  %v2262_v58 = vmul.f32 %v6797_v21, %v5066_v36  ;;  %v2299_v27 = vmul.f32 %v6798_v15, %v1954_v31 }
 0x297   : > { %v2462_v49 = vadd.f32 %v2446_v42, %v2425_v48  ;;  %v2483_v35 = vmul.f32 %v4611_v53, %v5043_v7  ;;  %v2683_v55 = vadd.f32 %v4986_v62, %v2646_v34  ;;  %v2336_v57 = vmul.f32 %v6799_v46, %v2006_v6  ;;  %v5116_v11 = vpop.eup %3704 }
 0x298   : > { %v1990_v32 = vadd.f32 %v1974_v47, %v1938_v33  ;;  %v2241_v40 = vadd.f32 %v2225_v3, %v2204_v18  ;;  %6800 = vst [vmem:[#allocation33_spill] sm:$0xff] %v5116_v11  ;;  %v2520_v1 = vmul.f32 %v4615_v61, %v5053_v59  ;;  %v1715_v42 = vmul.f32 %v6783_v45, %v5101_v24  ;;  %v5128_v47 = vld [vmem:[#allocation2 + $0x34] sm:$0xff] }
 0x299   : > { %v2499_v5 = vadd.f32 %v2483_v35, %v2462_v49  ;;  %v1767_v48 = vmul.f32 %v4507_v44, %v5103_v41  ;;  %v2557_v18 = vmul.f32 %v6761_v56, %v5066_v36  ;;  %v2704_v33 = vmul.f32 %v4497_v22, %v5039_v26  ;;  %v5130_v49 = vpop.eup %3706 }
 0x29a   : > { %v2042_v52 = vadd.f32 %v2026_v43, %v1990_v32  ;;  %v2278_v62 = vadd.f32 %v2262_v58, %v2241_v40  ;;  %v2594_v3 = vmul.f32 %v4627_v23, %v1954_v31  ;;  %v1819_v11 = vmul.f32 %v4562_v50, %v5114_v16 }
 0x29b   : > { %v2536_v34 = vadd.f32 %v2520_v1, %v2499_v5  ;;  %v1783_v35 = vadd.f32 %v1767_v48, %v1715_v42  ;;  %v2631_v32 = vmul.f32 %v4636_v30, %v2006_v6  ;;  %v2720_v40 = vadd.f32 %v2704_v33, %v2683_v55  ;;  %v5143_v5 = vpop.f32.mrb[28].mxu0  ;;  %v1955_v42 = vld [vmem:[#allocation2 + $0x36] sm:$0xff] }
 0x29c   : > { %v2094_v43 = vadd.f32 %v5016_v12, %v2042_v52  ;;  %v2315_v58 = vadd.f32 %v2299_v27, %v2278_v62  ;;  %v1871_v26 = vmul.f32 %v4572_v28, %v5128_v47  ;;  %v2115_v1 = vmul.f32 %v4489_v37, %v5101_v24  ;;  %6801 = vst [vmem:[#allocation34_spill] sm:$0xff] %v5143_v5  ;;  %v5153_v52 = vpop.f32.mrb[29].mxu0 }
 0x29d   : > { %v2573_v51 = vadd.f32 %v2557_v18, %v2536_v34  ;;  %v1835_v14 = vadd.f32 %v1819_v11, %v1783_v35  ;;  %v2741_v12 = vmul.f32 %v4544_v60, %v5041_v20  ;;  %v2778_v6 = vmul.f32 %v4650_v2, %v5043_v7  ;;  %6803 = vst [vmem:[#allocation103_spill] sm:$0xff] %v5153_v52  ;;  %v2007_v7 = vld [vmem:[#allocation2 + $0x37] sm:$0xff] }
 0x29e   : > { %v2352_v31 = vadd.f32 %v2336_v57, %v2315_v58  ;;  %v5151_v11 = vmul.f32 %v6750_v17, %v5053_v59  ;;  %v2131_v48 = vadd.f32 %v2115_v1, %v2094_v43  ;;  %v2152_v62 = vmul.f32 %v4513_v29, %v5103_v41 }
 0x29f   : > { %v2610_v27 = vadd.f32 %v2594_v3, %v2573_v51  ;;  %v1887_v55 = vadd.f32 %v1871_v26, %v1835_v14  ;;  %v2757_v18 = vadd.f32 %v2741_v12, %v2720_v40  ;;  %v1923_v20 = vmul.f32 %v4575_v4, %v5139_v63  ;;  %v1689_v26 = vld [vmem:[#allocation2 + $0x1] sm:$0xff] }
 0x2a0   : > { %6802 = vst [vmem:[#allocation35_spill] sm:$0xff] %v5151_v11  ;;  %v2389_v57 = vadd.f32 %v5019_v54, %v2352_v31  ;;  %v2410_v59 = vmul.f32 %v4493_v0, %v5101_v24  ;;  %v5164_v51 = vmul.f32 %v6752_v25, %v5066_v36  ;;  %v2168_v14 = vadd.f32 %v2152_v62, %v2131_v48  ;;  %v1741_v48 = vld [vmem:[#allocation2 + $0x2] sm:$0xff]  ;;  %v5198_v11 = vld [vmem:[#allocation2 + $0xb] sm:$0xff] }
 0x2a1   : > { %v2647_v33 = vadd.f32 %v2631_v32, %v2610_v27  ;;  %v2189_v34 = vmul.f32 %v4585_v10, %v5114_v16  ;;  %v1939_v3 = vadd.f32 %v1923_v20, %v1887_v55  ;;  %v1975_v54 = vmul.f32 %v4578_v8, %v1955_v42  ;;  %v5181_v55 = vld [vmem:[#allocation2 + $0x9] sm:$0xff] }
 0x2a2   : > { %6804 = vst [vmem:[#allocation104_spill] sm:$0xff] %v5164_v51  ;;  %v2426_v35 = vadd.f32 %v2410_v59, %v2389_v57  ;;  %v2447_v43 = vmul.f32 %v4525_v38, %v5103_v41  ;;  %v2027_v40 = vmul.f32 %v6795_v13, %v2007_v7  ;;  %v2226_v36 = vmul.f32 %v4592_v19, %v5128_v47 }
 0x2a3   : > { %v2684_v58 = vadd.f32 %v5023_v9, %v2647_v33  ;;  %v2205_v32 = vadd.f32 %v2189_v34, %v2168_v14  ;;  %v5175_v1 = vadd.f32 %v2778_v6, %v2757_v18  ;;  %v2263_v31 = vmul.f32 %v6797_v21, %v5139_v63  ;;  %v5187_v6 = vld [vmem:[#allocation2 + $0xa] sm:$0xff] }
 0x2a4   : > { %v2463_v12 = vadd.f32 %v2447_v43, %v2426_v35  ;;  %v2484_v27 = vmul.f32 %v4611_v53, %v5114_v16  ;;  %v2300_v62 = vmul.f32 %v6798_v15, %v1955_v42  ;;  %v2337_v57 = vmul.f32 %v6799_v46, %v2007_v7  ;;  %v1793_v34 = vld [vmem:[#allocation2 + $0x3] sm:$0xff]  ;;  %v5192_v35 = vpop.f32.mrb[30].mxu0 }
 0x2a5   : > { %6805 = vst [vmem:[#allocation105_spill] sm:$0xff] %v5175_v1  ;;  %v2242_v9 = vadd.f32 %v2226_v36, %v2205_v32  ;;  %v2521_v20 = vmul.f32 %v4615_v61, %v5128_v47  ;;  %v1991_v18 = vadd.f32 %v1975_v54, %v1939_v3  ;;  %v2558_v33 = vmul.f32 %v6761_v56, %v5139_v63  ;;  %v5200_v3 = vpop.f32.mrb[31].mxu0  ;;  %v6810_v1 = vld [vmem:[#allocation49_spill] sm:$0xff] }
 0x2a6   : > { %v2500_v59 = vadd.f32 %v2484_v27, %v2463_v12  ;;  %v1709_v14 = vmul.f32 %v6783_v45, %v1689_v26  ;;  %6806 = vst [vmem:[#allocation106_spill] sm:$0xff] %v5192_v35  ;;  %v2595_v32 = vmul.f32 %v4627_v23, %v1955_v42  ;;  %v1710_v36 = vmul.f32 %v6783_v45, %v5181_v55  ;;  %v1845_v27 = vld [vmem:[#allocation2 + $0x4] sm:$0xff]  ;;  %v6808_v42 = vld [vmem:[#allocation46_spill] sm:$0xff] }
 0x2a7   : > { %v2279_v43 = vadd.f32 %v2263_v31, %v2242_v9  ;;  %v1761_v51 = vmul.f32 %v4507_v44, %v1741_v48  ;;  %6807 = vst [vmem:[#allocation107_spill] sm:$0xff] %v5200_v3  ;;  %v2632_v12 = vmul.f32 %v4636_v30, %v2007_v7  ;;  %v2705_v26 = vmul.f32 %v4497_v22, %v5101_v24  ;;  %v6809_v9 = vld [vmem:[#allocation47_spill] sm:$0xff]  ;;  %v1897_v23 = vld [vmem:[#allocation2 + $0x5] sm:$0xff] }
 0x2a8   : > { %v2537_v54 = vadd.f32 %v2521_v20, %v2500_v59  ;;  %v1762_v31 = vmul.f32 %v4507_v44, %v5187_v6  ;;  %vm1172_vm7 = vcmp.lt.s32.totalorder %v6808_v42, 300  ;;  %vm1173_vm8 = vcmp.lt.s32.totalorder %v6809_v9, 300  ;;  %v1846_v59 = vld [vmem:[#allocation2 + $0xc] sm:$0xff]  ;;  %v6846_v42 = vld [vmem:[#allocation97_spill] sm:$0xff] }
 0x2a9   : > { %vm1174_vm9 = vcmp.lt.s32.totalorder %v6810_v1, 300  ;;  %v2316_v48 = vadd.f32 %v2300_v62, %v2279_v43  ;;  %v2742_v35 = vmul.f32 %v4544_v60, %v5103_v41  ;;  %v1777_v20 = vadd.f32 %v1761_v51, %v1709_v14  ;;  %v1898_v62 = vld [vmem:[#allocation2 + $0xd] sm:$0xff] }
 0x2aa   : > { %v1813_v7 = vmul.f32 %v4562_v50, %v1793_v34  ;;  %v2574_v3 = vadd.f32 %v2558_v33, %v2537_v54  ;;  %v2721_v24 = vadd.f32 %v2705_v26, %v2684_v58  ;;  %v1778_v52 = vadd.f32 %v1762_v31, %v1710_v36  ;;  %v1949_v33 = vld [vmem:[#allocation2 + $0x6] sm:$0xff]  ;;  %v6811_v58 = vld [vmem:[#allocation52_spill] sm:$0xff] }
 0x2ab   : > { %v1814_v30 = vmul.f32 %v4562_v50, %v5198_v11  ;;  %v2043_v56 = vadd.f32 %v2027_v40, %v1991_v18  ;;  %v2353_v5 = vadd.f32 %v2337_v57, %v2316_v48  ;;  %v1865_v22 = vmul.f32 %v4572_v28, %v1845_v27  ;;  %v2001_v36 = vld [vmem:[#allocation2 + $0x7] sm:$0xff]  ;;  %v6813_v54 = vld [vmem:[#allocation64_spill] sm:$0xff] }
 0x2ac   : > { %v1829_v61 = vadd.f32 %v1813_v7, %v1777_v20  ;;  %v2611_v43 = vadd.f32 %v2595_v32, %v2574_v3  ;;  %v2779_v41 = vmul.f32 %v4650_v2, %v5114_v16  ;;  %v1866_v14 = vmul.f32 %v4572_v28, %v1846_v59  ;;  %v1950_v32 = vld [vmem:[#allocation2 + $0xe] sm:$0xff] }
 0x2ad   : > { %v1830_v51 = vadd.f32 %v1814_v30, %v1778_v52  ;;  %vm1175_vm10 = vcmp.lt.s32.totalorder %v6811_v58, 300  ;;  %v5221_v34 = vadd.f32 %v5032_v39, %v2353_v5  ;;  %v5225_v40 = vmul.f32 %v6750_v17, %v5128_v47  ;;  %v6816_v48 = vld [vmem:[#allocation50_spill] sm:$0xff]  ;;  %v6818_v7 = vld [vmem:[#allocation51_spill] sm:$0xff] }
 0x2ae   : > { %v1881_v57 = vadd.f32 %v1865_v22, %v1829_v61  ;;  %v1917_v18 = vmul.f32 %v4575_v4, %v1897_v23  ;;  %v2648_v3 = vadd.f32 %v2632_v12, %v2611_v43  ;;  %v2758_v16 = vadd.f32 %v2742_v35, %v2721_v24  ;;  %v2002_v22 = vld [vmem:[#allocation2 + $0xf] sm:$0xff]  ;;  %v6815_v61 = vld [vmem:[#allocation81_spill] sm:$0xff]  ;;  %v6819_v24 = vld [vmem:[#allocation32_spill] sm:$0xff] }
 0x2af   : > { %6812 = vst [vmem:[#allocation108_spill] sm:$0xff] %v5225_v40  ;;  %v1882_v30 = vadd.f32 %v1866_v14, %v1830_v51  ;;  %v1918_v52 = vmul.f32 %v4575_v4, %v1898_v62  ;;  %v5230_v26 = vadd.f32 %v6813_v54, %v2043_v56  ;;  %v5234_v39 = vmul.f32 %v6752_v25, %v5139_v63  ;;  %v6817_v56 = vld [vmem:[#allocation100_spill] sm:$0xff]  ;;  %v6820_v43 = vld [vmem:[#allocation55_spill] sm:$0xff]  ;;  %v6821_v51 = vld [vmem:[#allocation33_spill] sm:$0xff] }
 0x2b0   : > { %v1933_v5 = vadd.f32 %v1917_v18, %v1881_v57  ;;  %v1969_v47 = vmul.f32 %v4578_v8, %v1949_v33  ;;  %v5238_v23 = vadd.f32 %v6815_v61, %v2648_v3  ;;  %v1970_v35 = vmul.f32 %v4578_v8, %v1950_v32  ;;  %v6823_v3 = vld [vmem:[#allocation59_spill] sm:$0xff]  ;;  %v6824_v61 = vld [vmem:[#allocation84_spill] sm:$0xff]  ;;  %v6845_v9 = vld [vmem:[#allocation18_spill] sm:$0xff] }
 0x2b1   : > { %6814 = vst [vmem:[#allocation64_spill] sm:$0xff] %v5234_v39  ;;  %v1934_v31 = vadd.f32 %v1918_v52, %v1882_v30  ;;  %v2021_v12 = vmul.f32 %v6795_v13, %v2001_v36  ;;  %v1122_v20 = vmul.f32 %v6817_v56, %v6816_v48  ;;  %v1123_v63 = vmul.f32 %v6819_v24, %v6818_v7  ;;  %v6825_v48 = vld [vmem:[#allocation53_spill] sm:$0xff]  ;;  %v6827_v7 = vld [vmem:[#allocation60_spill] sm:$0xff] }
 0x2b2   : > { %v1985_v27 = vadd.f32 %v1969_v47, %v1933_v5  ;;  %v1124_v14 = vmul.f32 %v6821_v51, %v6820_v43  ;;  %v5248_v33 = vadd.f32 %v2779_v41, %v2758_v16  ;;  %v2022_v18 = vmul.f32 %v6795_v13, %v2002_v22  ;;  %v6828_v24 = vld [vmem:[#allocation25_spill] sm:$0xff] }
 0x2b3   : > { %v1986_v57 = vadd.f32 %v1970_v35, %v1934_v31  ;;  %v1125_v30 = vmul.f32 %v5130_v49, %v6823_v3  ;;  %v1220_v36 = vsel %vm1172_vm7, %v1122_v20, 0.0  ;;  %v1221_v54 = vsel %vm1173_vm8, %v1123_v63, 0.0  ;;  %v6826_v20 = vld [vmem:[#allocation24_spill] sm:$0xff]  ;;  %v6829_v43 = vld [vmem:[#allocation29_spill] sm:$0xff] }
 0x2b4   : > { %6822 = vst [vmem:[#allocation81_spill] sm:$0xff] %v5248_v33  ;;  %v2037_v52 = vadd.f32 %v2021_v12, %v1985_v27  ;;  %v1222_v5 = vsel %vm1174_vm9, %v1124_v14, 0.0  ;;  %v2110_v41 = vmul.f32 %v4489_v37, %v5181_v55  ;;  %v2147_v16 = vmul.f32 %v4513_v29, %v5187_v6  ;;  %1236 = vst [vmem:[#allocation2 + $0x40] sm:$0xff] %v1220_v36  ;;  %v6848_v33 = vld [vmem:[#allocation13_spill] sm:$0xff] }
 0x2b5   : > { %v2038_v47 = vadd.f32 %v2022_v18, %v1986_v57  ;;  %v2184_v49 = vmul.f32 %v4585_v10, %v5198_v11  ;;  %1237 = vst [vmem:[#allocation2 + $0x48] sm:$0xff] %v1221_v54  ;;  %1238 = vst [vmem:[#allocation2 + $0x50] sm:$0xff] %v1222_v5  ;;  %v2221_v35 = vmul.f32 %v4592_v19, %v1846_v59  ;;  %3708 = vpow2.f32 %v6827_v7 }
 0x2b6   : > { %v2089_v31 = vadd.f32 %v6824_v61, %v2037_v52  ;;  %v2258_v12 = vmul.f32 %v6797_v21, %v1898_v62  ;;  %v2295_v27 = vmul.f32 %v6798_v15, %v1950_v32  ;;  %v2332_v55 = vmul.f32 %v6799_v46, %v2002_v22  ;;  %v6830_v62 = vld [vmem:[#allocation65_spill] sm:$0xff] }
 0x2b7   : > { %v2090_v56 = vadd.f32 %v6825_v48, %v2038_v47  ;;  %v5272_v6 = vmul.f32 %v6826_v20, %v1220_v36  ;;  %v5276_v63 = vmul.f32 %v6828_v24, %v1220_v36  ;;  %v5279_v51 = vmul.f32 %v6829_v43, %v1220_v36  ;;  %v6834_v36 = vld [vmem:[#allocation67_spill] sm:$0xff]  ;;  %v6836_v61 = vld [vmem:[#allocation101_spill] sm:$0xff] }
 0x2b8   : > { %v2126_v11 = vadd.f32 %v2110_v41, %v2089_v31  ;;  %v1223_v59 = vsel %vm1175_vm10, %v1125_v30, 0.0  ;;  %v5285_v14 = vmul.f32 %v6826_v20, %v1221_v54  ;;  %v5288_v22 = vmul.f32 %v6828_v24, %v1221_v54  ;;  %v6838_v31 = vld [vmem:[#allocation17_spill] sm:$0xff] }
 0x2b9   : > { %v2127_v32 = vadd.f32 %v6830_v62, %v2090_v56  ;;  %v5291_v57 = vmul.f32 %v6829_v43, %v1221_v54  ;;  %1239 = vst [vmem:[#allocation2 + $0x58] sm:$0xff] %v1223_v59  ;;  %v5294_v3 = vmul.f32 %v6826_v20, %v1222_v5  ;;  %v5297_v52 = vmul.f32 %v6828_v24, %v1222_v5  ;;  %v6837_v54 = vld [vmem:[#allocation102_spill] sm:$0xff] }
 0x2ba   : > { %v2163_v18 = vadd.f32 %v2147_v16, %v2126_v11  ;;  %v5300_v30 = vmul.f32 %v6829_v43, %v1222_v5  ;;  %v5304_v41 = vmul.f32 %v6826_v20, %v1223_v59  ;;  %3710 = vpow2.f32 %v6836_v61  ;;  %v6844_v61 = vld [vmem:[#allocation68_spill] sm:$0xff] }
 0x2bb   : > { %6831 = vst [vmem:[#allocation50_spill] sm:$0xff] %v5294_v3  ;;  %6832 = vst [vmem:[#allocation100_spill] sm:$0xff] %v5297_v52  ;;  %v2164_v47 = vadd.f32 %v6834_v36, %v2127_v32  ;;  %v5309_v48 = vadd.s32 %v6838_v31, %v6837_v54  ;;  %v1696_v56 = vld [vmem:[#allocation2 + $0x39] sm:$0xff]  ;;  %v5316_v5 = vmul.f32 %v6828_v24, %v1223_v59  ;;  %v6843_v36 = vld [vmem:[#allocation98_spill] sm:$0xff] }
 0x2bc   : > { %6833 = vst [vmem:[#allocation51_spill] sm:$0xff] %v5300_v30  ;;  %6835 = vst [vmem:[#allocation32_spill] sm:$0xff] %v5304_v41  ;;  %v2200_v16 = vadd.f32 %v2184_v49, %v2163_v18  ;;  %v5311_v7 = vld [vmem:[#allocation2 + $0x3a] sm:$0xff]  ;;  %v5319_v62 = vmul.f32 %v6829_v43, %v1223_v59  ;;  %v1716_v54 = vmul.f32 %v6783_v45, %v1696_v56  ;;  %v5334_v59 = vadd.s32 96, %v6848_v33  ;;  %v6854_v24 = vld [vmem:[#allocation69_spill] sm:$0xff] }
 0x2bd   : > { %6839 = vst [vmem:[#allocation55_spill] sm:$0xff] %v5309_v48  ;;  %v5313_v11 = vld [vmem:[#allocation2 + $0x3b] sm:$0xff]  ;;  %6840 = vst [vmem:[#allocation33_spill] sm:$0xff] %v5316_v5  ;;  %v2201_v58 = vadd.f32 %v6844_v61, %v2164_v47  ;;  %v1768_v49 = vmul.f32 %v4507_v44, %v5311_v7  ;;  %v5331_v39 = vadd.f32 %v6846_v42, %v6845_v9  ;;  %v6852_v47 = vld [vmem:[#allocation82_spill] sm:$0xff] }
 0x2be   : > { %6841 = vst [vmem:[#allocation59_spill] sm:$0xff] %v5319_v62  ;;  %v6842_v32 = vld [vmem:[#allocation15_spill] sm:$0xff]  ;;  %v5327_v18 = vld [vmem:[#allocation2 + $0x3c] sm:$0xff]  ;;  %v2237_v40 = vadd.f32 %v2221_v35, %v2200_v16  ;;  %6849 = vst [vmem:[#allocation53_spill] sm:$0xff] %v5334_v59  ;;  %v1820_v31 = vmul.f32 %v4562_v50, %v5313_v11  ;;  %v2116_v16 = vmul.f32 %v4489_v37, %v1696_v56 }
 0x2bf   : > { %v1004_v1 = vadd.f32 %v6843_v36, %v6842_v32  ;;  %6847 = vst [vmem:[#allocation84_spill] sm:$0xff] %v5331_v39  ;;  %v6850_v43 = vld [vmem:[#allocation72_spill] sm:$0xff]  ;;  %v5342_v61 = vadd.f32 %v6852_v47, %v6842_v32  ;;  %v2238_v20 = vadd.f32 %v6854_v24, %v2201_v58  ;;  %v1784_v62 = vadd.f32 %v1768_v49, %v1716_v54  ;;  %v5357_v59 = vpop.eup %3708  ;;  %v6858_v58 = vld [vmem:[#allocation70_spill] sm:$0xff] }
 0x2c0   : > { %v5338_v36 = vadd.f32 %v6850_v43, %v6845_v9  ;;  %v5347_v42 = vld [vmem:[#allocation2 + $0x3d] sm:$0xff]  ;;  %v2274_v39 = vadd.f32 %v2258_v12, %v2237_v40  ;;  %v1872_v43 = vmul.f32 %v4572_v28, %v5327_v18  ;;  %v5355_v47 = vadd.s32 104, %v6848_v33  ;;  %6857 = vst [vmem:[#allocation102_spill] sm:$0xff] %v5357_v59 }
 0x2c1   : > { %6853 = vst [vmem:[#allocation65_spill] sm:$0xff] %v5342_v61  ;;  %v1956_v35 = vld [vmem:[#allocation2 + $0x3e] sm:$0xff]  ;;  %v2275_v24 = vadd.f32 %v6858_v58, %v2238_v20  ;;  %v1836_v54 = vadd.f32 %v1820_v31, %v1784_v62  ;;  %v2132_v5 = vadd.f32 %v2116_v16, %v5230_v26  ;;  %v2153_v41 = vmul.f32 %v4513_v29, %v5311_v7 }
 0x2c2   : > { %6851 = vst [vmem:[#allocation60_spill] sm:$0xff] %v5338_v36  ;;  %v5352_v36 = vmul.f32 -1.442695, %v1004_v1  ;;  %6856 = vst [vmem:[#allocation101_spill] sm:$0xff] %v5355_v47  ;;  %v2008_v49 = vld [vmem:[#allocation2 + $0x3f] sm:$0xff]  ;;  %v2311_v40 = vadd.f32 %v2295_v27, %v2274_v39  ;;  %v1924_v12 = vmul.f32 %v4575_v4, %v5347_v42  ;;  %v1976_v1 = vmul.f32 %v4578_v8, %v1956_v35  ;;  %v6859_v47 = vld [vmem:[#allocation71_spill] sm:$0xff] }
 0x2c3   : > { %v2411_v33 = vmul.f32 %v4493_v0, %v1696_v56  ;;  %v2312_v48 = vadd.f32 %v6859_v47, %v2275_v24  ;;  %v1888_v32 = vadd.f32 %v1872_v43, %v1836_v54  ;;  %v2169_v61 = vadd.f32 %v2153_v41, %v2132_v5  ;;  %v6861_v16 = vld [vmem:[#allocation73_spill] sm:$0xff]  ;;  %v6862_v5 = vld [vmem:[#allocation54_spill] sm:$0xff] }
 0x2c4   : > { %6855 = vst [vmem:[#allocation67_spill] sm:$0xff] %v5352_v36  ;;  %v2190_v20 = vmul.f32 %v4585_v10, %v5313_v11  ;;  %v2348_v31 = vadd.f32 %v2332_v55, %v2311_v40  ;;  %v2028_v26 = vmul.f32 %v6795_v13, %v2008_v49  ;;  %v2448_v39 = vmul.f32 %v4525_v38, %v5311_v7  ;;  %v5374_v27 = vpop.eup %3710 }
 0x2c5   : > { %v2427_v62 = vadd.f32 %v2411_v33, %v5221_v34  ;;  %6860 = vst [vmem:[#allocation98_spill] sm:$0xff] %v5374_v27  ;;  %v2349_v58 = vadd.f32 %v6861_v16, %v2312_v48  ;;  %v1940_v36 = vadd.f32 %v1924_v12, %v1888_v32  ;;  %v2227_v41 = vmul.f32 %v4592_v19, %v5327_v18  ;;  %v6863_v33 = vld [vmem:[#allocation57_spill] sm:$0xff]  ;;  %v6864_v27 = vld [vmem:[#allocation20_spill] sm:$0xff]  ;;  %v6865_v32 = vld [vmem:[#allocation74_spill] sm:$0xff] }
 0x2c6   : > { %v2206_v59 = vadd.f32 %v2190_v20, %v2169_v61  ;;  %v2385_v43 = vadd.f32 %v6862_v5, %v2348_v31  ;;  %v2264_v55 = vmul.f32 %v6797_v21, %v5347_v42  ;;  %v2485_v34 = vmul.f32 %v4611_v53, %v5313_v11  ;;  %v6866_v20 = vld [vmem:[#allocation37_spill] sm:$0xff]  ;;  %v6867_v31 = vld [vmem:[#allocation34_spill] sm:$0xff] }
 0x2c7   : > { %v2464_v47 = vadd.f32 %v2448_v39, %v2427_v62  ;;  %v2386_v24 = vadd.f32 %v6863_v33, %v2349_v58  ;;  %v1992_v54 = vadd.f32 %v1976_v1, %v1940_v36  ;;  %v2706_v48 = vmul.f32 %v6864_v27, %v1696_v56  ;;  %v5395_v36 = vld [vmem:[#allocation2 + $0x41] sm:$0xff]  ;;  %v6869_v56 = vld [vmem:[#allocation75_spill] sm:$0xff] }
 0x2c8   : > { %v2243_v40 = vadd.f32 %v2227_v41, %v2206_v59  ;;  %v2422_v61 = vadd.f32 %v6865_v32, %v2385_v43  ;;  %v2522_v16 = vmul.f32 %v6866_v20, %v5327_v18  ;;  %v5391_v5 = vadd.f32 %v6867_v31, %v6845_v9  ;;  %v5397_v59 = vld [vmem:[#allocation2 + $0x42] sm:$0xff]  ;;  %v6871_v32 = vld [vmem:[#allocation39_spill] sm:$0xff] }
 0x2c9   : > { %v2501_v12 = vadd.f32 %v2485_v34, %v2464_v47  ;;  %v2044_v62 = vadd.f32 %v2028_v26, %v1992_v54  ;;  %v2301_v30 = vmul.f32 %v6798_v15, %v1956_v35  ;;  %v2722_v58 = vadd.f32 %v2706_v48, %v5238_v23  ;;  %v6870_v47 = vld [vmem:[#allocation38_spill] sm:$0xff]  ;;  %v6873_v48 = vld [vmem:[#allocation76_spill] sm:$0xff] }
 0x2ca   : > { %6868 = vst [vmem:[#allocation68_spill] sm:$0xff] %v5391_v5  ;;  %v2280_v39 = vadd.f32 %v2264_v55, %v2243_v40  ;;  %v2459_v1 = vadd.f32 %v6869_v56, %v2422_v61  ;;  %v2338_v41 = vmul.f32 %v6799_v46, %v2008_v49  ;;  %v2559_v34 = vmul.f32 %v6870_v47, %v5347_v42  ;;  %v6872_v55 = vld [vmem:[#allocation41_spill] sm:$0xff] }
 0x2cb   : > { %v2538_v43 = vadd.f32 %v2522_v16, %v2501_v12  ;;  %v2596_v26 = vmul.f32 %v6871_v32, %v1956_v35  ;;  %v2633_v54 = vmul.f32 %v6872_v55, %v2008_v49  ;;  %v2743_v23 = vmul.f32 %v4544_v60, %v5311_v7  ;;  %v5407_v40 = vld [vmem:[#allocation2 + $0x43] sm:$0xff]  ;;  %v6874_v16 = vld [vmem:[#allocation86_spill] sm:$0xff] }
 0x2cc   : > { %v2317_v33 = vadd.f32 %v2301_v30, %v2280_v39  ;;  %v2496_v31 = vadd.f32 %v6873_v48, %v2459_v1  ;;  %v1717_v61 = vmul.f32 %v6783_v45, %v5395_v36  ;;  %v1769_v12 = vmul.f32 %v4507_v44, %v5397_v59  ;;  %v5416_v56 = vld [vmem:[#allocation2 + $0x44] sm:$0xff] }
 0x2cd   : > { %v2575_v5 = vadd.f32 %v2559_v34, %v2538_v43  ;;  %v2423_v30 = vadd.f32 %v6874_v16, %v2386_v24  ;;  %v2096_v35 = vadd.f32 %v5272_v6, %v2044_v62  ;;  %v2759_v49 = vadd.f32 %v2743_v23, %v2722_v58  ;;  %v6875_v7 = vld [vmem:[#allocation77_spill] sm:$0xff] }
 0x2ce   : > { %v2354_v39 = vadd.f32 %v2338_v41, %v2317_v33  ;;  %v2533_v9 = vadd.f32 %v6875_v7, %v2496_v31  ;;  %v1785_v3 = vadd.f32 %v1769_v12, %v1717_v61  ;;  %v1821_v1 = vmul.f32 %v4562_v50, %v5407_v40  ;;  %v5428_v6 = vld [vmem:[#allocation2 + $0x45] sm:$0xff]  ;;  %v6881_v7 = vld [vmem:[#allocation79_spill] sm:$0xff] }
 0x2cf   : > { %v2612_v52 = vadd.f32 %v2596_v26, %v2575_v5  ;;  %v2780_v34 = vmul.f32 %v4650_v2, %v5313_v11  ;;  %v5426_v24 = vmul.f32 %v6750_v17, %v5327_v18  ;;  %v2117_v62 = vmul.f32 %v4489_v37, %v5395_v36  ;;  %v1957_v33 = vld [vmem:[#allocation2 + $0x46] sm:$0xff]  ;;  %v6878_v11 = vld [vmem:[#allocation87_spill] sm:$0xff] }
 0x2d0   : > { %v2391_v43 = vadd.f32 %v5276_v63, %v2354_v39  ;;  %v5434_v5 = vmul.f32 %v6752_v25, %v5347_v42  ;;  %v1837_v41 = vadd.f32 %v1821_v1, %v1785_v3  ;;  %v1873_v63 = vmul.f32 %v4572_v28, %v5416_v56  ;;  %v6879_v18 = vld [vmem:[#allocation78_spill] sm:$0xff] }
 0x2d1   : > { %6876 = vst [vmem:[#allocation97_spill] sm:$0xff] %v5426_v24  ;;  %v2649_v58 = vadd.f32 %v2633_v54, %v2612_v52  ;;  %v5439_v26 = vadd.f32 %v6878_v11, %v2423_v30  ;;  %v2570_v23 = vadd.f32 %v6879_v18, %v2533_v9  ;;  %v2009_v48 = vld [vmem:[#allocation2 + $0x47] sm:$0xff]  ;;  %v2133_v31 = vadd.f32 %v2117_v62, %v2096_v35 }
 0x2d2   : > { %6877 = vst [vmem:[#allocation72_spill] sm:$0xff] %v5434_v5  ;;  %v2154_v61 = vmul.f32 %v4513_v29, %v5397_v59  ;;  %v5445_v54 = vadd.f32 %v2780_v34, %v2759_v49  ;;  %v1889_v42 = vadd.f32 %v1873_v63, %v1837_v41  ;;  %v1925_v3 = vmul.f32 %v4575_v4, %v5428_v6  ;;  %v5464_v41 = vld [vmem:[#allocation2 + $0x49] sm:$0xff] }
 0x2d3   : > { %v2686_v52 = vadd.f32 %v5279_v51, %v2649_v58  ;;  %v1977_v12 = vmul.f32 %v4578_v8, %v1957_v33  ;;  %v2191_v30 = vmul.f32 %v4585_v10, %v5407_v40  ;;  %v2412_v9 = vmul.f32 %v4493_v0, %v5395_v36  ;;  %v5466_v63 = vld [vmem:[#allocation2 + $0x4a] sm:$0xff] }
 0x2d4   : > { %6880 = vst [vmem:[#allocation82_spill] sm:$0xff] %v5445_v54  ;;  %v2170_v16 = vadd.f32 %v2154_v61, %v2133_v31  ;;  %v1941_v35 = vadd.f32 %v1925_v3, %v1889_v42  ;;  %v2029_v39 = vmul.f32 %v6795_v13, %v2009_v48  ;;  %v2228_v51 = vmul.f32 %v4592_v19, %v5416_v56 }
 0x2d5   : > { %v2265_v49 = vmul.f32 %v6797_v21, %v5428_v6  ;;  %v5460_v1 = vadd.f32 %v6881_v7, %v2570_v23  ;;  %v2428_v62 = vadd.f32 %v2412_v9, %v2391_v43  ;;  %v2449_v58 = vmul.f32 %v4525_v38, %v5397_v59 }
 0x2d6   : > { %v2207_v34 = vadd.f32 %v2191_v30, %v2170_v16  ;;  %v1993_v11 = vadd.f32 %v1977_v12, %v1941_v35  ;;  %v2302_v18 = vmul.f32 %v6798_v15, %v1957_v33  ;;  %v2339_v31 = vmul.f32 %v6799_v46, %v2009_v48  ;;  %v5476_v16 = vld [vmem:[#allocation2 + $0x4b] sm:$0xff] }
 0x2d7   : > { %6882 = vst [vmem:[#allocation69_spill] sm:$0xff] %v5460_v1  ;;  %v2486_v61 = vmul.f32 %v4611_v53, %v5407_v40  ;;  %v2465_v23 = vadd.f32 %v2449_v58, %v2428_v62  ;;  %v2523_v43 = vmul.f32 %v6866_v20, %v5416_v56  ;;  %v2707_v3 = vmul.f32 %v6864_v27, %v5395_v36  ;;  %v5485_v58 = vld [vmem:[#allocation2 + $0x4c] sm:$0xff] }
 0x2d8   : > { %v2244_v42 = vadd.f32 %v2228_v51, %v2207_v34  ;;  %v2045_v30 = vadd.f32 %v2029_v39, %v1993_v11  ;;  %v2560_v12 = vmul.f32 %v6870_v47, %v5428_v6  ;;  %v1718_v9 = vmul.f32 %v6783_v45, %v5464_v41 }
 0x2d9   : > { %v1770_v35 = vmul.f32 %v4507_v44, %v5466_v63  ;;  %v2502_v7 = vadd.f32 %v2486_v61, %v2465_v23  ;;  %v2597_v34 = vmul.f32 %v6871_v32, %v1957_v33  ;;  %v2723_v62 = vadd.f32 %v2707_v3, %v2686_v52  ;;  %v5495_v33 = vld [vmem:[#allocation2 + $0x4d] sm:$0xff] }
 0x2da   : > { %v2281_v51 = vadd.f32 %v2265_v49, %v2244_v42  ;;  %v2097_v36 = vadd.f32 %v5285_v14, %v2045_v30  ;;  %v2634_v39 = vmul.f32 %v6872_v55, %v2009_v48  ;;  %v1822_v5 = vmul.f32 %v4562_v50, %v5476_v16  ;;  %v1958_v61 = vld [vmem:[#allocation2 + $0x4e] sm:$0xff] }
 0x2db   : > { %v1786_v11 = vadd.f32 %v1770_v35, %v1718_v9  ;;  %v2539_v54 = vadd.f32 %v2523_v43, %v2502_v7  ;;  %v2744_v1 = vmul.f32 %v4544_v60, %v5397_v59  ;;  %v2781_v49 = vmul.f32 %v4650_v2, %v5407_v40  ;;  %v2010_v43 = vld [vmem:[#allocation2 + $0x4f] sm:$0xff] }
 0x2dc   : > { %v2318_v24 = vadd.f32 %v2302_v18, %v2281_v51  ;;  %v5499_v52 = vmul.f32 %v6750_v17, %v5416_v56  ;;  %v1874_v48 = vmul.f32 %v4572_v28, %v5485_v58  ;;  %v2118_v18 = vmul.f32 %v4489_v37, %v5464_v41 }
 0x2dd   : > { %v1838_v14 = vadd.f32 %v1822_v5, %v1786_v11  ;;  %v2576_v23 = vadd.f32 %v2560_v12, %v2539_v54  ;;  %v2760_v59 = vadd.f32 %v2744_v1, %v2723_v62  ;;  %v5507_v40 = vmul.f32 %v6752_v25, %v5428_v6 }
 0x2de   : > { %v2355_v42 = vadd.f32 %v2339_v31, %v2318_v24  ;;  %v1926_v56 = vmul.f32 %v4575_v4, %v5495_v33  ;;  %v2134_v5 = vadd.f32 %v2118_v18, %v2097_v36  ;;  %v2155_v30 = vmul.f32 %v4513_v29, %v5466_v63 }
 0x2df   : > { %v1890_v3 = vadd.f32 %v1874_v48, %v1838_v14  ;;  %v2613_v35 = vadd.f32 %v2597_v34, %v2576_v23  ;;  %v1978_v24 = vmul.f32 %v4578_v8, %v1958_v61  ;;  %v2413_v54 = vmul.f32 %v4493_v0, %v5464_v41  ;;  %v5528_v48 = vld [vmem:[#allocation2 + $0x51] sm:$0xff] }
 0x2e0   : > { %v2392_v9 = vadd.f32 %v5288_v22, %v2355_v42  ;;  %v2030_v6 = vmul.f32 %v6795_v13, %v2010_v43  ;;  %v2171_v31 = vadd.f32 %v2155_v30, %v2134_v5  ;;  %v2192_v12 = vmul.f32 %v4585_v10, %v5476_v16  ;;  %v5534_v23 = vld [vmem:[#allocation2 + $0x52] sm:$0xff] }
 0x2e1   : > { %v1942_v1 = vadd.f32 %v1926_v56, %v1890_v3  ;;  %v2650_v51 = vadd.f32 %v2634_v39, %v2613_v35  ;;  %v5520_v7 = vadd.f32 %v2781_v49, %v2760_v59  ;;  %v2450_v22 = vmul.f32 %v4525_v38, %v5466_v63 }
 0x2e2   : > { %v2429_v62 = vadd.f32 %v2413_v54, %v2392_v9  ;;  %v2208_v36 = vadd.f32 %v2192_v12, %v2171_v31  ;;  %v2229_v11 = vmul.f32 %v4592_v19, %v5485_v58  ;;  %v2266_v14 = vmul.f32 %v6797_v21, %v5495_v33  ;;  %v5547_v54 = vpop.f32.mrb[4].mxu1 }
 0x2e3   : > { %v1994_v34 = vadd.f32 %v1978_v24, %v1942_v1  ;;  %v2687_v18 = vadd.f32 %v5291_v57, %v2650_v51  ;;  %v2303_v39 = vmul.f32 %v6798_v15, %v1958_v61  ;;  %v2487_v42 = vmul.f32 %v4611_v53, %v5476_v16  ;;  %v5545_v24 = vld [vmem:[#allocation2 + $0x53] sm:$0xff]  ;;  %v5552_v12 = vpop.f32.mrb[5].mxu1 }
 0x2e4   : > { %v2466_v49 = vadd.f32 %v2450_v22, %v2429_v62  ;;  %v2245_v3 = vadd.f32 %v2229_v11, %v2208_v36  ;;  %v2340_v56 = vmul.f32 %v6799_v46, %v2010_v43  ;;  %v2708_v5 = vmul.f32 %v6864_v27, %v5464_v41  ;;  %v6883_v51 = vld [vmem:[#allocation50_spill] sm:$0xff]  ;;  %v5558_v11 = vld [vmem:[#allocation2 + $0x54] sm:$0xff] }
 0x2e5   : > { %v2046_v59 = vadd.f32 %v2030_v6, %v1994_v34  ;;  %v2524_v9 = vmul.f32 %v6866_v20, %v5485_v58  ;;  %v2561_v57 = vmul.f32 %v6870_v47, %v5495_v33  ;;  %v1719_v35 = vmul.f32 %v6783_v45, %v5528_v48 }
 0x2e6   : > { %v2503_v30 = vadd.f32 %v2487_v42, %v2466_v49  ;;  %v2282_v1 = vadd.f32 %v2266_v14, %v2245_v3  ;;  %v2598_v6 = vmul.f32 %v6871_v32, %v1958_v61  ;;  %v2724_v31 = vadd.f32 %v2708_v5, %v2687_v18  ;;  %v5564_v42 = vld [vmem:[#allocation2 + $0x55] sm:$0xff] }
 0x2e7   : > { %v1771_v41 = vmul.f32 %v4507_v44, %v5534_v23  ;;  %v2098_v62 = vadd.f32 %v6883_v51, %v2046_v59  ;;  %v2635_v34 = vmul.f32 %v6872_v55, %v2010_v43  ;;  %v2745_v36 = vmul.f32 %v4544_v60, %v5466_v63  ;;  %v1959_v43 = vld [vmem:[#allocation2 + $0x56] sm:$0xff] }
 0x2e8   : > { %v2540_v22 = vadd.f32 %v2524_v9, %v2503_v30  ;;  %v2319_v49 = vadd.f32 %v2303_v39, %v2282_v1  ;;  %v2782_v61 = vmul.f32 %v4650_v2, %v5476_v16  ;;  %v1823_v18 = vmul.f32 %v4562_v50, %v5545_v24 }
 0x2e9   : > { %v1787_v14 = vadd.f32 %v1771_v41, %v1719_v35  ;;  %v5568_v59 = vmul.f32 %v6750_v17, %v5485_v58  ;;  %v5572_v63 = vmul.f32 %v6752_v25, %v5495_v33  ;;  %v2119_v39 = vmul.f32 %v4489_v37, %v5528_v48  ;;  %v2011_v35 = vld [vmem:[#allocation2 + $0x57] sm:$0xff] }
 0x2ea   : > { %v2577_v3 = vadd.f32 %v2561_v57, %v2540_v22  ;;  %v2356_v16 = vadd.f32 %v2340_v56, %v2319_v49  ;;  %v2761_v5 = vadd.f32 %v2745_v36, %v2724_v31  ;;  %v1875_v9 = vmul.f32 %v4572_v28, %v5558_v11  ;;  %v6884_v41 = vld [vmem:[#allocation100_spill] sm:$0xff] }
 0x2eb   : > { %v1839_v30 = vadd.f32 %v1823_v18, %v1787_v14  ;;  %v1927_v58 = vmul.f32 %v4575_v4, %v5564_v42  ;;  %v2135_v1 = vadd.f32 %v2119_v39, %v2098_v62  ;;  %v2156_v33 = vmul.f32 %v4513_v29, %v5534_v23  ;;  %v6885_v39 = vld [vmem:[#allocation51_spill] sm:$0xff] }
 0x2ec   : > { %v2614_v57 = vadd.f32 %v2598_v6, %v2577_v3  ;;  %v2393_v51 = vadd.f32 %v6884_v41, %v2356_v16  ;;  %v1979_v50 = vmul.f32 %v4578_v8, %v1959_v43  ;;  %v2414_v56 = vmul.f32 %v4493_v0, %v5528_v48 }
 0x2ed   : > { %v1891_v22 = vadd.f32 %v1875_v9, %v1839_v30  ;;  %v2031_v36 = vmul.f32 %v6795_v13, %v2011_v35  ;;  %v2172_v49 = vadd.f32 %v2156_v33, %v2135_v1  ;;  %v2193_v6 = vmul.f32 %v4585_v10, %v5545_v24 }
 0x2ee   : > { %v2651_v31 = vadd.f32 %v2635_v34, %v2614_v57  ;;  %v5589_v14 = vadd.f32 %v2782_v61, %v2761_v5  ;;  %v2430_v18 = vadd.f32 %v2414_v56, %v2393_v51  ;;  %v2451_v3 = vmul.f32 %v4525_v38, %v5534_v23 }
 0x2ef   : > { %v1943_v62 = vadd.f32 %v1927_v58, %v1891_v22  ;;  %v2209_v30 = vadd.f32 %v2193_v6, %v2172_v49  ;;  %v2230_v9 = vmul.f32 %v4592_v19, %v5558_v11  ;;  %v2267_v34 = vmul.f32 %v6797_v21, %v5564_v42  ;;  %v6886_v49 = vld [vmem:[#allocation102_spill] sm:$0xff] }
 0x2f0   : > { %v2688_v16 = vadd.f32 %v6885_v39, %v2651_v31  ;;  %v2304_v57 = vmul.f32 %v6798_v15, %v1959_v43  ;;  %v2341_v1 = vmul.f32 %v6799_v46, %v2011_v35  ;;  %v2467_v61 = vadd.f32 %v2451_v3, %v2430_v18  ;;  %v6887_v39 = vld [vmem:[#allocation98_spill] sm:$0xff] }
 0x2f1   : > { %v2488_v5 = vmul.f32 %v4611_v53, %v5545_v24  ;;  %v1995_v58 = vadd.f32 %v1979_v50, %v1943_v62  ;;  %v2246_v33 = vadd.f32 %v2230_v9, %v2209_v30  ;;  %v2525_v41 = vmul.f32 %v6866_v20, %v5558_v11  ;;  %v6888_v50 = vld [vmem:[#allocation67_spill] sm:$0xff]  ;;  %v1651_v62 = vpop.f32.mrb[6].mxu1 }
 0x2f2   : > { %v2709_v51 = vmul.f32 %v6864_v27, %v5528_v48  ;;  %v2562_v56 = vmul.f32 %v6870_v47, %v5564_v42  ;;  %v2599_v31 = vmul.f32 %v6871_v32, %v1959_v43  ;;  %v1078_v6 = vadd.f32 1.0, %v6886_v49  ;;  %v6889_v43 = vld [vmem:[#allocation65_spill] sm:$0xff] }
 0x2f3   : > { %v2504_v22 = vadd.f32 %v2488_v5, %v2467_v61  ;;  %v2283_v18 = vadd.f32 %v2267_v34, %v2246_v33  ;;  %v1079_v53 = vadd.f32 1.0, %v6887_v39  ;;  %3712 = vpow2.f32 %v6888_v50  ;;  %v1653_v61 = vpop.f32.mrb[7].mxu1  ;;  %v6898_v50 = vld [vmem:[#allocation53_spill] sm:$0xff] }
 0x2f4   : > { %v2725_v3 = vadd.f32 %v2709_v51, %v2688_v16  ;;  %v2636_v9 = vmul.f32 %v6872_v55, %v2011_v35  ;;  %v2746_v48 = vmul.f32 %v4544_v60, %v5534_v23  ;;  %3714 = vrcp.f32 %v1078_v6  ;;  %v6890_v35 = vld [vmem:[#allocation63_spill] sm:$0xff] }
 0x2f5   : > { %v2541_v30 = vadd.f32 %v2525_v41, %v2504_v22  ;;  %v2047_v5 = vadd.f32 %v2031_v36, %v1995_v58  ;;  %v2320_v27 = vadd.f32 %v2304_v57, %v2283_v18  ;;  %3716 = vrcp.f32 %v1079_v53  ;;  %v6891_v41 = vld [vmem:[#allocation15_spill] sm:$0xff] }
 0x2f6   : > { %v3378_v49 = vmul.f32 -1.442695, %v6889_v43  ;;  %v2783_v34 = vmul.f32 %v4650_v2, %v5545_v24  ;;  %v5620_v33 = vmul.f32 %v6750_v17, %v5558_v11  ;;  %vm1176_vm11 = vcmp.lt.s32.totalorder %v6890_v35, 300  ;;  %v6892_v23 = vld [vmem:[#allocation103_spill] sm:$0xff]  ;;  %v1521_v24 = vld [vmem:[%s6544_s6] sm:$0x3] }
 0x2f7   : > { %v2578_v16 = vadd.f32 %v2562_v56, %v2541_v30  ;;  %v1014_v51 = vadd.f32 %v6892_v23, %v6891_v41  ;;  %v2357_v22 = vadd.f32 %v2341_v1, %v2320_v27  ;;  %v2762_v36 = vadd.f32 %v2746_v48, %v2725_v3  ;;  %v6893_v57 = vld [vmem:[#allocation55_spill] sm:$0xff]  ;;  %v6894_v56 = vld [vmem:[#allocation13_spill] sm:$0xff]  ;;  %v6896_v27 = vld [vmem:[#allocation32_spill] sm:$0xff] }
 0x2f8   : > { %v5627_v53 = vmul.f32 %v6752_v25, %v5564_v42  ;;  %vm1177_vm12 = vcmp.lt.s32.totalorder %v6893_v57, 300  ;;  %3718 = vpow2.f32 %v3378_v49  ;;  %v1147_v6 = vadd.s32 112, %v6894_v56  ;;  %v6895_v18 = vld [vmem:[#allocation107_spill] sm:$0xff]  ;;  %v6897_v1 = vld [vmem:[#allocation33_spill] sm:$0xff]  ;;  %v6938_v35 = vld [vmem:[#allocation82_spill] sm:$0xff] }
 0x2f9   : > { %v2615_v11 = vadd.f32 %v2599_v31, %v2578_v16  ;;  %v3379_v58 = vmul.f32 -1.442695, %v1014_v51  ;;  %v1018_v39 = vadd.f32 %v6895_v18, %v6891_v41  ;;  %v5641_v42 = vadd.f32 %v6896_v27, %v2047_v5  ;;  %v6899_v30 = vld [vmem:[#allocation17_spill] sm:$0xff]  ;;  %v6901_v16 = vld [vmem:[#allocation16_spill] sm:$0xff]  ;;  %v6904_v5 = vld [vmem:[#allocation14_spill] sm:$0xff] }
 0x2fa   : > { %v5644_v3 = vadd.f32 %v6897_v1, %v2357_v22  ;;  %v5648_v48 = vadd.s32 %v6899_v30, %v6898_v50  ;;  %v1148_v31 = vadd.s32 120, %v6894_v56  ;;  %v1526_v41 = vrot.slane %v1521_v24, %v6901_v16  ;;  %v6902_v51 = vld [vmem:[#allocation101_spill] sm:$0xff]  ;;  %v6905_v1 = vld [vmem:[#allocation59_spill] sm:$0xff] }
 0x2fb   : > { %v2652_v43 = vadd.f32 %v2636_v9, %v2615_v11  ;;  %3720 = vpow2.f32 %v3379_v58  ;;  %v3380_v49 = vmul.f32 -1.442695, %v1018_v39  ;;  %v2799_v23 = vadd.f32 %v2783_v34, %v2762_v36  ;;  %v6908_v9 = vld [vmem:[#allocation106_spill] sm:$0xff]  ;;  %v3740_v36 = vld [vmem:[%s6545_s7 + $0x18] sm:$0x7f] }
 0x2fc   : > { %6900 = vst [vmem:[#allocation70_spill] sm:$0xff] %v5648_v48  ;;  %v5654_v18 = vadd.s32 %v6899_v30, %v6902_v51  ;;  %v1530_v27 = vrot.slane %v1521_v24, %v6904_v5  ;;  %v1671_v22 = vstv %s5638_s30  ;;  %v5662_v50 = vadd.s32 %v6899_v30, %v1147_v6  ;;  %v6907_v48 = vld [vmem:[#allocation18_spill] sm:$0xff]  ;;  %v6915_v51 = vld [vmem:[#allocation27_spill] sm:$0xff]  ;;  %s3441_s30 = sshll.u32 %s3154_s29, 6  ;;  %s3761_s29 = sshll.u32 %s3886_s28, 4  ;;  %s3762_s29 = int_to_ptr.vmem [resolvable:$false] %s3761_s29 }
 0x2fd   : > { %v5659_v25 = vadd.f32 %v6905_v1, %v2652_v43  ;;  %v5666_v11 = vadd.f32 %v6908_v9, %v6907_v48  ;;  %3722 = vpow2.f32 %v3380_v49  ;;  %v3713_v58 = vpop.eup %3712  ;;  %v5669_v34 = vadd.s32 %v6899_v30, %v1148_v31  ;;  %v6911_v24 = vld [vmem:[#allocation26_spill] sm:$0xff]  ;;  %s6413_s21 = scalar_lea.hbm %s6547_s9, %s3441_s30  ;;  %s3763_s25 = scalar_lea.vmem %s3762_s29, 2048 }
 0x2fe   : > { %6903 = vst [vmem:[#allocation71_spill] sm:$0xff] %v5654_v18  ;;  %6906 = vst [vmem:[#allocation73_spill] sm:$0xff] %v5662_v50  ;;  %v5675_v39 = vrot.slane %v3740_v36, %v6911_v24  ;;  %v5678_v43 = vadd.f32 %v5547_v54, %v1526_v41  ;;  %v1650_v6 = vadd.f32 %v5552_v12, %v1530_v27  ;;  %v3715_v16 = vpop.eup %3714  ;;  %v1080_v48 = vadd.f32 1.0, %v3713_v58  ;;  %v6917_v1 = vld [vmem:[#allocation66_spill] sm:$0xff]  ;;  %v6918_v24 = vld [vmem:[#allocation88_spill] sm:$0xff]  ;;  %p3764_p10 = scmp.lt.s32.totalorder %s6406_s12, %s3762_s29  ;;  %p3765_p11 = scmp.lt.s32.totalorder %s3763_s25, %s3757_s22 }
 0x2ff   : > { %6909 = vst [vmem:[#allocation54_spill] sm:$0xff] %v5666_v11  ;;  %6910 = vst [vmem:[#allocation57_spill] sm:$0xff] %v5669_v34  ;;  %v5682_v49 = vadd.s32 %v1671_v22, %v6894_v56  ;;  %v5685_v30 = vrot.slane %v3740_v36, %v6915_v51  ;;  %v1654_v31 = vadd.f32 %v1653_v61, %v1530_v27  ;;  %v3717_v5 = vpop.eup %3716  ;;  %v6919_v54 = vld [vmem:[#allocation69_spill] sm:$0xff]  ;;  %v6921_v12 = vld [vmem:[#allocation56_spill] sm:$0xff] }
 0x300   : > { %6912 = vst [vmem:[#allocation74_spill] sm:$0xff] %v5675_v39  ;;  %6913 = vst [vmem:[#allocation37_spill] sm:$0xff] %v5678_v43  ;;  %v1126_v9 = vmul.f32 %v3715_v16, %v6917_v1  ;;  %v3419_v11 = vmul.f32 -1.442695, %v1650_v6  ;;  %v2497_v39 = vadd.f32 %v6918_v24, %v5439_v26  ;;  %v6920_v43 = vld [vmem:[#allocation80_spill] sm:$0xff]  ;;  %v1127_v50 = vmul.f32 %v3717_v5, %v6921_v12  ;;  %v6925_v27 = vld [vmem:[#allocation89_spill] sm:$0xff]  ;;  %p3766_p12 = por %p3765_p11, %p3764_p10 }
 0x301   : > { %6914 = vst [vmem:[#allocation34_spill] sm:$0xff] %v5682_v49  ;;  %6916 = vst [vmem:[#allocation75_spill] sm:$0xff] %v5685_v30  ;;  %v2644_v34 = vadd.f32 %v6920_v43, %v6919_v54  ;;  %v5693_v58 = vadd.f32 %v1651_v62, %v1526_v41  ;;  %v3420_v56 = vmul.f32 -1.442695, %v1654_v31  ;;  %v6923_v49 = vld [vmem:[#allocation22_spill] sm:$0xff]  ;;  %3724 = vrcp.f32 %v1080_v48  ;;  %v6927_v51 = vld [vmem:[#allocation24_spill] sm:$0xff] }
 0x302   : > { %v5696_v18 = vadd.s32 %v1671_v22, %v6923_v49  ;;  %v3719_v36 = vpop.eup %3718  ;;  %v1224_v61 = vsel %vm1176_vm11, %v1126_v9, 0.0  ;;  %v2534_v6 = vadd.f32 %v6925_v27, %v2497_v39  ;;  %v6926_v16 = vld [vmem:[#allocation58_spill] sm:$0xff]  ;;  %v6928_v5 = vld [vmem:[#allocation25_spill] sm:$0xff]  ;;  %v1225_v41 = vsel %vm1177_vm12, %v1127_v50, 0.0  ;;  %v6935_v50 = vld [vmem:[#allocation35_spill] sm:$0xff]  ;;  %p3767_p13 = pnand %p3766_p12, %p3760_p9 }
 0x303   : > { %6922 = vst [vmem:[#allocation38_spill] sm:$0xff] %v5693_v58  ;;  %v2681_v26 = vadd.f32 %v6926_v16, %v2644_v34  ;;  %1240 = vst [vmem:[#allocation2 + $0x60] sm:$0xff] %v1224_v61  ;;  %v5703_v43 = vmul.f32 %v6927_v51, %v1224_v61  ;;  %v5706_v62 = vmul.f32 %v6928_v5, %v1224_v61  ;;  %3726 = vpow2.f32 %v3419_v11  ;;  %v6929_v22 = vld [vmem:[#allocation29_spill] sm:$0xff]  ;;  %v6932_v1 = vld [vmem:[#allocation90_spill] sm:$0xff] }
 0x304   : > { %6924 = vst [vmem:[#allocation41_spill] sm:$0xff] %v5696_v18  ;;  %v5711_v49 = vmul.f32 %v6929_v22, %v1224_v61  ;;  %1241 = vst [vmem:[#allocation2 + $0x68] sm:$0xff] %v1225_v41  ;;  %v5714_v48 = vmul.f32 %v6927_v51, %v1225_v41  ;;  %v5717_v34 = vmul.f32 %v6928_v5, %v1225_v41  ;;  %v1081_v39 = vadd.f32 1.0, %v3719_v36  ;;  %v6933_v24 = vld [vmem:[#allocation93_spill] sm:$0xff]  ;;  %v6937_v16 = vld [vmem:[#allocation108_spill] sm:$0xff] }
 0x305   : > { %v3721_v31 = vpop.eup %3720  ;;  %3728 = vpow2.f32 %v3420_v56  ;;  %v2571_v9 = vadd.f32 %v6932_v1, %v2534_v6  ;;  %v2718_v54 = vadd.f32 %v6933_v24, %v2681_v26  ;;  %v6934_v12 = vld [vmem:[#allocation105_spill] sm:$0xff]  ;;  %v6941_v5 = vld [vmem:[#allocation94_spill] sm:$0xff]  ;;  %v2834_v6 = vadd.f32 %v5499_v52, %v5520_v7  ;;  %v6943_v24 = vld [vmem:[#allocation92_spill] sm:$0xff] }
 0x306   : > { %6930 = vst [vmem:[#allocation76_spill] sm:$0xff] %v5714_v48  ;;  %6931 = vst [vmem:[#allocation86_spill] sm:$0xff] %v5717_v34  ;;  %v2831_v11 = vadd.f32 %v6935_v50, %v6934_v12  ;;  %3730 = vrcp.f32 %v1081_v39  ;;  %v1082_v61 = vadd.f32 1.0, %v3721_v31  ;;  %v6936_v27 = vld [vmem:[#allocation81_spill] sm:$0xff]  ;;  %v6940_v34 = vld [vmem:[#allocation91_spill] sm:$0xff]  ;;  %v2835_v26 = vadd.f32 %v5568_v59, %v5589_v14 }
 0x307   : > { %v2832_v57 = vadd.f32 %v6937_v16, %v6936_v27  ;;  %v6939_v30 = vld [vmem:[#allocation97_spill] sm:$0xff]  ;;  %v3723_v18 = vpop.eup %3722  ;;  %v2608_v36 = vadd.f32 %v6940_v34, %v2571_v9  ;;  %v2755_v56 = vadd.f32 %v6941_v5, %v2718_v54  ;;  %v5734_v39 = vmul.f32 %v6929_v22, %v1225_v41  ;;  %v6947_v5 = vld [vmem:[#allocation104_spill] sm:$0xff] }
 0x308   : > { %v2833_v58 = vadd.f32 %v6939_v30, %v6938_v35  ;;  %3732 = vrcp.f32 %v1082_v61  ;;  %v1083_v31 = vadd.f32 1.0, %v3723_v18  ;;  %v2836_v1 = vadd.f32 %v5620_v33, %v2799_v23  ;;  %v6945_v30 = vld [vmem:[#allocation95_spill] sm:$0xff]  ;;  %v6949_v52 = vld [vmem:[#allocation64_spill] sm:$0xff] }
 0x309   : > { %6942 = vst [vmem:[#allocation77_spill] sm:$0xff] %v5734_v39  ;;  %v5738_v35 = vadd.f32 %v6943_v24, %v2608_v36  ;;  %v5741_v34 = vadd.f32 %v6945_v30, %v2755_v56  ;;  %v5744_v9 = vadd.f32 %v6947_v5, %v2831_v11  ;;  %v5747_v7 = vadd.f32 %v6949_v52, %v2832_v57  ;;  %v6951_v54 = vld [vmem:[#allocation72_spill] sm:$0xff] }
 0x30a   : > { %v1700_v59 = vld [vmem:[#allocation2 + $0x59] sm:$0xff]  ;;  %3734 = vrcp.f32 %v1083_v31  ;;  %v5750_v18 = vadd.f32 %v6951_v54, %v2833_v58  ;;  %v5753_v33 = vadd.f32 %v5507_v40, %v2834_v6  ;;  %v5756_v23 = vadd.f32 %v5572_v63, %v2835_v26  ;;  %v6958_v40 = vld [vmem:[#allocation30_spill] sm:$0xff] }
 0x30b   : > { %6944 = vst [vmem:[#allocation87_spill] sm:$0xff] %v5738_v35  ;;  %6946 = vst [vmem:[#allocation78_spill] sm:$0xff] %v5741_v34  ;;  %v1752_v14 = vld [vmem:[#allocation2 + $0x5a] sm:$0xff]  ;;  %v1720_v12 = vmul.f32 %v6783_v45, %v1700_v59  ;;  %v2120_v27 = vmul.f32 %v4489_v37, %v1700_v59  ;;  %v5764_v16 = vadd.f32 %v5627_v53, %v2836_v1  ;;  %v5766_v58 = vpop.eup %3724 }
 0x30c   : > { %6948 = vst [vmem:[#allocation79_spill] sm:$0xff] %v5744_v9  ;;  %6950 = vst [vmem:[#allocation50_spill] sm:$0xff] %v5747_v7  ;;  %v1804_v41 = vld [vmem:[#allocation2 + $0x5b] sm:$0xff]  ;;  %v1772_v50 = vmul.f32 %v4507_v44, %v1752_v14  ;;  %v2157_v30 = vmul.f32 %v4513_v29, %v1752_v14 }
 0x30d   : > { %6952 = vst [vmem:[#allocation100_spill] sm:$0xff] %v5750_v18  ;;  %6953 = vst [vmem:[#allocation51_spill] sm:$0xff] %v5753_v33  ;;  %v1856_v11 = vld [vmem:[#allocation2 + $0x5c] sm:$0xff]  ;;  %v1824_v36 = vmul.f32 %v6958_v40, %v1804_v41  ;;  %v5775_v31 = vpop.eup %3726  ;;  %v2136_v1 = vadd.f32 %v2120_v27, %v5641_v42  ;;  %v2194_v5 = vmul.f32 %v4585_v10, %v1804_v41 }
 0x30e   : > { %6954 = vst [vmem:[#allocation102_spill] sm:$0xff] %v5756_v23  ;;  %v1908_v57 = vld [vmem:[#allocation2 + $0x5d] sm:$0xff]  ;;  %6956 = vst [vmem:[#allocation67_spill] sm:$0xff] %v5764_v16  ;;  %v1876_v63 = vmul.f32 %v4572_v28, %v1856_v11  ;;  %v1788_v24 = vadd.f32 %v1772_v50, %v1720_v12  ;;  %v2231_v52 = vmul.f32 %v4592_v19, %v1856_v11 }
 0x30f   : > { %v5760_v61 = vld [vmem:[#allocation2 + $0x5e] sm:$0xff]  ;;  %6957 = vst [vmem:[#allocation65_spill] sm:$0xff] %v5766_v58  ;;  %v1928_v56 = vmul.f32 %v4575_v4, %v1908_v57  ;;  %6960 = vst [vmem:[#allocation103_spill] sm:$0xff] %v5775_v31  ;;  %v2268_v54 = vmul.f32 %v6797_v21, %v1908_v57  ;;  %v5786_v23 = vpop.eup %3728  ;;  %v2173_v12 = vadd.f32 %v2157_v30, %v2136_v1 }
 0x310   : > { %6955 = vst [vmem:[#allocation98_spill] sm:$0xff] %v5760_v61  ;;  %v1980_v6 = vmul.f32 %v4578_v8, %v5760_v61  ;;  %v5773_v26 = vld [vmem:[#allocation2 + $0x5f] sm:$0xff]  ;;  %v2305_v16 = vmul.f32 %v6798_v15, %v5760_v61  ;;  %6961 = vst [vmem:[#allocation13_spill] sm:$0xff] %v5786_v23  ;;  %v1840_v33 = vadd.f32 %v1824_v36, %v1788_v24  ;;  %v5791_v27 = vpop.eup %3730 }
 0x311   : > { %6959 = vst [vmem:[#allocation15_spill] sm:$0xff] %v5773_v26  ;;  %v2032_v53 = vmul.f32 %v6795_v13, %v5773_v26  ;;  %v2342_v50 = vmul.f32 %v6799_v46, %v5773_v26  ;;  %v2415_v42 = vmul.f32 %v4493_v0, %v1700_v59  ;;  %6962 = vst [vmem:[#allocation107_spill] sm:$0xff] %v5791_v27  ;;  %v6963_v7 = vld [vmem:[#allocation36_spill] sm:$0xff] }
 0x312   : > { %v2452_v18 = vmul.f32 %v4525_v38, %v1752_v14  ;;  %v2489_v9 = vmul.f32 %v6963_v7, %v1804_v41  ;;  %v2526_v39 = vmul.f32 %v6866_v20, %v1856_v11  ;;  %v2563_v34 = vmul.f32 %v6870_v47, %v1908_v57  ;;  %v5800_v1 = vld [vmem:[#allocation2 + $0x61] sm:$0xff]  ;;  %v5804_v23 = vpop.eup %3732 }
 0x313   : > { %v1892_v35 = vadd.f32 %v1876_v63, %v1840_v33  ;;  %v2210_v31 = vadd.f32 %v2194_v5, %v2173_v12  ;;  %v2431_v36 = vadd.f32 %v2415_v42, %v5644_v3  ;;  %v2600_v24 = vmul.f32 %v6871_v32, %v5760_v61  ;;  %v5802_v30 = vld [vmem:[#allocation2 + $0x62] sm:$0xff]  ;;  %6964 = vst [vmem:[#allocation32_spill] sm:$0xff] %v5804_v23 }
 0x314   : > { %v2637_v22 = vmul.f32 %v6872_v55, %v5773_v26  ;;  %v6965_v51 = vld [vmem:[#allocation20_spill] sm:$0xff]  ;;  %v2747_v27 = vmul.f32 %v4544_v60, %v1752_v14  ;;  %v2784_v33 = vmul.f32 %v4650_v2, %v1804_v41  ;;  %v5814_v42 = vmul.f32 %v6750_v17, %v1856_v11  ;;  %v5816_v61 = vld [vmem:[#allocation2 + $0x64] sm:$0xff]  ;;  %v5820_v58 = vpop.eup %3734  ;;  %v6967_v26 = vld [vmem:[#allocation43_spill] sm:$0xff] }
 0x315   : > { %v2710_v48 = vmul.f32 %v6965_v51, %v1700_v59  ;;  %v5811_v63 = vld [vmem:[#allocation2 + $0x63] sm:$0xff]  ;;  %v1944_v3 = vadd.f32 %v1928_v56, %v1892_v35  ;;  %v2247_v5 = vadd.f32 %v2231_v52, %v2210_v31  ;;  %v2468_v12 = vadd.f32 %v2452_v18, %v2431_v36 }
 0x316   : > { %6966 = vst [vmem:[#allocation33_spill] sm:$0xff] %v5814_v42  ;;  %v5818_v23 = vld [vmem:[#allocation2 + $0x65] sm:$0xff]  ;;  %v5824_v14 = vmul.f32 %v6967_v26, %v1908_v57  ;;  %v1721_v41 = vmul.f32 %v6783_v45, %v5800_v1  ;;  %v1773_v35 = vmul.f32 %v4507_v44, %v5802_v30  ;;  %v1825_v52 = vmul.f32 %v6958_v40, %v5811_v63 }
 0x317   : > { %v2726_v59 = vadd.f32 %v2710_v48, %v5659_v25  ;;  %v5830_v18 = vld [vmem:[#allocation2 + $0x66] sm:$0xff]  ;;  %v1996_v11 = vadd.f32 %v1980_v6, %v1944_v3  ;;  %v2284_v56 = vadd.f32 %v2268_v54, %v2247_v5  ;;  %v2505_v31 = vadd.f32 %v2489_v9, %v2468_v12 }
 0x318   : > { %6968 = vst [vmem:[#allocation53_spill] sm:$0xff] %v5824_v14  ;;  %6969 = vst [vmem:[#allocation17_spill] sm:$0xff] %v5830_v18  ;;  %v5834_v36 = vld [vmem:[#allocation2 + $0x67] sm:$0xff]  ;;  %v1789_v48 = vadd.f32 %v1773_v35, %v1721_v41  ;;  %v1877_v57 = vmul.f32 %v4572_v28, %v5816_v61  ;;  %v1929_v14 = vmul.f32 %v4575_v4, %v5818_v23 }
 0x319   : > { %6970 = vst [vmem:[#allocation16_spill] sm:$0xff] %v5834_v36  ;;  %v2763_v25 = vadd.f32 %v2747_v27, %v2726_v59  ;;  %v2048_v45 = vadd.f32 %v2032_v53, %v1996_v11  ;;  %v2321_v44 = vadd.f32 %v2305_v16, %v2284_v56  ;;  %v2542_v42 = vadd.f32 %v2526_v39, %v2505_v31  ;;  %v6971_v5 = vld [vmem:[#allocation70_spill] sm:$0xff]  ;;  %v6972_v11 = vld [vmem:[#allocation71_spill] sm:$0xff]  ;;  %v6973_v56 = vld [vmem:[#allocation73_spill] sm:$0xff] }
 0x31a   : > { %v1981_v6 = vmul.f32 %v4578_v8, %v5830_v18  ;;  %v1841_v54 = vadd.f32 %v1825_v52, %v1789_v48  ;;  %v2033_v3 = vmul.f32 %v6795_v13, %v5834_v36  ;;  %v2121_v27 = vmul.f32 %v4489_v37, %v5800_v1 }
 0x31b   : > { %v5842_v9 = vadd.f32 %v2784_v33, %v2763_v25  ;;  %vm1178_vm13 = vcmp.lt.s32.totalorder %v6971_v5, 300  ;;  %v2100_v12 = vadd.f32 %v5703_v43, %v2048_v45  ;;  %v2358_v59 = vadd.f32 %v2342_v50, %v2321_v44 }
 0x31c   : > { %v2579_v53 = vadd.f32 %v2563_v34, %v2542_v42  ;;  %v2158_v39 = vmul.f32 %v4513_v29, %v5802_v30  ;;  %v1893_v16 = vadd.f32 %v1877_v57, %v1841_v54  ;;  %v2195_v33 = vmul.f32 %v4585_v10, %v5811_v63  ;;  %v6974_v57 = vld [vmem:[#allocation57_spill] sm:$0xff] }
 0x31d   : > { %v2232_v41 = vmul.f32 %v4592_v19, %v5816_v61  ;;  %v2269_v35 = vmul.f32 %v6797_v21, %v5818_v23  ;;  %vm1179_vm14 = vcmp.lt.s32.totalorder %v6972_v11, 300  ;;  %vm6657_vm15 = vcmp.lt.s32.totalorder %v6973_v56, 300 }
 0x31e   : > { %v2395_v44 = vadd.f32 %v5706_v62, %v2358_v59  ;;  %v2616_v45 = vadd.f32 %v2600_v24, %v2579_v53  ;;  %v2137_v43 = vadd.f32 %v2121_v27, %v2100_v12  ;;  %v2306_v34 = vmul.f32 %v6798_v15, %v5830_v18 }
 0x31f   : > { %v1945_v50 = vadd.f32 %v1929_v14, %v1893_v16  ;;  %v2343_v42 = vmul.f32 %v6799_v46, %v5834_v36  ;;  %v2416_v31 = vmul.f32 %v4493_v0, %v5800_v1  ;;  %v2453_v52 = vmul.f32 %v4525_v38, %v5802_v30 }
 0x320   : > { %v2653_v25 = vadd.f32 %v2637_v22, %v2616_v45  ;;  %v2174_v48 = vadd.f32 %v2158_v39, %v2137_v43  ;;  %v2490_v62 = vmul.f32 %v6963_v7, %v5811_v63  ;;  %v2527_v24 = vmul.f32 %v6866_v20, %v5816_v61 }
 0x321   : > { %vm6656_vm6 = vcmp.lt.s32.totalorder %v6974_v57, 300  ;;  %v1997_v14 = vadd.f32 %v1981_v6, %v1945_v50  ;;  %v2432_v54 = vadd.f32 %v2416_v31, %v2395_v44  ;;  %v2564_v27 = vmul.f32 %v6870_v47, %v5818_v23  ;;  %v6976_v31 = vld [vmem:[#allocation65_spill] sm:$0xff] }
 0x322   : > { %v2601_v12 = vmul.f32 %v6871_v32, %v5830_v18  ;;  %v2690_v59 = vadd.f32 %v5711_v49, %v2653_v25  ;;  %v2211_v22 = vadd.f32 %v2195_v33, %v2174_v48  ;;  %v2638_v53 = vmul.f32 %v6872_v55, %v5834_v36  ;;  %v6975_v33 = vld [vmem:[#allocation84_spill] sm:$0xff] }
 0x323   : > { %v2711_v39 = vmul.f32 %v6965_v51, %v5800_v1  ;;  %v2049_v16 = vadd.f32 %v2033_v3, %v1997_v14  ;;  %v2469_v45 = vadd.f32 %v2453_v52, %v2432_v54  ;;  %v2748_v6 = vmul.f32 %v4544_v60, %v5802_v30  ;;  %v6978_v3 = vld [vmem:[#allocation60_spill] sm:$0xff]  ;;  %v6979_v52 = vld [vmem:[#allocation107_spill] sm:$0xff] }
 0x324   : > { %v2785_v44 = vmul.f32 %v4650_v2, %v5811_v63  ;;  %v2248_v43 = vadd.f32 %v2232_v41, %v2211_v22  ;;  %v2822_v49 = vmul.f32 %v6750_v17, %v5816_v61  ;;  %v1128_v25 = vmul.f32 %v6976_v31, %v6975_v33  ;;  %v6980_v30 = vld [vmem:[#allocation68_spill] sm:$0xff]  ;;  %v6982_v61 = vld [vmem:[#allocation54_spill] sm:$0xff]  ;;  %v6985_v31 = vld [vmem:[#allocation25_spill] sm:$0xff] }
 0x325   : > { %v2727_v50 = vadd.f32 %v2711_v39, %v2690_v59  ;;  %v2506_v48 = vadd.f32 %v2490_v62, %v2469_v45  ;;  %v5893_v1 = vmul.f32 %v6967_v26, %v5818_v23  ;;  %v1129_v14 = vmul.f32 %v6979_v52, %v6978_v3  ;;  %v6981_v54 = vld [vmem:[#allocation32_spill] sm:$0xff] }
 0x326   : > { %v1130_v36 = vmul.f32 %v6981_v54, %v6980_v30  ;;  %v2285_v63 = vadd.f32 %v2269_v35, %v2248_v43  ;;  %v1226_v59 = vsel %vm1178_vm13, %v1128_v25, 0.0  ;;  %v1131_v22 = vmul.f32 %v5820_v58, %v6982_v61  ;;  %v6983_v39 = vld [vmem:[#allocation76_spill] sm:$0xff]  ;;  %v6986_v30 = vld [vmem:[#allocation29_spill] sm:$0xff] }
 0x327   : > { %6977 = vst [vmem:[#allocation101_spill] sm:$0xff] %v5893_v1  ;;  %v2764_v41 = vadd.f32 %v2748_v6, %v2727_v50  ;;  %v2101_v62 = vadd.f32 %v6983_v39, %v2049_v16  ;;  %v2543_v45 = vadd.f32 %v2527_v24, %v2506_v48  ;;  %1242 = vst [vmem:[#allocation2 + $0x70] sm:$0xff] %v1226_v59  ;;  %v6984_v23 = vld [vmem:[#allocation24_spill] sm:$0xff]  ;;  %v1227_v6 = vsel %vm1179_vm14, %v1129_v14, 0.0 }
 0x328   : > { %v5905_v33 = vmul.f32 %v6984_v23, %v1226_v59  ;;  %v5908_v3 = vmul.f32 %v6985_v31, %v1226_v59  ;;  %v2322_v52 = vadd.f32 %v2306_v34, %v2285_v63  ;;  %v5911_v35 = vmul.f32 %v6986_v30, %v1226_v59  ;;  %1243 = vst [vmem:[#allocation2 + $0x78] sm:$0xff] %v1227_v6  ;;  %v6993_v63 = vld [vmem:[#allocation13_spill] sm:$0xff]  ;;  %v6994_v59 = vld [vmem:[#allocation86_spill] sm:$0xff] }
 0x329   : > { %v1228_v58 = vsel %vm6657_vm15, %v1130_v36, 0.0  ;;  %v2580_v43 = vadd.f32 %v2564_v27, %v2543_v45  ;;  %v2801_v16 = vadd.f32 %v2785_v44, %v2764_v41  ;;  %v5918_v24 = vmul.f32 %v6984_v23, %v1227_v6  ;;  %v6992_v44 = vld [vmem:[#allocation103_spill] sm:$0xff] }
 0x32a   : > { %v5921_v50 = vmul.f32 %v6985_v31, %v1227_v6  ;;  %1244 = vst [vmem:[#allocation2 + $0x80] sm:$0xff] %v1228_v58  ;;  %v2359_v34 = vadd.f32 %v2343_v42, %v2322_v52  ;;  %v5924_v25 = vmul.f32 %v6986_v30, %v1227_v6  ;;  %v5927_v48 = vmul.f32 %v6984_v23, %v1228_v58  ;;  %v6997_v45 = vld [vmem:[#allocation87_spill] sm:$0xff]  ;;  %v6998_v23 = vld [vmem:[#allocation62_spill] sm:$0xff] }
 0x32b   : > { %6987 = vst [vmem:[#allocation14_spill] sm:$0xff] %v5918_v24  ;;  %v5930_v14 = vmul.f32 %v6985_v31, %v1228_v58  ;;  %v2617_v36 = vadd.f32 %v2601_v12, %v2580_v43  ;;  %v1229_v27 = vsel %vm6656_vm6, %v1131_v22, 0.0  ;;  %v1662_v54 = vadd.f32 1.0, %v6992_v44  ;;  %v7000_v22 = vld [vmem:[#allocation78_spill] sm:$0xff] }
 0x32c   : > { %6988 = vst [vmem:[#allocation59_spill] sm:$0xff] %v5921_v50  ;;  %6989 = vst [vmem:[#allocation18_spill] sm:$0xff] %v5924_v25  ;;  %v1663_v41 = vadd.f32 1.0, %v6993_v63  ;;  %v2396_v61 = vadd.f32 %v6994_v59, %v2359_v34  ;;  %v5938_v42 = vmul.f32 %v6986_v30, %v1228_v58  ;;  %v5941_v39 = vmul.f32 %v6985_v31, %v1229_v27  ;;  %v7001_v43 = vld [vmem:[#allocation42_spill] sm:$0xff]  ;;  %v7003_v59 = vld [vmem:[#allocation48_spill] sm:$0xff] }
 0x32d   : > { %6990 = vst [vmem:[#allocation106_spill] sm:$0xff] %v5927_v48  ;;  %6991 = vst [vmem:[#allocation26_spill] sm:$0xff] %v5930_v14  ;;  %v2682_v52 = vadd.f32 %v6998_v23, %v6997_v45  ;;  %v2654_v12 = vadd.f32 %v2638_v53, %v2617_v36  ;;  %v5946_v6 = vmul.f32 %v6986_v30, %v1229_v27  ;;  %3736 = vrcp.f32 %v1662_v54  ;;  %v7005_v31 = vld [vmem:[#allocation33_spill] sm:$0xff]  ;;  %v7009_v54 = vld [vmem:[#allocation19_spill] sm:$0xff] }
 0x32e   : > { %6995 = vst [vmem:[#allocation27_spill] sm:$0xff] %v5938_v42  ;;  %1245 = vst [vmem:[#allocation2 + $0x88] sm:$0xff] %v1229_v27  ;;  %v5950_v44 = vadd.f32 %v7001_v43, %v7000_v22  ;;  %v1702_v34 = vld [vmem:[#allocation2 + $0x69] sm:$0xff]  ;;  %3738 = vrcp.f32 %v1663_v41  ;;  %v5957_v56 = vadd.f32 %v7005_v31, %v5842_v9  ;;  %v5959_v53 = vadd.f32 %v2822_v49, %v2801_v16  ;;  %v7010_v23 = vld [vmem:[#allocation23_spill] sm:$0xff] }
 0x32f   : > { %6996 = vst [vmem:[#allocation66_spill] sm:$0xff] %v5941_v39  ;;  %6999 = vst [vmem:[#allocation88_spill] sm:$0xff] %v5946_v6  ;;  %v1754_v63 = vld [vmem:[#allocation2 + $0x6a] sm:$0xff]  ;;  %v5953_v57 = vadd.f32 %v7003_v59, %v2682_v52  ;;  %v1722_v45 = vmul.f32 %v7009_v54, %v1702_v34  ;;  %v3741_v41 = vld [vmem:[#allocation2 + $0x1e] sm:$0xff] }
 0x330   : > { %7002 = vst [vmem:[#allocation69_spill] sm:$0xff] %v5950_v44  ;;  %v1806_v58 = vld [vmem:[#allocation2 + $0x6b] sm:$0xff]  ;;  %7006 = vst [vmem:[#allocation56_spill] sm:$0xff] %v5957_v56  ;;  %v1774_v22 = vmul.f32 %v7010_v23, %v1754_v63  ;;  %v2749_v50 = vmul.f32 %v4544_v60, %v1754_v63  ;;  %v6002_v24 = vld [vmem:[#allocation2 + $0x73] sm:$0xff] }
 0x331   : > { %7004 = vst [vmem:[#allocation80_spill] sm:$0xff] %v5953_v57  ;;  %7007 = vst [vmem:[#allocation22_spill] sm:$0xff] %v5959_v53  ;;  %v7008_v36 = vld [vmem:[#allocation77_spill] sm:$0xff]  ;;  %v1858_v43 = vld [vmem:[#allocation2 + $0x6c] sm:$0xff]  ;;  %v1826_v59 = vmul.f32 %v6958_v40, %v1806_v58  ;;  %v2196_v39 = vmul.f32 %v4585_v10, %v1806_v58 }
 0x332   : > { %v2691_v27 = vadd.f32 %v7008_v36, %v2654_v12  ;;  %v1910_v11 = vld [vmem:[#allocation2 + $0x6d] sm:$0xff]  ;;  %v1878_v9 = vmul.f32 %v4572_v28, %v1858_v43  ;;  %v2122_v12 = vmul.f32 %v4489_v37, %v1702_v34  ;;  %v1790_v31 = vadd.f32 %v1774_v22, %v1722_v45 }
 0x333   : > { %v5964_v5 = vld [vmem:[#allocation2 + $0x6e] sm:$0xff]  ;;  %v1930_v49 = vmul.f32 %v4575_v4, %v1910_v11  ;;  %v2233_v1 = vmul.f32 %v4592_v19, %v1858_v43  ;;  %v2270_v53 = vmul.f32 %v6797_v21, %v1910_v11  ;;  %v2417_v22 = vmul.f32 %v4493_v0, %v1702_v34 }
 0x334   : > { %7011 = vst [vmem:[#allocation89_spill] sm:$0xff] %v5964_v5  ;;  %v7012_v6 = vld [vmem:[#allocation74_spill] sm:$0xff]  ;;  %v1982_v36 = vmul.f32 %v4578_v8, %v5964_v5  ;;  %v1842_v56 = vadd.f32 %v1826_v59, %v1790_v31  ;;  %v2307_v44 = vmul.f32 %v6798_v15, %v5964_v5  ;;  %v2565_v14 = vmul.f32 %v6870_v47, %v1910_v11 }
 0x335   : > { %v5967_v52 = vmul.f32 %v3741_v41, %v7012_v6  ;;  %v5972_v16 = vld [vmem:[#allocation2 + $0x6f] sm:$0xff]  ;;  %v2159_v41 = vmul.f32 %v4513_v29, %v1754_v63  ;;  %v2454_v6 = vmul.f32 %v4525_v38, %v1754_v63  ;;  %v2433_v57 = vadd.f32 %v2417_v22, %v2396_v61 }
 0x336   : > { %7014 = vst [vmem:[#allocation90_spill] sm:$0xff] %v5972_v16  ;;  %v2034_v18 = vmul.f32 %v6795_v13, %v5972_v16  ;;  %v2344_v45 = vmul.f32 %v6799_v46, %v5972_v16  ;;  %v1894_v42 = vadd.f32 %v1878_v9, %v1842_v56  ;;  %v2602_v59 = vmul.f32 %v6871_v32, %v5964_v5  ;;  %v5994_v31 = vld [vmem:[#allocation2 + $0x71] sm:$0xff] }
 0x337   : > { %7013 = vst [vmem:[#allocation58_spill] sm:$0xff] %v5967_v52  ;;  %v2138_v52 = vadd.f32 %v2122_v12, %v2101_v62  ;;  %v2491_v62 = vmul.f32 %v6963_v7, %v1806_v58  ;;  %v2528_v12 = vmul.f32 %v6866_v20, %v1858_v43  ;;  %v5996_v48 = vld [vmem:[#allocation2 + $0x72] sm:$0xff]  ;;  %v6004_v56 = vpop.eup %3736  ;;  %v2470_v9 = vadd.f32 %v2454_v6, %v2433_v57 }
 0x338   : > { %7015 = vst [vmem:[#allocation93_spill] sm:$0xff] %v6004_v56  ;;  %v1946_v61 = vadd.f32 %v1930_v49, %v1894_v42  ;;  %v2786_v22 = vmul.f32 %v4650_v2, %v1806_v58  ;;  %v6008_v5 = vmul.f32 %v6750_v17, %v1858_v43  ;;  %v6010_v32 = vld [vmem:[#allocation2 + $0x74] sm:$0xff]  ;;  %v1775_v63 = vmul.f32 %v7010_v23, %v5996_v48 }
 0x339   : > { %v2175_v30 = vadd.f32 %v2159_v41, %v2138_v52  ;;  %v2639_v52 = vmul.f32 %v6872_v55, %v5972_v16  ;;  %v2712_v41 = vmul.f32 %v6965_v51, %v1702_v34  ;;  %v1723_v34 = vmul.f32 %v7009_v54, %v5994_v31  ;;  %v1911_v56 = vld [vmem:[#allocation2 + $0x75] sm:$0xff] }
 0x33a   : > { %7016 = vst [vmem:[#allocation105_spill] sm:$0xff] %v6008_v5  ;;  %v6018_v42 = vld [vmem:[#allocation2 + $0x76] sm:$0xff]  ;;  %v1998_v57 = vadd.f32 %v1982_v36, %v1946_v61  ;;  %v2507_v6 = vadd.f32 %v2491_v62, %v2470_v9  ;;  %v6021_v58 = vmul.f32 %v6967_v26, %v1910_v11  ;;  %v1827_v43 = vmul.f32 %v6958_v40, %v6002_v24 }
 0x33b   : > { %v2212_v25 = vadd.f32 %v2196_v39, %v2175_v30  ;;  %v6012_v30 = vpop.eup %3738  ;;  %v2728_v16 = vadd.f32 %v2712_v41, %v2691_v27  ;;  %v6025_v49 = vld [vmem:[#allocation2 + $0x77] sm:$0xff]  ;;  %v1791_v27 = vadd.f32 %v1775_v63, %v1723_v34  ;;  %v1879_v41 = vmul.f32 %v4572_v28, %v6010_v32 }
 0x33c   : > { %7017 = vst [vmem:[#allocation35_spill] sm:$0xff] %v6012_v30  ;;  %v2050_v5 = vadd.f32 %v2034_v18, %v1998_v57  ;;  %v2544_v30 = vadd.f32 %v2528_v12, %v2507_v6  ;;  %v1931_v23 = vmul.f32 %v4575_v4, %v1911_v56  ;;  %v1983_v36 = vmul.f32 %v4578_v8, %v6018_v42 }
 0x33d   : > { %v2249_v39 = vadd.f32 %v2233_v1, %v2212_v25  ;;  %v2765_v25 = vadd.f32 %v2749_v50, %v2728_v16  ;;  %v1843_v61 = vadd.f32 %v1827_v43, %v1791_v27  ;;  %v2035_v9 = vmul.f32 %v6795_v13, %v6025_v49 }
 0x33e   : > { %v2102_v50 = vadd.f32 %v5905_v33, %v2050_v5  ;;  %v2123_v16 = vmul.f32 %v4489_v37, %v5994_v31  ;;  %v2160_v18 = vmul.f32 %v4513_v29, %v5996_v48  ;;  %v2271_v57 = vmul.f32 %v6797_v21, %v1911_v56 }
 0x33f   : > { %v2286_v1 = vadd.f32 %v2270_v53, %v2249_v39  ;;  %v6032_v62 = vadd.f32 %v2786_v22, %v2765_v25  ;;  %v2581_v53 = vadd.f32 %v2565_v14, %v2544_v30  ;;  %v1895_v39 = vadd.f32 %v1879_v41, %v1843_v61  ;;  %v7018_v61 = vld [vmem:[#allocation39_spill] sm:$0xff] }
 0x340   : > { %v2234_v22 = vmul.f32 %v4592_v19, %v6010_v32  ;;  %v2139_v63 = vadd.f32 %v2123_v16, %v2102_v50  ;;  %v2308_v5 = vmul.f32 %v6798_v15, %v6018_v42  ;;  %v2418_v30 = vmul.f32 %v4493_v0, %v5994_v31  ;;  %v1756_v16 = vld [vmem:[#allocation2 + $0x7a] sm:$0xff] }
 0x341   : > { %v2323_v11 = vadd.f32 %v2307_v44, %v2286_v1  ;;  %v2197_v44 = vmul.f32 %v4585_v10, %v6002_v24  ;;  %v2618_v34 = vadd.f32 %v2602_v59, %v2581_v53  ;;  %v1947_v14 = vadd.f32 %v1931_v23, %v1895_v39  ;;  %v1704_v53 = vld [vmem:[#allocation2 + $0x79] sm:$0xff] }
 0x342   : > { %v2176_v43 = vadd.f32 %v2160_v18, %v2139_v63  ;;  %v2455_v59 = vmul.f32 %v4525_v38, %v5996_v48  ;;  %v2492_v1 = vmul.f32 %v6963_v7, %v6002_v24  ;;  %v2566_v23 = vmul.f32 %v6870_v47, %v1911_v56 }
 0x343   : > { %v2360_v12 = vadd.f32 %v2344_v45, %v2323_v11  ;;  %v2345_v45 = vmul.f32 %v6799_v46, %v6025_v49  ;;  %v2655_v6 = vadd.f32 %v2639_v52, %v2618_v34  ;;  %v1999_v25 = vadd.f32 %v1983_v36, %v1947_v14  ;;  %v1808_v34 = vld [vmem:[#allocation2 + $0x7b] sm:$0xff] }
 0x344   : > { %v2213_v11 = vadd.f32 %v2197_v44, %v2176_v43  ;;  %v2603_v52 = vmul.f32 %v7018_v61, %v6018_v42  ;;  %v2713_v50 = vmul.f32 %v6965_v51, %v5994_v31  ;;  %v2640_v36 = vmul.f32 %v6872_v55, %v6025_v49  ;;  %v1860_v31 = vld [vmem:[#allocation2 + $0x7c] sm:$0xff]  ;;  %v7019_v43 = vld [vmem:[#allocation23_spill] sm:$0xff] }
 0x345   : > { %v2397_v33 = vadd.f32 %v5908_v3, %v2360_v12  ;;  %v2529_v3 = vmul.f32 %v6866_v20, %v6010_v32  ;;  %v2692_v41 = vadd.f32 %v5911_v35, %v2655_v6  ;;  %v2051_v18 = vadd.f32 %v2035_v9, %v1999_v25  ;;  %v1912_v14 = vld [vmem:[#allocation2 + $0x7d] sm:$0xff] }
 0x346   : > { %v2750_v39 = vmul.f32 %v4544_v60, %v5996_v48  ;;  %v2250_v63 = vadd.f32 %v2234_v22, %v2213_v11  ;;  %v2787_v44 = vmul.f32 %v4650_v2, %v6002_v24  ;;  %v1724_v6 = vmul.f32 %v7009_v54, %v1704_v53  ;;  %v7020_v22 = vld [vmem:[#allocation14_spill] sm:$0xff] }
 0x347   : > { %v2434_v27 = vadd.f32 %v2418_v30, %v2397_v33  ;;  %v2729_v35 = vadd.f32 %v2713_v50, %v2692_v41  ;;  %v6073_v33 = vmul.f32 %v6750_v17, %v6010_v32  ;;  %v6076_v30 = vmul.f32 %v6967_v26, %v1911_v56  ;;  %v6084_v32 = vld [vmem:[#allocation2 + $0x7f] sm:$0xff] }
 0x348   : > { %v1776_v48 = vmul.f32 %v7019_v43, %v1756_v16  ;;  %v2103_v25 = vadd.f32 %v7020_v22, %v2051_v18  ;;  %v1828_v41 = vmul.f32 %v6958_v40, %v1808_v34  ;;  %7021 = vst [vmem:[#allocation81_spill] sm:$0xff] %v6084_v32  ;;  %v1932_v56 = vmul.f32 %v4575_v4, %v1912_v14 }
 0x349   : > { %v2471_v12 = vadd.f32 %v2455_v59, %v2434_v27  ;;  %v6080_v59 = vld [vmem:[#allocation2 + $0x7e] sm:$0xff]  ;;  %v2287_v27 = vadd.f32 %v2271_v57, %v2250_v63  ;;  %v2766_v24 = vadd.f32 %v2750_v39, %v2729_v35  ;;  %v2124_v18 = vmul.f32 %v4489_v37, %v1704_v53 }
 0x34a   : > { %v1792_v50 = vadd.f32 %v1776_v48, %v1724_v6  ;;  %v1984_v43 = vmul.f32 %v4578_v8, %v6080_v59  ;;  %v2036_v40 = vmul.f32 %v6795_v13, %v6084_v32  ;;  %v2235_v4 = vmul.f32 %v4592_v19, %v1860_v31 }
 0x34b   : > { %v2508_v9 = vadd.f32 %v2492_v1, %v2471_v12  ;;  %v1880_v1 = vmul.f32 %v4572_v28, %v1860_v31  ;;  %v2324_v12 = vadd.f32 %v2308_v5, %v2287_v27  ;;  %v6088_v54 = vadd.f32 %v2787_v44, %v2766_v24 }
 0x34c   : > { %v1844_v39 = vadd.f32 %v1828_v41, %v1792_v50  ;;  %v2140_v35 = vadd.f32 %v2124_v18, %v2103_v25  ;;  %v2198_v28 = vmul.f32 %v4585_v10, %v1808_v34  ;;  %v2309_v8 = vmul.f32 %v6798_v15, %v6080_v59 }
 0x34d   : > { %v2545_v11 = vadd.f32 %v2529_v3, %v2508_v9  ;;  %v2161_v3 = vmul.f32 %v4513_v29, %v1756_v16  ;;  %v2361_v63 = vadd.f32 %v2345_v45, %v2324_v12  ;;  %v2272_v9 = vmul.f32 %v6797_v21, %v1912_v14 }
 0x34e   : > { %v1896_v44 = vadd.f32 %v1880_v1, %v1844_v39  ;;  %v2346_v13 = vmul.f32 %v6799_v46, %v6084_v32  ;;  %v2419_v45 = vmul.f32 %v4493_v0, %v1704_v53  ;;  %v2456_v27 = vmul.f32 %v4525_v38, %v1756_v16  ;;  %v7023_v1 = vld [vmem:[#allocation18_spill] sm:$0xff] }
 0x34f   : > { %v2582_v57 = vadd.f32 %v2566_v23, %v2545_v11  ;;  %v7022_v23 = vld [vmem:[#allocation59_spill] sm:$0xff]  ;;  %v2177_v48 = vadd.f32 %v2161_v3, %v2140_v35  ;;  %v2530_v11 = vmul.f32 %v6866_v20, %v1860_v31  ;;  %v2567_v50 = vmul.f32 %v6870_v47, %v1912_v14 }
 0x350   : > { %v2398_v6 = vadd.f32 %v7022_v23, %v2361_v63  ;;  %v1948_v25 = vadd.f32 %v1932_v56, %v1896_v44  ;;  %v2714_v39 = vmul.f32 %v6965_v51, %v1704_v53  ;;  %v2641_v63 = vmul.f32 %v6872_v55, %v6084_v32 }
 0x351   : > { %v2619_v5 = vadd.f32 %v2603_v52, %v2582_v57  ;;  %v2493_v52 = vmul.f32 %v6963_v7, %v1808_v34  ;;  %v2214_v24 = vadd.f32 %v2198_v28, %v2177_v48  ;;  %v2604_v57 = vmul.f32 %v7018_v61, %v6080_v59  ;;  %v2142_v28 = vld [vmem:[#allocation2 + $0x82] sm:$0xff] }
 0x352   : > { %v2435_v41 = vadd.f32 %v2419_v45, %v2398_v6  ;;  %v2000_v18 = vadd.f32 %v1984_v43, %v1948_v25  ;;  %v2751_v35 = vmul.f32 %v4544_v60, %v1756_v16  ;;  %v2788_v6 = vmul.f32 %v4650_v2, %v1808_v34  ;;  %v2216_v48 = vld [vmem:[#allocation2 + $0x84] sm:$0xff]  ;;  %v7024_v16 = vld [vmem:[#allocation34_spill] sm:$0xff] }
 0x353   : > { %v2656_v22 = vadd.f32 %v2640_v36, %v2619_v5  ;;  %v2105_v36 = vld [vmem:[#allocation2 + $0x81] sm:$0xff]  ;;  %v2251_v56 = vadd.f32 %v2235_v4, %v2214_v24  ;;  %v2825_v43 = vmul.f32 %v6750_v17, %v1860_v31  ;;  %v6119_v4 = vmul.f32 %v6967_v26, %v1912_v14 }
 0x354   : > { %v2472_v3 = vadd.f32 %v2456_v27, %v2435_v41  ;;  %v2179_v5 = vld [vmem:[#allocation2 + $0x83] sm:$0xff]  ;;  %v2052_v44 = vadd.f32 %v2036_v40, %v2000_v18  ;;  %v2125_v25 = vmul.f32 %v4489_v37, %v2105_v36  ;;  %vm1674_vm6 = vcmp.lt.s32.totalorder %v7024_v16, 300  ;;  %v7026_v41 = vld [vmem:[#allocation106_spill] sm:$0xff] }
 0x355   : > { %v2693_v12 = vadd.f32 %v7023_v1, %v2656_v22  ;;  %v2253_v45 = vld [vmem:[#allocation2 + $0x85] sm:$0xff]  ;;  %v2288_v22 = vadd.f32 %v2272_v9, %v2251_v56  ;;  %v2162_v31 = vmul.f32 %v4513_v29, %v2142_v28  ;;  %v2199_v9 = vmul.f32 %v4585_v10, %v2179_v5 }
 0x356   : > { %v2509_v53 = vadd.f32 %v2493_v52, %v2472_v3  ;;  %v2290_v27 = vld [vmem:[#allocation2 + $0x86] sm:$0xff]  ;;  %v2104_v34 = vadd.f32 %v7026_v41, %v2052_v44  ;;  %v2236_v14 = vmul.f32 %v4592_v19, %v2216_v48  ;;  %v2273_v37 = vmul.f32 %v6797_v21, %v2253_v45 }
 0x357   : > { %v2730_v23 = vadd.f32 %v2714_v39, %v2693_v12  ;;  %v6122_v24 = vld [vmem:[#allocation2 + $0x87] sm:$0xff]  ;;  %v2325_v52 = vadd.f32 %v2309_v8, %v2288_v22  ;;  %v2310_v56 = vmul.f32 %v6798_v15, %v2290_v27  ;;  %v2457_v29 = vmul.f32 %v4525_v38, %v2142_v28 }
 0x358   : > { %v7025_v40 = vld [vmem:[#allocation41_spill] sm:$0xff]  ;;  %v2546_v12 = vadd.f32 %v2530_v11, %v2509_v53  ;;  %v2141_v39 = vadd.f32 %v2125_v25, %v2104_v34  ;;  %v2347_v3 = vmul.f32 %v6799_v46, %v6122_v24  ;;  %v2494_v8 = vmul.f32 %v6963_v7, %v2179_v5  ;;  %v7027_v11 = vld [vmem:[#allocation26_spill] sm:$0xff] }
 0x359   : > { %vm1675_vm15 = vcmp.lt.s32.totalorder %v7025_v40, 300  ;;  %v2767_v1 = vadd.f32 %v2751_v35, %v2730_v23  ;;  %v2362_v32 = vadd.f32 %v2346_v13, %v2325_v52  ;;  %v2420_v35 = vmul.f32 %v4493_v0, %v2105_v36 }
 0x35a   : > { %v2583_v44 = vadd.f32 %v2567_v50, %v2546_v12  ;;  %v2178_v10 = vadd.f32 %v2162_v31, %v2141_v39  ;;  %v2531_v19 = vmul.f32 %v6866_v20, %v2216_v48  ;;  %v2568_v21 = vmul.f32 %v6870_v47, %v2253_v45  ;;  %v7029_v31 = vld [vmem:[#allocation93_spill] sm:$0xff]  ;;  %v7030_v12 = vld [vmem:[#allocation38_spill] sm:$0xff]  ;;  %v7031_v39 = vld [vmem:[#allocation35_spill] sm:$0xff] }
 0x35b   : > { %v2804_v18 = vadd.f32 %v2788_v6, %v2767_v1  ;;  %v2399_v23 = vadd.f32 %v7027_v11, %v2362_v32  ;;  %v2605_v15 = vmul.f32 %v7018_v61, %v2290_v27  ;;  %v6143_v46 = vmul.f32 %v6872_v55, %v6122_v24  ;;  %v7028_v1 = vld [vmem:[#allocation37_spill] sm:$0xff] }
 0x35c   : > { %v2620_v6 = vadd.f32 %v2604_v57, %v2583_v44  ;;  %v2215_v13 = vadd.f32 %v2199_v9, %v2178_v10  ;;  %v2715_v50 = vmul.f32 %v6965_v51, %v2105_v36  ;;  %v2752_v22 = vmul.f32 %v4544_v60, %v2142_v28  ;;  %v7032_v44 = vld [vmem:[#allocation80_spill] sm:$0xff]  ;;  %v7033_v36 = vld [vmem:[#allocation83_spill] sm:$0xff] }
 0x35d   : > { %v2789_v53 = vmul.f32 %v4650_v2, %v2179_v5  ;;  %v2436_v41 = vadd.f32 %v2420_v35, %v2399_v23  ;;  %v2826_v34 = vmul.f32 %v6750_v17, %v2216_v48  ;;  %v6150_v32 = vmul.f32 %v6967_v26, %v2253_v45  ;;  %v7034_v28 = vld [vmem:[#allocation27_spill] sm:$0xff] }
 0x35e   : > { %v2657_v25 = vadd.f32 %v2641_v63, %v2620_v6  ;;  %v2252_v57 = vadd.f32 %v2236_v14, %v2215_v13  ;;  %v1668_v52 = vmul.f32 %v7029_v31, %v7028_v1  ;;  %v1669_v9 = vmul.f32 %v7031_v39, %v7030_v12  ;;  %v7035_v63 = vld [vmem:[#allocation105_spill] sm:$0xff]  ;;  %v7037_v12 = vld [vmem:[#allocation74_spill] sm:$0xff] }
 0x35f   : > { %v2756_v10 = vadd.f32 %v7033_v36, %v7032_v44  ;;  %v2473_v5 = vadd.f32 %v2457_v29, %v2436_v41  ;;  %v2839_v35 = vadd.f32 %v7035_v63, %v6032_v62  ;;  %v2840_v48 = vadd.f32 %v6073_v33, %v6088_v54  ;;  %v7036_v6 = vld [vmem:[#allocation85_spill] sm:$0xff] }
 0x360   : > { %v2694_v11 = vadd.f32 %v7034_v28, %v2657_v25  ;;  %v2289_v45 = vadd.f32 %v2273_v37, %v2252_v57  ;;  %v1680_v14 = vsel %vm1674_vm6, %v1668_v52, 0.0  ;;  %v1681_v23 = vsel %vm1675_vm15, %v1669_v9, 0.0  ;;  %v7038_v41 = vld [vmem:[#allocation29_spill] sm:$0xff]  ;;  %v7041_v57 = vld [vmem:[#allocation96_spill] sm:$0xff] }
 0x361   : > { %v2793_v13 = vadd.f32 %v7036_v6, %v2756_v10  ;;  %v2510_v1 = vadd.f32 %v2494_v8, %v2473_v5  ;;  %v6169_v25 = vmul.f32 %v7037_v12, %v2290_v27  ;;  %1682 = vst [vmem:[#allocation2 + $0x90] sm:$0xff] %v1680_v14  ;;  %1683 = vst [vmem:[#allocation2 + $0x98] sm:$0xff] %v1681_v23  ;;  %v7039_v54 = vld [vmem:[#allocation61_spill] sm:$0xff]  ;;  %v7042_v8 = vld [vmem:[#allocation56_spill] sm:$0xff] }
 0x362   : > { %v2731_v31 = vadd.f32 %v2715_v50, %v2694_v11  ;;  %v2841_v62 = vadd.f32 %v2825_v43, %v2804_v18  ;;  %v2326_v29 = vadd.f32 %v2310_v56, %v2289_v45  ;;  %v6172_v33 = vmul.f32 %v7038_v41, %v1680_v14  ;;  %v7040_v37 = vld [vmem:[#allocation69_spill] sm:$0xff]  ;;  %v7044_v27 = vld [vmem:[#allocation22_spill] sm:$0xff]  ;;  %v7046_v18 = vld [vmem:[#allocation99_spill] sm:$0xff] }
 0x363   : > { %v2830_v16 = vadd.f32 %v7039_v54, %v2793_v13  ;;  %v6177_v40 = vadd.f32 %v7041_v57, %v7040_v37  ;;  %v2547_v52 = vadd.f32 %v2531_v19, %v2510_v1  ;;  %v7043_v50 = vld [vmem:[#allocation53_spill] sm:$0xff]  ;;  %v6191_v10 = vadd.f32 %v6021_v58, %v2839_v35  ;;  %v7047_v45 = vld [vmem:[#allocation66_spill] sm:$0xff]  ;;  %v3744_v58 = vld [vmem:[#allocation2 + $0x36] sm:$0xff] }
 0x364   : > { %v2768_v39 = vadd.f32 %v2752_v22, %v2731_v31  ;;  %v6181_v9 = vadd.f32 %v7043_v50, %v7042_v8  ;;  %v7045_v44 = vld [vmem:[#allocation101_spill] sm:$0xff]  ;;  %v2363_v43 = vadd.f32 %v2347_v3, %v2326_v29  ;;  %v6194_v28 = vadd.f32 %v6076_v30, %v2840_v48  ;;  %v3743_v14 = vld [vmem:[#allocation2 + $0x2e] sm:$0xff]  ;;  %v3748_v41 = vld [vmem:[#allocation2 + $0x56] sm:$0xff] }
 0x365   : > { %v6185_v36 = vadd.f32 %v7045_v44, %v7044_v27  ;;  %v6188_v56 = vadd.f32 %v7046_v18, %v2830_v16  ;;  %v2584_v19 = vadd.f32 %v2568_v21, %v2547_v52  ;;  %v6197_v11 = vadd.f32 %v6119_v4, %v2841_v62  ;;  %v3742_v5 = vld [vmem:[#allocation2 + $0x26] sm:$0xff]  ;;  %v3745_v30 = vld [vmem:[#allocation2 + $0x3e] sm:$0xff]  ;;  %v3747_v13 = vld [vmem:[#allocation2 + $0x4e] sm:$0xff] }
 0x366   : > { %v2805_v22 = vadd.f32 %v2789_v53, %v2768_v39  ;;  %v6200_v63 = vmul.f32 %v3742_v5, %v7037_v12  ;;  %v2400_v3 = vadd.f32 %v7047_v45, %v2363_v43  ;;  %v6204_v23 = vmul.f32 %v3743_v14, %v7037_v12  ;;  %v3746_v48 = vld [vmem:[#allocation2 + $0x46] sm:$0xff] }
 0x367   : > { %v6207_v35 = vmul.f32 %v3744_v58, %v7037_v12  ;;  %v6210_v21 = vmul.f32 %v3745_v30, %v7037_v12  ;;  %v2621_v4 = vadd.f32 %v2605_v15, %v2584_v19  ;;  %v2892_v6 = vmul.f32 %v3746_v48, %v7037_v12  ;;  %v7048_v16 = vld [vmem:[#allocation98_spill] sm:$0xff]  ;;  %v7049_v57 = vld [vmem:[#allocation17_spill] sm:$0xff]  ;;  %v7051_v58 = vld [vmem:[#allocation88_spill] sm:$0xff] }
 0x368   : > { %v2842_v53 = vadd.f32 %v2826_v34, %v2805_v22  ;;  %v2893_v1 = vmul.f32 %v3747_v13, %v7037_v12  ;;  %v2401_v31 = vld [vmem:[#allocation2 + $0x89] sm:$0xff]  ;;  %v2894_v54 = vmul.f32 %v3748_v41, %v7037_v12  ;;  %v2895_v37 = vmul.f32 %v7037_v12, %v7048_v16  ;;  %v2734_v48 = vld [vmem:[#allocation2 + $0x92] sm:$0xff] }
 0x369   : > { %v2438_v62 = vld [vmem:[#allocation2 + $0x8a] sm:$0xff]  ;;  %v2896_v52 = vmul.f32 %v7037_v12, %v7049_v57  ;;  %v2658_v39 = vadd.f32 %v6143_v46, %v2621_v4  ;;  %v2421_v8 = vmul.f32 %v4493_v0, %v2401_v31  ;;  %v2898_v18 = vmul.f32 %v7037_v12, %v6018_v42  ;;  %v2771_v13 = vld [vmem:[#allocation2 + $0x93] sm:$0xff] }
 0x36a   : > { %v2475_v29 = vld [vmem:[#allocation2 + $0x8b] sm:$0xff]  ;;  %v2458_v50 = vmul.f32 %v4525_v38, %v2438_v62  ;;  %v2716_v14 = vmul.f32 %v6965_v51, %v2401_v31  ;;  %v2808_v42 = vld [vmem:[#allocation2 + $0x94] sm:$0xff] }
 0x36b   : > { %v7050_v15 = vld [vmem:[#allocation89_spill] sm:$0xff]  ;;  %v2512_v27 = vld [vmem:[#allocation2 + $0x8c] sm:$0xff]  ;;  %v2495_v19 = vmul.f32 %v6963_v7, %v2475_v29  ;;  %v2695_v0 = vadd.f32 %v7051_v58, %v2658_v39  ;;  %v2437_v30 = vadd.f32 %v2421_v8, %v2400_v3  ;;  %v2753_v7 = vmul.f32 %v4544_v60, %v2438_v62  ;;  %v2845_v31 = vld [vmem:[#allocation2 + $0x95] sm:$0xff] }
 0x36c   : > { %v2897_v34 = vmul.f32 %v7037_v12, %v7050_v15  ;;  %v2549_v44 = vld [vmem:[#allocation2 + $0x8d] sm:$0xff]  ;;  %v2532_v22 = vmul.f32 %v6866_v20, %v2512_v27  ;;  %v2790_v20 = vmul.f32 %v4650_v2, %v2475_v29  ;;  %v2882_v16 = vld [vmem:[#allocation2 + $0x96] sm:$0xff]  ;;  %v6243_v62 = vmul.f32 %v4544_v60, %v2734_v48 }
 0x36d   : > { %v2586_v43 = vld [vmem:[#allocation2 + $0x8e] sm:$0xff]  ;;  %v2569_v5 = vmul.f32 %v6870_v47, %v2549_v44  ;;  %v2827_v47 = vmul.f32 %v6750_v17, %v2512_v27  ;;  %v2864_v41 = vmul.f32 %v6967_v26, %v2549_v44  ;;  %v2474_v57 = vadd.f32 %v2458_v50, %v2437_v30 }
 0x36e   : > { %v2623_v45 = vld [vmem:[#allocation2 + $0x8f] sm:$0xff]  ;;  %v2606_v38 = vmul.f32 %v7018_v61, %v2586_v43  ;;  %v2732_v15 = vadd.f32 %v2716_v14, %v2695_v0  ;;  %v2901_v3 = vmul.f32 %v7037_v12, %v2586_v43  ;;  %v6246_v29 = vmul.f32 %v4650_v2, %v2771_v13  ;;  %v7056_v13 = vld [vmem:[#allocation100_spill] sm:$0xff] }
 0x36f   : > { %v2697_v46 = vld [vmem:[#allocation2 + $0x91] sm:$0xff]  ;;  %v2643_v4 = vmul.f32 %v6872_v55, %v2623_v45  ;;  %v6249_v27 = vmul.f32 %v6750_v17, %v2808_v42  ;;  %v2511_v44 = vadd.f32 %v2495_v19, %v2474_v57  ;;  %v6252_v14 = vmul.f32 %v6967_v26, %v2845_v31  ;;  %v3749_v57 = vld [vmem:[#allocation2 + $0x1f] sm:$0xff] }
 0x370   : > { %v7052_v61 = vld [vmem:[#allocation75_spill] sm:$0xff]  ;;  %v2717_v8 = vmul.f32 %v6965_v51, %v2697_v46  ;;  %v2769_v50 = vadd.f32 %v2753_v7, %v2732_v15  ;;  %v6255_v43 = vmul.f32 %v7037_v12, %v2882_v16  ;;  %v2879_v60 = vadd.f32 %v6150_v32, %v2842_v53  ;;  %v7053_v51 = vld [vmem:[#allocation58_spill] sm:$0xff] }
 0x371   : > { %v6239_v39 = vmul.f32 %v7052_v61, %v2623_v45  ;;  %v2919_v55 = vld [vmem:[#allocation2 + $0x97] sm:$0xff]  ;;  %v2899_v2 = vmul.f32 %v7037_v12, %v6080_v59  ;;  %v2903_v17 = vadd.f32 %v7053_v51, %v6177_v40  ;;  %v2548_v46 = vadd.f32 %v2532_v22, %v2511_v44  ;;  %v7055_v30 = vld [vmem:[#allocation50_spill] sm:$0xff] }
 0x372   : > { %v6258_v45 = vmul.f32 %v7052_v61, %v2919_v55  ;;  %v2806_v19 = vadd.f32 %v2790_v20, %v2769_v50  ;;  %v2904_v26 = vadd.f32 %v6200_v63, %v6188_v56  ;;  %v7054_v58 = vld [vmem:[#allocation79_spill] sm:$0xff]  ;;  %v2906_v48 = vadd.f32 %v6207_v35, %v7055_v30  ;;  %v7058_v59 = vld [vmem:[#allocation102_spill] sm:$0xff]  ;;  %v7061_v50 = vld [vmem:[#allocation16_spill] sm:$0xff] }
 0x373   : > { %v2905_v0 = vadd.f32 %v6204_v23, %v7054_v58  ;;  %v2907_v32 = vadd.f32 %v6210_v21, %v7056_v13  ;;  %v7057_v53 = vld [vmem:[#allocation51_spill] sm:$0xff]  ;;  %v2909_v12 = vadd.f32 %v2893_v1, %v7058_v59  ;;  %v2585_v7 = vadd.f32 %v2569_v5, %v2548_v46  ;;  %v3750_v5 = vld [vmem:[#allocation2 + $0x27] sm:$0xff] }
 0x374   : > { %v2908_v42 = vadd.f32 %v2892_v6, %v7057_v53  ;;  %v2843_v40 = vadd.f32 %v2827_v47, %v2806_v19  ;;  %v7059_v22 = vld [vmem:[#allocation67_spill] sm:$0xff]  ;;  %v2911_v31 = vadd.f32 %v2895_v37, %v6181_v9  ;;  %v2912_v56 = vadd.f32 %v2896_v52, %v6185_v36  ;;  %v3753_v37 = vld [vmem:[#allocation2 + $0x3f] sm:$0xff] }
 0x375   : > { %v2910_v20 = vadd.f32 %v2894_v54, %v7059_v22  ;;  %v2913_v63 = vadd.f32 %v2897_v34, %v6191_v10  ;;  %v2914_v23 = vadd.f32 %v2898_v18, %v6194_v28  ;;  %v2915_v35 = vadd.f32 %v2899_v2, %v6197_v11  ;;  %v3751_v47 = vld [vmem:[#allocation2 + $0x2f] sm:$0xff]  ;;  %v3752_v36 = vld [vmem:[#allocation2 + $0x37] sm:$0xff]  ;;  %v3754_v34 = vld [vmem:[#allocation2 + $0x47] sm:$0xff] }
 0x376   : > { %v2622_v16 = vadd.f32 %v2606_v38, %v2585_v7  ;;  %v2880_v21 = vadd.f32 %v2864_v41, %v2843_v40  ;;  %v2916_v6 = vadd.f32 %v6169_v25, %v2879_v60  ;;  %v2924_v1 = vmul.f32 %v3749_v57, %v7052_v61  ;;  %v3755_v18 = vld [vmem:[#allocation2 + $0x4f] sm:$0xff]  ;;  %v3756_v41 = vld [vmem:[#allocation2 + $0x57] sm:$0xff]  ;;  %v7063_v46 = vld [vmem:[#allocation81_spill] sm:$0xff] }
 0x377   : > { %v2925_v54 = vmul.f32 %v3750_v5, %v7052_v61  ;;  %v2926_v9 = vmul.f32 %v3751_v47, %v7052_v61  ;;  %v2927_v10 = vmul.f32 %v3752_v36, %v7052_v61  ;;  %v2928_v28 = vmul.f32 %v3753_v37, %v7052_v61  ;;  %v7060_v55 = vld [vmem:[#allocation15_spill] sm:$0xff]  ;;  %v7062_v2 = vld [vmem:[#allocation90_spill] sm:$0xff]  ;;  %v6306_v40 = vld [vmem:[%s6546_s8] ss:$0 sm:$0xff] }
 0x378   : > { %v2659_v11 = vadd.f32 %v2643_v4, %v2622_v16  ;;  %v2917_v52 = vadd.f32 %v2901_v3, %v2880_v21  ;;  %v2929_v25 = vmul.f32 %v3754_v34, %v7052_v61  ;;  %v2930_v38 = vmul.f32 %v3755_v18, %v7052_v61 }
 0x379   : > { %v2931_v15 = vmul.f32 %v3756_v41, %v7052_v61  ;;  %v2932_v44 = vmul.f32 %v7052_v61, %v7060_v55  ;;  %v2933_v60 = vmul.f32 %v7052_v61, %v7061_v50  ;;  %v2934_v51 = vmul.f32 %v7052_v61, %v7062_v2 }
 0x37a   : > { %v2696_v4 = vadd.f32 %v6172_v33, %v2659_v11  ;;  %v2935_v3 = vmul.f32 %v7052_v61, %v6025_v49  ;;  %v2936_v19 = vmul.f32 %v7052_v61, %v7063_v46  ;;  %v2937_v58 = vmul.f32 %v7052_v61, %v6122_v24 }
 0x37b   : > { %v2940_v30 = vadd.f32 %v2924_v1, %v2903_v17  ;;  %v2941_v13 = vadd.f32 %v2925_v54, %v2904_v26  ;;  %v2942_v53 = vadd.f32 %v2926_v9, %v2905_v0  ;;  %v2943_v59 = vadd.f32 %v2927_v10, %v2906_v48 }
 0x37c   : > { %v2733_v7 = vadd.f32 %v2717_v8, %v2696_v4  ;;  %v2944_v33 = vadd.f32 %v2928_v28, %v2907_v32  ;;  %v2945_v22 = vadd.f32 %v2929_v25, %v2908_v42  ;;  %v2946_v49 = vadd.f32 %v2930_v38, %v2909_v12 }
 0x37d   : > { %v2947_v16 = vadd.f32 %v2931_v15, %v2910_v20  ;;  %v2948_v21 = vadd.f32 %v2932_v44, %v2911_v31  ;;  %v2949_v57 = vadd.f32 %v2933_v60, %v2912_v56  ;;  %v2950_v5 = vadd.f32 %v2934_v51, %v2913_v63 }
 0x37e   : > { %v2770_v24 = vadd.f32 %v6243_v62, %v2733_v7  ;;  %v2951_v61 = vadd.f32 %v2935_v3, %v2914_v23  ;;  %v2952_v17 = vadd.f32 %v2936_v19, %v2915_v35  ;;  %v2953_v26 = vadd.f32 %v2937_v58, %v2916_v6 }
 0x37f   : > { %v2954_v8 = vadd.f32 %v6239_v39, %v2917_v52  ;;  %v2962_v0 = vadd.f32 %v6306_v40, %v2940_v30  ;;  %v2963_v48 = vadd.f32 %v6306_v40, %v2941_v13  ;;  %v2964_v32 = vadd.f32 %v6306_v40, %v2942_v53 }
 0x380   : > { %v2807_v42 = vadd.f32 %v6246_v29, %v2770_v24  ;;  %v2965_v12 = vadd.f32 %v6306_v40, %v2943_v59  ;;  %v2966_v62 = vadd.f32 %v6306_v40, %v2944_v33  ;;  %v2967_v20 = vadd.f32 %v6306_v40, %v2945_v22 }
 0x381   : > { %v2968_v39 = vadd.f32 %v6306_v40, %v2946_v49  ;;  %v2969_v31 = vadd.f32 %v6306_v40, %v2947_v16  ;;  %v2970_v56 = vadd.f32 %v6306_v40, %v2948_v21  ;;  %v2971_v63 = vadd.f32 %v6306_v40, %v2949_v57 }
 0x382   : > { %v2844_v29 = vadd.f32 %v6249_v27, %v2807_v42  ;;  %v2972_v23 = vadd.f32 %v6306_v40, %v2950_v5  ;;  %v2973_v35 = vadd.f32 %v6306_v40, %v2951_v61  ;;  %v2974_v6 = vadd.f32 %v6306_v40, %v2952_v17  ;;  %v7078_v17 = vld [vmem:[#allocation73_spill] sm:$0xff] }
 0x383   : > { %v2975_v1 = vadd.f32 %v6306_v40, %v2953_v26  ;;  %v2976_v54 = vadd.f32 %v6306_v40, %v2954_v8  ;;  %v2978_v9 = vsel %vm1166_vm0, %v2962_v0, 0.0  ;;  %v2979_v10 = vsel %vm1167_vm1, %v2963_v48, 0.0  ;;  %v7080_v8 = vld [vmem:[#allocation57_spill] sm:$0xff] }
 0x384   : > { %v2881_v27 = vadd.f32 %v6252_v14, %v2844_v29  ;;  %v2980_v28 = vsel %vm1168_vm2, %v2964_v32, 0.0  ;;  %v6341_v52 = vsel %vm1169_vm3, %v2965_v12, 0.0  ;;  %v6345_v25 = vsel %vm1170_vm4, %v2966_v62, 0.0 }
 0x385   : > { %v6349_v38 = vsel %vm1171_vm5, %v2967_v20, 0.0  ;;  %v6353_v15 = vsel %vm1172_vm7, %v2968_v39, 0.0  ;;  %v6357_v55 = vsel %vm1173_vm8, %v2969_v31, 0.0  ;;  %v6361_v50 = vsel %vm1175_vm10, %v2971_v63, 0.0 }
 0x386   : > { %v2918_v60 = vadd.f32 %v6255_v43, %v2881_v27  ;;  %v6366_v51 = vsel %vm1174_vm9, %v2970_v56, 0.0  ;;  %v6370_v3 = vsel %vm1176_vm11, %v2972_v23, 0.0  ;;  %v6374_v19 = vsel %vm1177_vm12, %v2973_v35, 0.0 }
 0x387   : > { %v6378_v30 = vsel %vm1178_vm13, %v2974_v6, 0.0  ;;  %v6382_v53 = vsel %vm1179_vm14, %v2975_v1, 0.0  ;;  %v3470_v43 = vpack.c.bf16 %v2979_v10, %v2978_v9  ;;  %v3475_v59 = vpack.c.bf16 %v6341_v52, %v2980_v28 }
 0x388   : > { %v2955_v7 = vadd.f32 %v6258_v45, %v2918_v60  ;;  %v3480_v33 = vpack.c.bf16 %v6349_v38, %v6345_v25  ;;  %v3485_v22 = vpack.c.bf16 %v6357_v55, %v6353_v15  ;;  %v3490_v49 = vpack.c.bf16 %v6361_v50, %v6366_v51 }
 0x389   : > { %3471 = vst [vmem:[%s487_s18] sm:$0xff] %v3470_v43   ;;  %3507 = vst [vmem:[%s487_s18 + $0x8] sm:$0xff] %v3475_v59   ;;  %v3495_v16 = vpack.c.bf16 %v6374_v19, %v6370_v3  ;;  %v3500_v21 = vpack.c.bf16 %v6382_v53, %v6378_v30  ;;  %v3074_v45 = vadd.f32 %v2979_v10, %v2978_v9  ;;  %vm7079_vm0 = vcmp.lt.s32.totalorder %v7078_v17, 300 }
 0x38a   : > { %v2977_v57 = vadd.f32 %v6306_v40, %v2955_v7  ;;  %3508 = vst [vmem:[%s487_s18 + $0x10] sm:$0xff] %v3480_v33   ;;  %3509 = vst [vmem:[%s487_s18 + $0x18] sm:$0xff] %v3485_v22   ;;  %v3095_v24 = vmul.f32 %v2978_v9, %v2978_v9  ;;  %v3096_v61 = vmul.f32 %v2979_v10, %v2979_v10  ;;  %v6400_v26 = vsel %vm7079_vm0, %v2976_v54, 0.0 }
 0x38b   : > { %3510 = vst [vmem:[%s487_s18 + $0x20] sm:$0xff] %v3490_v49   ;;  %3511 = vst [vmem:[%s487_s18 + $0x28] sm:$0xff] %v3495_v16   ;;  %v3075_v5 = vadd.f32 %v3074_v45, %v2980_v28  ;;  %vm7081_vm1 = vcmp.lt.s32.totalorder %v7080_v8, 300  ;;  %v3097_v42 = vmul.f32 %v2980_v28, %v2980_v28 }
 0x38c   : > { %3512 = vst [vmem:[%s487_s18 + $0x30] sm:$0xff] %v3500_v21   ;;  %v6404_v0 = vsel %vm7081_vm1, %v2977_v57, 0.0  ;;  %v3111_v12 = vadd.f32 %v3096_v61, %v3095_v24 }
 0x38d   : > { %v3505_v40 = vpack.c.bf16 %v6404_v0, %v6400_v26  ;;  %v3076_v48 = vadd.f32 %v3075_v5, %v6341_v52 }
 0x38f   : > { %3513 = vst [vmem:[%s487_s18 + $0x38] sm:$0xff] %v3505_v40   ;;  %v3077_v32 = vadd.f32 %v3076_v48, %v6345_v25 }
 0x390   : > { %3770 = shalt.err (!%p3767_p13)
}
 0x391   : > { %s3771_s18 = scalar_lea.hbm %s6413_s21, 1024  ;;  %s3775_s28 = scalar_lea.hbm %s6547_s9, 6144 }
 0x392   : > { %p3772_p0 = scmp.ne.s32.totalorder %s6413_s21, %s3771_s18  ;;  %p3776_p4 = scmp.lt.u32.totalorder %s6413_s21, %s6547_s9 }
 0x393   : > { %p3777_p5 = scmp.lt.u32.totalorder %s3775_s28, %s3771_s18  ;;  %p3779_p7 = scmp.lt.u32.totalorder %s3771_s18, %s6413_s21 }
 0x394   : > { %p3773_p1 = pnand %p3772_p0, %p3996_p3 }
 0x395   : > { %p3778_p6 = por %p3777_p5, %p3776_p4 }
 0x396   : > { %p3774_p2 = pneg %p3773_p1 }
 0x397   : > { %p3780_p9 = por %p3779_p7, %p3778_p6 }
 0x399   : > { %p3781_p10 = pnand %p3780_p9, %p3774_p2 }
 0x39b   : > { %3784 = shalt.err (!%p3781_p10)
}
 0x39c   : > { %s3887_s22 = smov 64   ;;  %s3888_s25 = smov 4   ;;  %v3078_v62 = vadd.f32 %v3077_v32, %v6349_v38  ;;  %v3098_v20 = vmul.f32 %v6341_v52, %v6341_v52  ;;  %v3112_v39 = vadd.f32 %v3111_v12, %v3097_v42  ;;  %v3099_v56 = vmul.f32 %v6345_v25, %v6345_v25 }
 0x39d   : > { %s7082_s0 = scalar_lea.sflag [#allocation4], %s6315_s24  ;;  %v3100_v23 = vmul.f32 %v6349_v38, %v6349_v38  ;;  %v3101_v1 = vmul.f32 %v6353_v15, %v6353_v15  ;;  %v3102_v9 = vmul.f32 %v6357_v55, %v6357_v55  ;;  %v3103_v27 = vmul.f32 %v6366_v51, %v6366_v51 }
 0x39e   : > { %3517 = dma.vmem_to_hbm [thread:$0]  (%p3996_p3), %s6406_s12, 1024, %s6413_s21, %s7082_s0, %s3887_s22, %s3887_s22, %s3888_s25   ;;  %v3079_v31 = vadd.f32 %v3078_v62, %v6353_v15  ;;  %v3113_v63 = vadd.f32 %v3112_v39, %v3098_v20  ;;  %v3104_v11 = vmul.f32 %v6361_v50, %v6361_v50  ;;  %v3105_v25 = vmul.f32 %v6370_v3, %v6370_v3 }
 0x39f   : > { %v3106_v41 = vmul.f32 %v6374_v19, %v6374_v19  ;;  %v3108_v44 = vmul.f32 %v6382_v53, %v6382_v53  ;;  %v3109_v2 = vmul.f32 %v6400_v26, %v6400_v26  ;;  %s3516_s0 = smul.u32 3, %s3871_s17  ;;  %s3336_s12 = sshll.u32 %s6315_s24, 1  ;;  %vm3132_vm2 = vcmask 1040384  }
 0x3a0   : > { %v3080_v29 = vadd.f32 %v3079_v31, %v6357_v55  ;;  %v3114_v35 = vadd.f32 %v3113_v63, %v3099_v56  ;;  %v3107_v55 = vmul.f32 %v6378_v30, %v6378_v30  ;;  %s494_s18 = scalar_lea.vmem [#allocation5], %s3336_s12  ;;  %s3889_s22 = smov [#allocation5]  }
 0x3a1   : > { %s3171_s21 = sadd.s32 %s3867_s16, %s3516_s0  ;;  %s3175_s30 = sshll.u32 %s494_s18, 4  ;;  %s6486_s30 = int_to_ptr.vmem [resolvable:$true] %s3175_s30 }
 0x3a2   : > { %v3081_v6 = vadd.f32 %v3080_v29, %v6366_v51  ;;  %v3115_v54 = vadd.f32 %v3114_v35, %v3100_v23  ;;  %s3442_s23 = sshll.u32 %s3171_s21, 5  ;;  %s3142_s16 = scalar_lea.sflag [#allocation6], %s6315_s24 }
 0x3a3   : > { %s6484_s17 = scalar_lea.hbm %s6548_s10, %s3442_s23  ;;  %s3785_s29 = scalar_lea.vmem %s6486_s30, 32 }
 0x3a4   : > { %v3082_v47 = vadd.f32 %v3081_v6, %v6361_v50  ;;  %v3116_v36 = vadd.f32 %v3115_v54, %v3101_v1  ;;  %p3786_p11 = scmp.ne.s32.totalorder %s6486_s30, %s3785_s29  ;;  %s3789_s25 = sshll.u32 %s3889_s22, 4  ;;  %s3790_s25 = int_to_ptr.vmem [resolvable:$false] %s3789_s25 }
 0x3a5   : > { %s3791_s0 = scalar_lea.vmem %s3790_s25, 64  ;;  %p3792_p0 = scmp.lt.s32.totalorder %s6486_s30, %s3790_s25 }
 0x3a6   : > { %v3083_v10 = vadd.f32 %v3082_v47, %v6370_v3  ;;  %v3117_v37 = vadd.f32 %v3116_v36, %v3102_v9  ;;  %v3110_v3 = vmul.f32 %v6404_v0, %v6404_v0  ;;  %p3787_p12 = pnand %p3786_p11, %p3996_p3  ;;  %p3793_p1 = scmp.lt.s32.totalorder %s3791_s0, %s3785_s29 }
 0x3a8   : > { %v3084_v28 = vadd.f32 %v3083_v10, %v6374_v19  ;;  %v3118_v52 = vadd.f32 %v3117_v37, %v3103_v27  ;;  %p3788_p13 = pneg %p3787_p12  ;;  %p3794_p2 = por %p3793_p1, %p3792_p0 }
 0x3aa   : > { %v3085_v34 = vadd.f32 %v3084_v28, %v6378_v30  ;;  %v3119_v18 = vadd.f32 %v3118_v52, %v3104_v11  ;;  %p3795_p4 = pnand %p3794_p2, %p3788_p13 }
 0x3ac   : > { %v3086_v38 = vadd.f32 %v3085_v34, %v6382_v53  ;;  %v3120_v15 = vadd.f32 %v3119_v18, %v3105_v25 }
 0x3ae   : > { %v3087_v14 = vadd.f32 %v3086_v38, %v6400_v26  ;;  %v3121_v50 = vadd.f32 %v3120_v15, %v3106_v41 }
 0x3b0   : > { %v3088_v60 = vadd.f32 %v3087_v14, %v6404_v0  ;;  %v3122_v51 = vadd.f32 %v3121_v50, %v3107_v55 }
 0x3b2   : > { %v3089_v4 = vrot.slane %v3088_v60, 4  ;;  %v3123_v46 = vadd.f32 %v3122_v51, %v3108_v44 }
 0x3b4   : > { %v3090_v19 = vadd.f32 %v3089_v4, %v3088_v60  ;;  %v3124_v58 = vadd.f32 %v3123_v46, %v3109_v2 }
 0x3b6   : > { %v3091_v13 = vrot.slane %v3090_v19, 2  ;;  %v3125_v30 = vadd.f32 %v3124_v58, %v3110_v3 }
 0x3b8   : > { %v3126_v43 = vrot.slane %v3125_v30, 4  ;;  %v3092_v53 = vadd.f32 %v3091_v13, %v3090_v19 }
 0x3ba   : > { %v3127_v59 = vadd.f32 %v3126_v43, %v3125_v30  ;;  %v3093_v33 = vrot.slane %v3092_v53, 1 }
 0x3bc   : > { %v3128_v7 = vrot.slane %v3127_v59, 2  ;;  %v3094_v16 = vadd.f32 %v3093_v33, %v3092_v53 }
 0x3be   : > { %v3129_v22 = vadd.f32 %v3128_v7, %v3127_v59 }
 0x3c0   : > { %v3130_v49 = vrot.slane %v3129_v22, 1 }
 0x3c2   : > { %v3131_v21 = vadd.f32 %v3130_v49, %v3129_v22 }
 0x3c4   : > { %v3133_v45 = vsel %vm3132_vm2, %v3094_v16, %v3131_v21 }
 0x3c5   : > { %3135 = vst [vmem:[%s494_s18] sm:$0x3] %v3133_v45 }
 0x3c6   : > { %3798 = shalt.err (!%p3795_p4)
}
 0x3c7   : > { %s3799_s24 = scalar_lea.hbm %s6484_s17, 32  ;;  %s3803_s23 = scalar_lea.hbm %s6548_s10, 192 }
 0x3c8   : > { %p3800_p5 = scmp.ne.s32.totalorder %s6484_s17, %s3799_s24  ;;  %p3804_p9 = scmp.lt.u32.totalorder %s6484_s17, %s6548_s10 }
 0x3c9   : > { %p3805_p10 = scmp.lt.u32.totalorder %s3803_s23, %s3799_s24  ;;  %p3807_p12 = scmp.lt.u32.totalorder %s3799_s24, %s6484_s17 }
 0x3ca   : > { %p3801_p6 = pnand %p3800_p5, %p3996_p3 }
 0x3cb   : > { %p3806_p11 = por %p3805_p10, %p3804_p9 }
 0x3cc   : > { %p3802_p7 = pneg %p3801_p6 }
 0x3cd   : > { %p3808_p13 = por %p3807_p12, %p3806_p11 }
 0x3cf   : > { %p3809_p0 = pnand %p3808_p13, %p3802_p7 }
 0x3d1   : > { %3812 = shalt.err (!%p3809_p0)
}
 0x3d2   : > { %3518 = dma.vmem_to_hbm [thread:$0]  (%p3996_p3), %s6486_s30, 32, %s6484_s17, %s3142_s16  }
 0x3d3 PF: > { %p3528_p1 = scmp.ge.s32.totalorder %s3883_s20, 2  ;;  %s3187_s28 = sand.u32 1, %s3855_s13  }
 0x3d4   : > { %s3188_s29 = scalar_lea.sflag [#allocation4], %s3187_s28 }
 0x3d5   : > { %p3522_p2 = pnand %p3528_p1, %p4005_p8 }
 0x3d7   : > { %3846 = dma.done.wait (!%p3522_p2), %s3188_s29, 1024  }
 0x3d8   : > { %3848 = vsyncadd (!%p3522_p2), %s3188_s29, 4294966272  ;;  %s3197_s22 = scalar_lea.sflag [#allocation6], %s3187_s28 }
 0x3d9   : > { %3850 = dma.done.wait (!%p3522_p2), %s3197_s22, 32  }
 0x3da   : > { %3852 = vsyncadd (!%p3522_p2), %s3197_s22, 4294967264  ;;  %s27_s20 = sadd.s32 1, %s3883_s20   ;;  %s7083_s16 = sld [smem:[#allocation9_spill]] }
 0x3db   : > { %p24_p4 = scmp.ge.s32.totalorder %s27_s20, 8   ;;  %s7084_s17 = sld [smem:[#allocation10_spill]] }
 0x3dc   : > { %s7085_s18 = sld [smem:[#allocation11_spill]]  ;;  %s7086_s19 = sld [smem:[#allocation12_spill]] }
 0x3dd   : > { %s7087_s13 = smov %s3859_s14  ;;  %s7088_s14 = smov %s3863_s15 }
 0x3de   : > { %s7089_s15 = smov %s4014_s11  ;;  %26 = sbr.rel (!%p24_p4) target bundleno = 9 (0x9), region = 114 }
 0x3e5   :  { %3202 = vsyncpa [#allocation4], 1 }
 0x3e6   :  { %3204 = vsyncpa [#allocation4 + $0x1], 1 }
 0x3e7   :  { %3205 = vsyncpa [#allocation6], 1 }
 0x3e8   :  { %3207 = vsyncpa [#allocation6 + $0x1], 1 }

</bundles_post_ra>
